<compile_context>
chip_gen: v7x
topology: tpu7x:2x2x1
jax: 0.10.0
libtpu: 0.0.40
codegen_flags: <defaults>
</compile_context>

<pallas_src>
import functools

import jax
import jax.numpy as jnp
from jax.experimental import pallas as pl
from jax.experimental.pallas import tpu as pltpu


_VMEM_LIMIT = 48 * 1024 * 1024   # explicit scoped-VMEM limit; safe on v5e/v6e/v7x
_TM_MAX = 1024                   # max im2col rows per grid step


def _round_up(x, m):
    return ((x + m - 1) // m) * m


# ---------------------------------------------------------------------------
# Pallas kernels
# ---------------------------------------------------------------------------
def _matmul_bias_relu_kernel(x_ref, w_ref, b_ref, o_ref):
    """o = relu(x @ w + b): bf16 operands, f32 accumulation/elementwise, bf16 store."""
    y = jnp.dot(x_ref[...], w_ref[...], preferred_element_type=jnp.float32)
    y = jnp.maximum(y + b_ref[...], 0.0)
    o_ref[...] = y.astype(o_ref.dtype)


def _dueling_head_kernel(x_ref, w1_ref, b1_ref, w2_ref, b2_ref, w3_ref, b3_ref,
                         o_ref, *, n_actions):
    """Fused fc1 -> {value_fc | advantage_fc} -> {value | advantage} -> dueling combine.

    w2 = [value_fc_w | advantage_fc_w]                      (384, 768)
    w3 = block matrix: cols [0, A) = advantage_w (rows 384:768),
                       col  A      = value_w     (rows 0:384), rest zero.
    All intermediates stay in VMEM; one launch replaces five linears + combine.
    """
    h1 = jnp.dot(x_ref[...], w1_ref[...], preferred_element_type=jnp.float32)
    h1 = jnp.maximum(h1 + b1_ref[...], 0.0)                               # (B, 384) f32
    h2 = jnp.dot(h1.astype(jnp.bfloat16), w2_ref[...],
                 preferred_element_type=jnp.float32)
    h2 = jnp.maximum(h2 + b2_ref[...], 0.0)                               # (B, 768) f32
    y = jnp.dot(h2.astype(jnp.bfloat16), w3_ref[...],
                preferred_element_type=jnp.float32) + b3_ref[...]         # (B, 128) f32
    # cols [0, A): advantage;  col A: state value;  remaining cols: exact zeros.
    bsz, n_p = y.shape
    col = jax.lax.broadcasted_iota(jnp.int32, (bsz, n_p), 1)
    adv_mean = jnp.sum(jnp.where(col < n_actions, y, 0.0)) / (bsz * n_actions)
    state_value = y[:, n_actions:n_actions + 1]                           # (B, 1)
    # out[:, j] = state_value + advantage[:, j] - advantage.mean()  (global mean, as in torch)
    o_ref[...] = y + state_value - adv_mean


# ---------------------------------------------------------------------------
# Pallas wrappers
# ---------------------------------------------------------------------------
def matmul_bias_relu(x, w, b_row):
    """relu(x @ w + b): x (M,K) bf16, w (K,Np) bf16 with Np%128==0, b (1,Np) f32."""
    m, k = x.shape
    k2, n_p = w.shape
    assert k == k2 and n_p % 128 == 0
    if m <= _TM_MAX:
        tm, m_p = m, m                      # single full-array block, zero padding
    else:
        tm = _TM_MAX
        m_p = _round_up(m, tm)
        x = jnp.pad(x, ((0, m_p - m), (0, 0)))

    out = pl.pallas_call(
        _matmul_bias_relu_kernel,
        grid=(m_p // tm,),
        in_specs=[pl.BlockSpec((tm, k), lambda i: (i, 0)),
                  pl.BlockSpec((k, n_p), lambda i: (0, 0)),
                  pl.BlockSpec((1, n_p), lambda i: (0, 0))],
        out_specs=pl.BlockSpec((tm, n_p), lambda i: (i, 0)),
        out_shape=jax.ShapeDtypeStruct((m_p, n_p), jnp.bfloat16),
        compiler_params=pltpu.CompilerParams(
            dimension_semantics=("parallel",),
            vmem_limit_bytes=_VMEM_LIMIT),
    )(x, w, b_row)
    return out[:m]


def conv2d_relu(x_nhwc, w_mat, b_row, *, ksize, stride, in_ch):
    """VALID conv + ReLU via im2col (JAX glue) + fused Pallas matmul kernel.

    x_nhwc: (B, H, W, Cpad) bf16 (only the first `in_ch` channels are real).
    w_mat:  (ksize*ksize*in_ch, Npad) bf16, pre-packed by prepare_params.
    Returns (B, oh, ow, Npad) bf16, lane-dense output.
    """
    bsz, h, w, _ = x_nhwc.shape
    oh = (h - ksize) // stride + 1
    ow = (w - ksize) // stride + 1
    cols = []
    for i in range(ksize):
        for j in range(ksize):
            cols.append(x_nhwc[:, i:i + stride * oh:stride,
                               j:j + stride * ow:stride, :in_ch])
    patches = jnp.concatenate(cols, axis=-1)                 # (B, oh, ow, k*k*Cin) bf16
    patches = patches.reshape(bsz * oh * ow, ksize * ksize * in_ch)
    assert patches.shape[1] == w_mat.shape[0]
    y = matmul_bias_relu(patches, w_mat, b_row)              # (M, Npad) bf16
    return y.reshape(bsz, oh, ow, w_mat.shape[1])


def dueling_head(flat_bf16, prep, *, n_actions):
    """One fused kernel for fc1 + both heads + dueling combine."""
    bsz = flat_bf16.shape[0]
    n_p = prep["fc3_w"].shape[1]
    kernel = functools.partial(_dueling_head_kernel, n_actions=n_actions)
    out = pl.pallas_call(
        kernel,
        in_specs=[pl.BlockSpec(memory_space=pltpu.MemorySpace.VMEM)] * 7,
        out_specs=pl.BlockSpec(memory_space=pltpu.MemorySpace.VMEM),
        out_shape=jax.ShapeDtypeStruct((bsz, n_p), jnp.float32),
        compiler_params=pltpu.CompilerParams(vmem_limit_bytes=_VMEM_LIMIT),
    )(flat_bf16, prep["fc1_w"], prep["fc1_b"],
      prep["fc2_w"], prep["fc2_b"], prep["fc3_w"], prep["fc3_b"])
    return out[:, :n_actions]


# ---------------------------------------------------------------------------
# Full forward pass (matches Value.forward)
# ---------------------------------------------------------------------------
def value_forward(prep, x_nchw, *, action_size):
    bsz = x_nchw.shape[0]
    # x.float()/255 : the /255 is folded into conv1's weights at prepare time;
    # uint8 values (0..255) are exactly representable in bf16.
    x = jnp.transpose(x_nchw, (0, 2, 3, 1)).astype(jnp.bfloat16)          # NHWC

    h = conv2d_relu(x, prep["c1_w"], prep["c1_b"], ksize=8, stride=4,
                    in_ch=x.shape[-1])                                    # (B,18,18,128p)
    h = conv2d_relu(h, prep["c2_w"], prep["c2_b"], ksize=4, stride=2, in_ch=32)
    h = conv2d_relu(h, prep["c3_w"], prep["c3_b"], ksize=3, stride=1, in_ch=64)

    # NHWC flatten; no NCHW transpose needed (fc1 rows were permuted once in prepare_params).
    flat = h[..., :64].reshape(bsz, 6 * 6 * 64)
    return dueling_head(flat, prep, n_actions=action_size)
    # TODO(synk): torch.isnan(...).any() warning print is host-side debug; checked in __main__.


# ---------------------------------------------------------------------------
# Parameters: raw (torch-like) init + one-time packing for the kernels
# ---------------------------------------------------------------------------
def init_params(key, in_channels, action_size):
    ks = jax.random.split(key, 16)
    n = lambda k, shp, s=0.05: jax.random.normal(k, shp, jnp.float32) * s
    return {
        "conv1_w": n(ks[0], (32, in_channels, 8, 8)),
        "conv1_b": n(ks[1], (32,)),
        "conv2_w": n(ks[2], (64, 32, 4, 4)),
        "conv2_b": n(ks[3], (64,)),
        "conv3_w": n(ks[4], (64, 64, 3, 3)),
        "conv3_b": n(ks[5], (64,)),
        # Linear weights stored as (in, out) == torch_weight.T
        "fc1_w": n(ks[6], (64 * 6 * 6, 384)),
        "fc1_b": n(ks[7], (384,)),
        "value_fc_w": n(ks[8], (384, 384)),
        "value_fc_b": n(ks[9], (384,)),
        "value_w": n(ks[10], (384, 1)),
        "value_b": n(ks[11], (1,)),
        "adv_fc_w": n(ks[12], (384, 384)),
        "adv_fc_b": n(ks[13], (384,)),
        "adv_w": n(ks[14], (384, action_size)),
        "adv_b": n(ks[15], (action_size,)),
    }


def prepare_params(params, action_size):
    """One-time packing: (K,N) layouts, lane padding, bf16 cast, 1/255 folded into conv1,
    NHWC-ordered fc1 rows, concatenated / block-structured head matrices."""
    def conv_pack(w_oihw, bias, scale=1.0):
        o, c, kh, kw = w_oihw.shape
        w = jnp.transpose(w_oihw, (2, 3, 1, 0)).reshape(kh * kw * c, o) * scale
        pad = _round_up(o, 128) - o
        w = jnp.pad(w, ((0, 0), (0, pad))).astype(jnp.bfloat16)
        b = jnp.pad(bias, (0, pad)).astype(jnp.float32).reshape(1, -1)
        return w, b

    prep = {}
    prep["c1_w"], prep["c1_b"] = conv_pack(params["conv1_w"], params["conv1_b"], 1.0 / 255.0)
    prep["c2_w"], prep["c2_b"] = conv_pack(params["conv2_w"], params["conv2_b"])
    prep["c3_w"], prep["c3_b"] = conv_pack(params["conv3_w"], params["conv3_b"])

    # fc1: rows reordered from NCHW-flatten (c,h,w) to NHWC-flatten (h,w,c).
    fc1 = params["fc1_w"].reshape(64, 6, 6, 384).transpose(1, 2, 0, 3).reshape(2304, 384)
    prep["fc1_w"] = fc1.astype(jnp.bfloat16)
    prep["fc1_b"] = params["fc1_b"].astype(jnp.float32).reshape(1, 384)

    # Heads, stage 1: [value_fc | advantage_fc] -> single (384, 768) matmul.
    prep["fc2_w"] = jnp.concatenate([params["value_fc_w"], params["adv_fc_w"]],
                                    axis=1).astype(jnp.bfloat16)
    prep["fc2_b"] = jnp.concatenate([params["value_fc_b"], params["adv_fc_b"]]
                                    ).astype(jnp.float32).reshape(1, 768)

    # Heads, stage 2: block matrix; cols [0,A) = advantage, col A = value, rest zero.
    a = action_size
    n_p = _round_up(a + 1, 128)
    w3 = jnp.zeros((768, n_p), jnp.float32)
    w3 = w3.at[384:, :a].set(params["adv_w"])
    w3 = w3.at[:384, a].set(params["value_w"][:, 0])
    prep["fc3_w"] = w3.astype(jnp.bfloat16)
    b3 = jnp.zeros((1, n_p), jnp.float32)
    b3 = b3.at[0, :a].set(params["adv_b"])
    b3 = b3.at[0, a].set(params["value_b"][0])
    prep["fc3_b"] = b3
    return prep


# ---------------------------------------------------------------------------
# Pure-JAX f32 reference (mirrors the torch module) for validation
# ---------------------------------------------------------------------------
def reference_forward(params, x_nchw):
    x = x_nchw.astype(jnp.float32) / 255.0

    def conv(h, w, bias, stride):
        y = jax.lax.conv_general_dilated(h, w, (stride, stride), "VALID",
                                         dimension_numbers=("NCHW", "OIHW", "NCHW"))
        return jax.nn.relu(y + bias[None, :, None, None])

    h = conv(x, params["conv1_w"], params["conv1_b"], 4)
    h = conv(h, params["conv2_w"], params["conv2_b"], 2)
    h = conv(h, params["conv3_w"], params["conv3_b"], 1)
    flat = h.reshape(h.shape[0], -1)                       # NCHW flatten (torch .view)
    h4 = jax.nn.relu(flat @ params["fc1_w"] + params["fc1_b"])
    sv = jax.nn.relu(h4 @ params["value_fc_w"] + params["value_fc_b"])
    sv = sv @ params["value_w"] + params["value_b"]
    adv = jax.nn.relu(h4 @ params["adv_fc_w"] + params["adv_fc_b"])
    adv = adv @ params["adv_w"] + params["adv_b"]
    return sv + adv - adv.mean()


if __name__ == "__main__":
    key = jax.random.PRNGKey(0)
    k_param, k_x = jax.random.split(key)

    B, C, H, W = 2, 4, 76, 76   # 76x76 -> 18 -> 8 -> 6x6, matching fc1 = 64*6*6
    action_size = 4

    params = init_params(k_param, C, action_size)
    prep = prepare_params(params, action_size)      # one-time weight packing (outside jit)

    # uint8 stacked Atari-like frames (NCHW), as the env would produce.
    x = jax.random.randint(k_x, (B, C, H, W), 0, 256, dtype=jnp.int32).astype(jnp.uint8)

    fwd = jax.jit(functools.partial(value_forward, action_size=action_size))
    out = jax.block_until_ready(fwd(prep, x))
    assert out.shape == (B, action_size), out.shape

    # Validate the bf16 Pallas path against the f32 pure-JAX reference.
    ref = reference_forward(params, x)
    max_err = float(jnp.max(jnp.abs(out.astype(jnp.float32) - ref)))
    assert max_err < 6e-2, f"mismatch vs f32 reference: {max_err}"

    if bool(jnp.isnan(out).any()):
        print("WARNING NAN IN MODEL DETECTED")
    print("KERNEL_OK")
</pallas_src>

<mosaic_0001>
module attributes {stable_mosaic.version = 11 : i64} {
  func.func @_matmul_bias_relu_kernel(%arg0: i32, %arg1: memref<648x256xbf16, #tpu.memory_space<vmem>>, %arg2: memref<256x128xbf16, #tpu.memory_space<vmem>>, %arg3: memref<1x128xf32, #tpu.memory_space<vmem>>, %arg4: memref<648x128xbf16, #tpu.memory_space<vmem>>) attributes {dimension_semantics = [#tpu.dimension_semantics<parallel>], iteration_bounds = array<i64: 1>, scalar_prefetch = 0 : i64, scratch_operands = 0 : i64, tpu.core_type = #tpu.core_type<tc>, window_params = [{transform_indices = @transform_0, window_bounds = array<i64: 648, 256>}, {pipeline_mode = #tpu.pipeline_mode<synchronous>, transform_indices = @transform_1, window_bounds = array<i64: 256, 128>}, {pipeline_mode = #tpu.pipeline_mode<synchronous>, transform_indices = @transform_2, window_bounds = array<i64: 1, 128>}, {transform_indices = @transform_3, window_bounds = array<i64: 648, 128>}]} {
    %c0 = arith.constant 0 : index
    %c0_0 = arith.constant 0 : index
    %0 = vector.load %arg1[%c0, %c0_0] : memref<648x256xbf16, #tpu.memory_space<vmem>>, vector<648x256xbf16>
    %c0_1 = arith.constant 0 : index
    %c0_2 = arith.constant 0 : index
    %1 = vector.load %arg2[%c0_1, %c0_2] : memref<256x128xbf16, #tpu.memory_space<vmem>>, vector<256x128xbf16>
    %cst = arith.constant dense<0.000000e+00> : vector<648x128xf32>
    %2 = tpu.matmul %0, %1, %cst {dimension_numbers = #tpu.dot_dimension_numbers<[1], [0], [0], [1], [0, 0, 1, 1], [], []>} : vector<648x256xbf16>, vector<256x128xbf16>, vector<648x128xf32> -> vector<648x128xf32>
    %c0_3 = arith.constant 0 : index
    %c0_4 = arith.constant 0 : index
    %3 = vector.load %arg3[%c0_3, %c0_4] : memref<1x128xf32, #tpu.memory_space<vmem>>, vector<1x128xf32>
    %4 = vector.broadcast %3 : vector<1x128xf32> to vector<648x128xf32>
    %5 = arith.addf %2, %4 : vector<648x128xf32>
    %cst_5 = arith.constant 0.000000e+00 : f32
    %6 = vector.broadcast %cst_5 : f32 to vector<648x128xf32>
    %7 = arith.maximumf %5, %6 : vector<648x128xf32>
    %8 = arith.truncf %7 : vector<648x128xf32> to vector<648x128xbf16>
    %c0_6 = arith.constant 0 : index
    %c0_7 = arith.constant 0 : index
    %9 = vector.load %arg4[%c0_6, %c0_7] : memref<648x128xbf16, #tpu.memory_space<vmem>>, vector<648x128xbf16>
    tpu.vector_store %arg4[%c0_6, %c0_7], %8 {strides = array<i32>} : memref<648x128xbf16, #tpu.memory_space<vmem>>, vector<648x128xbf16>,
    return
  }
  func.func @transform_0(%arg0: i32) -> (i32, i32) {
    %c0_i32 = arith.constant 0 : i32
    %c0_i32_0 = arith.constant 0 : i32
    return %arg0, %c0_i32 : i32, i32
  }
  func.func @transform_1(%arg0: i32) -> (i32, i32) {
    %c0_i32 = arith.constant 0 : i32
    %c0_i32_0 = arith.constant 0 : i32
    %c0_i32_1 = arith.constant 0 : i32
    return %c0_i32, %c0_i32_0 : i32, i32
  }
  func.func @transform_2(%arg0: i32) -> (i32, i32) {
    %c0_i32 = arith.constant 0 : i32
    %c0_i32_0 = arith.constant 0 : i32
    %c0_i32_1 = arith.constant 0 : i32
    return %c0_i32, %c0_i32_0 : i32, i32
  }
  func.func @transform_3(%arg0: i32) -> (i32, i32) {
    %c0_i32 = arith.constant 0 : i32
    %c0_i32_0 = arith.constant 0 : i32
    return %arg0, %c0_i32 : i32, i32
  }
}

module attributes {stable_mosaic.version = 11 : i64} {
  func.func @_matmul_bias_relu_kernel(%arg0: i32, %arg1: memref<128x512xbf16, #tpu.memory_space<vmem>>, %arg2: memref<512x128xbf16, #tpu.memory_space<vmem>>, %arg3: memref<1x128xf32, #tpu.memory_space<vmem>>, %arg4: memref<128x128xbf16, #tpu.memory_space<vmem>>) attributes {dimension_semantics = [#tpu.dimension_semantics<parallel>], iteration_bounds = array<i64: 1>, scalar_prefetch = 0 : i64, scratch_operands = 0 : i64, tpu.core_type = #tpu.core_type<tc>, window_params = [{transform_indices = @transform_0, window_bounds = array<i64: 128, 512>}, {pipeline_mode = #tpu.pipeline_mode<synchronous>, transform_indices = @transform_1, window_bounds = array<i64: 512, 128>}, {pipeline_mode = #tpu.pipeline_mode<synchronous>, transform_indices = @transform_2, window_bounds = array<i64: 1, 128>}, {transform_indices = @transform_3, window_bounds = array<i64: 128, 128>}]} {
    %c0 = arith.constant 0 : index
    %c0_0 = arith.constant 0 : index
    %0 = vector.load %arg1[%c0, %c0_0] : memref<128x512xbf16, #tpu.memory_space<vmem>>, vector<128x512xbf16>
    %c0_1 = arith.constant 0 : index
    %c0_2 = arith.constant 0 : index
    %1 = vector.load %arg2[%c0_1, %c0_2] : memref<512x128xbf16, #tpu.memory_space<vmem>>, vector<512x128xbf16>
    %cst = arith.constant dense<0.000000e+00> : vector<128x128xf32>
    %2 = tpu.matmul %0, %1, %cst {dimension_numbers = #tpu.dot_dimension_numbers<[1], [0], [0], [1], [0, 0, 1, 1], [], []>} : vector<128x512xbf16>, vector<512x128xbf16>, vector<128x128xf32> -> vector<128x128xf32>
    %c0_3 = arith.constant 0 : index
    %c0_4 = arith.constant 0 : index
    %3 = vector.load %arg3[%c0_3, %c0_4] : memref<1x128xf32, #tpu.memory_space<vmem>>, vector<1x128xf32>
    %4 = vector.broadcast %3 : vector<1x128xf32> to vector<128x128xf32>
    %5 = arith.addf %2, %4 : vector<128x128xf32>
    %cst_5 = arith.constant 0.000000e+00 : f32
    %6 = vector.broadcast %cst_5 : f32 to vector<128x128xf32>
    %7 = arith.maximumf %5, %6 : vector<128x128xf32>
    %8 = arith.truncf %7 : vector<128x128xf32> to vector<128x128xbf16>
    %c0_6 = arith.constant 0 : index
    %c0_7 = arith.constant 0 : index
    %9 = vector.load %arg4[%c0_6, %c0_7] : memref<128x128xbf16, #tpu.memory_space<vmem>>, vector<128x128xbf16>
    tpu.vector_store %arg4[%c0_6, %c0_7], %8 {strides = array<i32>} : memref<128x128xbf16, #tpu.memory_space<vmem>>, vector<128x128xbf16>,
    return
  }
  func.func @transform_0(%arg0: i32) -> (i32, i32) {
    %c0_i32 = arith.constant 0 : i32
    %c0_i32_0 = arith.constant 0 : i32
    return %arg0, %c0_i32 : i32, i32
  }
  func.func @transform_1(%arg0: i32) -> (i32, i32) {
    %c0_i32 = arith.constant 0 : i32
    %c0_i32_0 = arith.constant 0 : i32
    %c0_i32_1 = arith.constant 0 : i32
    return %c0_i32, %c0_i32_0 : i32, i32
  }
  func.func @transform_2(%arg0: i32) -> (i32, i32) {
    %c0_i32 = arith.constant 0 : i32
    %c0_i32_0 = arith.constant 0 : i32
    %c0_i32_1 = arith.constant 0 : i32
    return %c0_i32, %c0_i32_0 : i32, i32
  }
  func.func @transform_3(%arg0: i32) -> (i32, i32) {
    %c0_i32 = arith.constant 0 : i32
    %c0_i32_0 = arith.constant 0 : i32
    return %arg0, %c0_i32 : i32, i32
  }
}

module attributes {stable_mosaic.version = 11 : i64} {
  func.func @_matmul_bias_relu_kernel(%arg0: i32, %arg1: memref<72x576xbf16, #tpu.memory_space<vmem>>, %arg2: memref<576x128xbf16, #tpu.memory_space<vmem>>, %arg3: memref<1x128xf32, #tpu.memory_space<vmem>>, %arg4: memref<72x128xbf16, #tpu.memory_space<vmem>>) attributes {dimension_semantics = [#tpu.dimension_semantics<parallel>], iteration_bounds = array<i64: 1>, scalar_prefetch = 0 : i64, scratch_operands = 0 : i64, tpu.core_type = #tpu.core_type<tc>, window_params = [{transform_indices = @transform_0, window_bounds = array<i64: 72, 576>}, {pipeline_mode = #tpu.pipeline_mode<synchronous>, transform_indices = @transform_1, window_bounds = array<i64: 576, 128>}, {pipeline_mode = #tpu.pipeline_mode<synchronous>, transform_indices = @transform_2, window_bounds = array<i64: 1, 128>}, {transform_indices = @transform_3, window_bounds = array<i64: 72, 128>}]} {
    %c0 = arith.constant 0 : index
    %c0_0 = arith.constant 0 : index
    %0 = vector.load %arg1[%c0, %c0_0] : memref<72x576xbf16, #tpu.memory_space<vmem>>, vector<72x576xbf16>
    %c0_1 = arith.constant 0 : index
    %c0_2 = arith.constant 0 : index
    %1 = vector.load %arg2[%c0_1, %c0_2] : memref<576x128xbf16, #tpu.memory_space<vmem>>, vector<576x128xbf16>
    %cst = arith.constant dense<0.000000e+00> : vector<72x128xf32>
    %2 = tpu.matmul %0, %1, %cst {dimension_numbers = #tpu.dot_dimension_numbers<[1], [0], [0], [1], [0, 0, 1, 1], [], []>} : vector<72x576xbf16>, vector<576x128xbf16>, vector<72x128xf32> -> vector<72x128xf32>
    %c0_3 = arith.constant 0 : index
    %c0_4 = arith.constant 0 : index
    %3 = vector.load %arg3[%c0_3, %c0_4] : memref<1x128xf32, #tpu.memory_space<vmem>>, vector<1x128xf32>
    %4 = vector.broadcast %3 : vector<1x128xf32> to vector<72x128xf32>
    %5 = arith.addf %2, %4 : vector<72x128xf32>
    %cst_5 = arith.constant 0.000000e+00 : f32
    %6 = vector.broadcast %cst_5 : f32 to vector<72x128xf32>
    %7 = arith.maximumf %5, %6 : vector<72x128xf32>
    %8 = arith.truncf %7 : vector<72x128xf32> to vector<72x128xbf16>
    %c0_6 = arith.constant 0 : index
    %c0_7 = arith.constant 0 : index
    %9 = vector.load %arg4[%c0_6, %c0_7] : memref<72x128xbf16, #tpu.memory_space<vmem>>, vector<72x128xbf16>
    tpu.vector_store %arg4[%c0_6, %c0_7], %8 {strides = array<i32>} : memref<72x128xbf16, #tpu.memory_space<vmem>>, vector<72x128xbf16>,
    return
  }
  func.func @transform_0(%arg0: i32) -> (i32, i32) {
    %c0_i32 = arith.constant 0 : i32
    %c0_i32_0 = arith.constant 0 : i32
    return %arg0, %c0_i32 : i32, i32
  }
  func.func @transform_1(%arg0: i32) -> (i32, i32) {
    %c0_i32 = arith.constant 0 : i32
    %c0_i32_0 = arith.constant 0 : i32
    %c0_i32_1 = arith.constant 0 : i32
    return %c0_i32, %c0_i32_0 : i32, i32
  }
  func.func @transform_2(%arg0: i32) -> (i32, i32) {
    %c0_i32 = arith.constant 0 : i32
    %c0_i32_0 = arith.constant 0 : i32
    %c0_i32_1 = arith.constant 0 : i32
    return %c0_i32, %c0_i32_0 : i32, i32
  }
  func.func @transform_3(%arg0: i32) -> (i32, i32) {
    %c0_i32 = arith.constant 0 : i32
    %c0_i32_0 = arith.constant 0 : i32
    return %arg0, %c0_i32 : i32, i32
  }
}

module attributes {stable_mosaic.version = 11 : i64} {
  func.func @_dueling_head_kernel(%arg0: memref<2x2304xbf16, #tpu.memory_space<vmem>>, %arg1: memref<2304x384xbf16, #tpu.memory_space<vmem>>, %arg2: memref<1x384xf32, #tpu.memory_space<vmem>>, %arg3: memref<384x768xbf16, #tpu.memory_space<vmem>>, %arg4: memref<1x768xf32, #tpu.memory_space<vmem>>, %arg5: memref<768x128xbf16, #tpu.memory_space<vmem>>, %arg6: memref<1x128xf32, #tpu.memory_space<vmem>>, %arg7: memref<2x128xf32, #tpu.memory_space<vmem>>) attributes {dimension_semantics = [], scalar_prefetch = 0 : i64, scratch_operands = 0 : i64, tpu.core_type = #tpu.core_type<tc>} {
    %c0 = arith.constant 0 : index
    %c0_0 = arith.constant 0 : index
    %0 = vector.load %arg0[%c0, %c0_0] : memref<2x2304xbf16, #tpu.memory_space<vmem>>, vector<2x2304xbf16>
    %c0_1 = arith.constant 0 : index
    %c0_2 = arith.constant 0 : index
    %1 = vector.load %arg1[%c0_1, %c0_2] : memref<2304x384xbf16, #tpu.memory_space<vmem>>, vector<2304x384xbf16>
    %cst = arith.constant dense<0.000000e+00> : vector<2x384xf32>
    %2 = tpu.matmul %0, %1, %cst {dimension_numbers = #tpu.dot_dimension_numbers<[1], [0], [0], [1], [0, 0, 1, 1], [], []>} : vector<2x2304xbf16>, vector<2304x384xbf16>, vector<2x384xf32> -> vector<2x384xf32>
    %c0_3 = arith.constant 0 : index
    %c0_4 = arith.constant 0 : index
    %3 = vector.load %arg2[%c0_3, %c0_4] : memref<1x384xf32, #tpu.memory_space<vmem>>, vector<1x384xf32>
    %4 = vector.broadcast %3 : vector<1x384xf32> to vector<2x384xf32>
    %5 = arith.addf %2, %4 : vector<2x384xf32>
    %cst_5 = arith.constant 0.000000e+00 : f32
    %6 = vector.broadcast %cst_5 : f32 to vector<2x384xf32>
    %7 = arith.maximumf %5, %6 : vector<2x384xf32>
    %8 = arith.truncf %7 : vector<2x384xf32> to vector<2x384xbf16>
    %c0_6 = arith.constant 0 : index
    %c0_7 = arith.constant 0 : index
    %9 = vector.load %arg3[%c0_6, %c0_7] : memref<384x768xbf16, #tpu.memory_space<vmem>>, vector<384x768xbf16>
    %cst_8 = arith.constant dense<0.000000e+00> : vector<2x768xf32>
    %10 = tpu.matmul %8, %9, %cst_8 {dimension_numbers = #tpu.dot_dimension_numbers<[1], [0], [0], [1], [0, 0, 1, 1], [], []>} : vector<2x384xbf16>, vector<384x768xbf16>, vector<2x768xf32> -> vector<2x768xf32>
    %c0_9 = arith.constant 0 : index
    %c0_10 = arith.constant 0 : index
    %11 = vector.load %arg4[%c0_9, %c0_10] : memref<1x768xf32, #tpu.memory_space<vmem>>, vector<1x768xf32>
    %12 = vector.broadcast %11 : vector<1x768xf32> to vector<2x768xf32>
    %13 = arith.addf %10, %12 : vector<2x768xf32>
    %cst_11 = arith.constant 0.000000e+00 : f32
    %14 = vector.broadcast %cst_11 : f32 to vector<2x768xf32>
    %15 = arith.maximumf %13, %14 : vector<2x768xf32>
    %16 = arith.truncf %15 : vector<2x768xf32> to vector<2x768xbf16>
    %c0_12 = arith.constant 0 : index
    %c0_13 = arith.constant 0 : index
    %17 = vector.load %arg5[%c0_12, %c0_13] : memref<768x128xbf16, #tpu.memory_space<vmem>>, vector<768x128xbf16>
    %cst_14 = arith.constant dense<0.000000e+00> : vector<2x128xf32>
    %18 = tpu.matmul %16, %17, %cst_14 {dimension_numbers = #tpu.dot_dimension_numbers<[1], [0], [0], [1], [0, 0, 1, 1], [], []>} : vector<2x768xbf16>, vector<768x128xbf16>, vector<2x128xf32> -> vector<2x128xf32>
    %c0_15 = arith.constant 0 : index
    %c0_16 = arith.constant 0 : index
    %19 = vector.load %arg6[%c0_15, %c0_16] : memref<1x128xf32, #tpu.memory_space<vmem>>, vector<1x128xf32>
    %20 = vector.broadcast %19 : vector<1x128xf32> to vector<2x128xf32>
    %21 = arith.addf %18, %20 : vector<2x128xf32>
    %22 = tpu.iota {dimensions = array<i32: 1>} : vector<2x128xi32>
    %c4_i32 = arith.constant 4 : i32
    %23 = vector.broadcast %c4_i32 : i32 to vector<2x128xi32>
    %24 = arith.cmpi slt, %22, %23 : vector<2x128xi32>
    %cst_17 = arith.constant 0.000000e+00 : f32
    %25 = vector.broadcast %cst_17 : f32 to vector<2x128xf32>
    %26 = arith.select %24, %21, %25 : vector<2x128xi1>, vector<2x128xf32>
    %27 = vector.shape_cast %26 : vector<2x128xf32> to vector<1x2x128xf32>
    %cst_18 = arith.constant dense<0.000000e+00> : vector<1xf32>
    %28 = vector.multi_reduction <add>, %27, %cst_18 [1, 2] : vector<1x2x128xf32> to vector<1xf32>
    %29 = vector.shape_cast %28 : vector<1xf32> to vector<1x1x1xf32>
    %30 = vector.extract %29[0, 0, 0] : f32 from vector<1x1x1xf32>
    %cst_19 = arith.constant 8.000000e+00 : f32
    %31 = arith.divf %30, %cst_19 : f32
    %32 = vector.extract_strided_slice %21 {offsets = [0, 4], sizes = [2, 1], strides = [1, 1]} : vector<2x128xf32> to vector<2x1xf32>
    %33 = vector.broadcast %32 : vector<2x1xf32> to vector<2x128xf32>
    %34 = arith.addf %21, %33 : vector<2x128xf32>
    %35 = vector.broadcast %31 : f32 to vector<2x128xf32>
    %36 = arith.subf %34, %35 : vector<2x128xf32>
    %c0_20 = arith.constant 0 : index
    %c0_21 = arith.constant 0 : index
    %37 = vector.load %arg7[%c0_20, %c0_21] : memref<2x128xf32, #tpu.memory_space<vmem>>, vector<2x128xf32>
    tpu.vector_store %arg7[%c0_20, %c0_21], %36 {strides = array<i32>} : memref<2x128xf32, #tpu.memory_space<vmem>>, vector<2x128xf32>,
    return
  }
}

</mosaic_0001>

<bundles_post_ra>
// kernel: value_forward.4
= control target key start
LH: loop header
LB: loop body
LE: loop exit
PB: predicated region body
PF: predicated region fallthrough
CT: control target
= control target key end

     0   :  { %v2160_v0 = vmov 0   ;;  %s2713_s1 = inlined_call_operand.vmem [shape: bf16[256,128], index: 1, kind: input, shape index: {}]   ;;  %s2714_s0 = inlined_call_operand.vmem [shape: bf16[648,256], index: 0, kind: input, shape index: {}]   ;;  %s2715_s2 = inlined_call_operand.vmem [shape: f32[1,128], index: 2, kind: input, shape index: {}]   ;;  %s2716_s3 = inlined_call_operand.vmem [shape: bf16[648,128], index: 3, kind: output, shape index: {}]  }
   0x1   :  { %638 = vmatprep.subr.bf16.mxu0 %v2160_v0  ;;  %v2022_v1 = vld [vmem:[%s2713_s1] sm:$0xff]   ;;  %1989 = vmatprep.subr.bf16.mxu1 %v2160_v0  ;;  %v2023_v2 = vld [vmem:[%s2713_s1 + $0x8] sm:$0xff]   ;;  %v2024_v3 = vld [vmem:[%s2713_s1 + $0x10] sm:$0xff]  }
   0x2   :  { %639 = vmatpush1.bf16.msra.mxu0 %v2022_v1  ;;  %2005 = vmatpush1.bf16.msra.mxu1 %v2022_v1  ;;  %v2025_v4 = vld [vmem:[%s2713_s1 + $0x18] sm:$0xff]   ;;  %v2026_v5 = vld [vmem:[%s2713_s1 + $0x20] sm:$0xff]   ;;  %v2027_v7 = vld [vmem:[%s2713_s1 + $0x28] sm:$0xff]  }
   0x3   :  { %640 = vmatprep.subr.bf16.mxu0 %v2160_v0  ;;  %1990 = vmatprep.subr.bf16.mxu1 %v2160_v0  ;;  %v2040_v6 = vld [vmem:[%s2714_s0 + $0x4] ss:$8 sps:$4 sm:$0xff]   ;;  %v2043_v8 = vld [vmem:[%s2714_s0 + $0x154] ss:$8 sps:$4 sm:$0xff]   ;;  %v2038_v19 = vld [vmem:[%s2714_s0] ss:$8 sps:$4 sm:$0xff]  }
   0x4   :  { %670 = vmatprep.mubr.bf16.mxu0 %v2040_v6  ;;  %838 = vmatprep.mubr.bf16.mxu1 %v2043_v8  ;;  %v2028_v9 = vld [vmem:[%s2713_s1 + $0x30] sm:$0xff]   ;;  %v2029_v10 = vld [vmem:[%s2713_s1 + $0x38] sm:$0xff]   ;;  %v2030_v11 = vld [vmem:[%s2713_s1 + $0x40] sm:$0xff]  }
   0x5   :  { %v2031_v12 = vld [vmem:[%s2713_s1 + $0x48] sm:$0xff]   ;;  %v2032_v13 = vld [vmem:[%s2713_s1 + $0x50] sm:$0xff]   ;;  %v2033_v14 = vld [vmem:[%s2713_s1 + $0x58] sm:$0xff]  }
   0x6   :  { %641 = vmatpush1.bf16.msra.mxu0 %v2023_v2  ;;  %2006 = vmatpush1.bf16.msra.mxu1 %v2023_v2  ;;  %v2034_v15 = vld [vmem:[%s2713_s1 + $0x60] sm:$0xff]   ;;  %v2035_v16 = vld [vmem:[%s2713_s1 + $0x68] sm:$0xff]   ;;  %v2036_v17 = vld [vmem:[%s2713_s1 + $0x70] sm:$0xff]  }
   0x7   :  { %642 = vmatprep.subr.bf16.mxu0 %v2160_v0  ;;  %1991 = vmatprep.subr.bf16.mxu1 %v2160_v0  ;;  %v2037_v18 = vld [vmem:[%s2713_s1 + $0x78] sm:$0xff]   ;;  %v2047_v22 = vld [vmem:[%s2714_s0 + $0x164] ss:$8 sps:$4 sm:$0xff]   ;;  %v2051_v24 = vld [vmem:[%s2714_s0 + $0x160] ss:$8 sps:$4 sm:$0xff]  }
   0x8   :  { %v2041_v20 = vld [vmem:[%s2714_s0 + $0x150] ss:$8 sps:$4 sm:$0xff]   ;;  %v2044_v21 = vld [vmem:[%s2714_s0 + $0x14] ss:$8 sps:$4 sm:$0xff]   ;;  %v2049_v25 = vld [vmem:[%s2714_s0 + $0x24] ss:$8 sps:$4 sm:$0xff]  }
   0x9   :  { %v2046_v23 = vld [vmem:[%s2714_s0 + $0x10] ss:$8 sps:$4 sm:$0xff]   ;;  %v2053_v26 = vld [vmem:[%s2714_s0 + $0x174] ss:$8 sps:$4 sm:$0xff]   ;;  %v2052_v27 = vld [vmem:[%s2714_s0 + $0x20] ss:$8 sps:$4 sm:$0xff]  }
   0xa   :  { %643 = vmatpush1.bf16.msra.mxu0 %v2024_v3  ;;  %2007 = vmatpush1.bf16.msra.mxu1 %v2024_v3  ;;  %v2057_v28 = vld [vmem:[%s2714_s0 + $0x170] ss:$8 sps:$4 sm:$0xff]   ;;  %v2055_v29 = vld [vmem:[%s2714_s0 + $0x34] ss:$8 sps:$4 sm:$0xff]   ;;  %v2059_v30 = vld [vmem:[%s2714_s0 + $0x184] ss:$8 sps:$4 sm:$0xff]  }
   0xb   :  { %644 = vmatprep.subr.bf16.mxu0 %v2160_v0  ;;  %1992 = vmatprep.subr.bf16.mxu1 %v2160_v0  ;;  %v2058_v31 = vld [vmem:[%s2714_s0 + $0x30] ss:$8 sps:$4 sm:$0xff]   ;;  %v2063_v32 = vld [vmem:[%s2714_s0 + $0x180] ss:$8 sps:$4 sm:$0xff]   ;;  %v2061_v33 = vld [vmem:[%s2714_s0 + $0x44] ss:$8 sps:$4 sm:$0xff]  }
   0xc   :  { %v2065_v34 = vld [vmem:[%s2714_s0 + $0x194] ss:$8 sps:$4 sm:$0xff]   ;;  %v2064_v35 = vld [vmem:[%s2714_s0 + $0x40] ss:$8 sps:$4 sm:$0xff]   ;;  %v2069_v36 = vld [vmem:[%s2714_s0 + $0x190] ss:$8 sps:$4 sm:$0xff]  }
   0xd   :  { %v2067_v37 = vld [vmem:[%s2714_s0 + $0x54] ss:$8 sps:$4 sm:$0xff]   ;;  %v2071_v38 = vld [vmem:[%s2714_s0 + $0x1a4] ss:$8 sps:$4 sm:$0xff]   ;;  %v2070_v39 = vld [vmem:[%s2714_s0 + $0x50] ss:$8 sps:$4 sm:$0xff]  }
   0xe   :  { %645 = vmatpush1.bf16.msra.mxu0 %v2025_v4  ;;  %2008 = vmatpush1.bf16.msra.mxu1 %v2025_v4  ;;  %v2075_v40 = vld [vmem:[%s2714_s0 + $0x1a0] ss:$8 sps:$4 sm:$0xff]   ;;  %v2073_v41 = vld [vmem:[%s2714_s0 + $0x64] ss:$8 sps:$4 sm:$0xff]   ;;  %v2077_v42 = vld [vmem:[%s2714_s0 + $0x1b4] ss:$8 sps:$4 sm:$0xff]  }
   0xf   :  { %646 = vmatprep.subr.bf16.mxu0 %v2160_v0  ;;  %1993 = vmatprep.subr.bf16.mxu1 %v2160_v0  ;;  %v2076_v43 = vld [vmem:[%s2714_s0 + $0x60] ss:$8 sps:$4 sm:$0xff]   ;;  %v2081_v44 = vld [vmem:[%s2714_s0 + $0x1b0] ss:$8 sps:$4 sm:$0xff]   ;;  %v2079_v45 = vld [vmem:[%s2714_s0 + $0x74] ss:$8 sps:$4 sm:$0xff]  }
  0x10   :  { %v2083_v46 = vld [vmem:[%s2714_s0 + $0x1c4] ss:$8 sps:$4 sm:$0xff]   ;;  %v2082_v47 = vld [vmem:[%s2714_s0 + $0x70] ss:$8 sps:$4 sm:$0xff]   ;;  %v2087_v48 = vld [vmem:[%s2714_s0 + $0x1c0] ss:$8 sps:$4 sm:$0xff]  }
  0x11   :  { %v2085_v49 = vld [vmem:[%s2714_s0 + $0x84] ss:$8 sps:$4 sm:$0xff]   ;;  %v2089_v50 = vld [vmem:[%s2714_s0 + $0x1d4] ss:$8 sps:$4 sm:$0xff]   ;;  %v2088_v51 = vld [vmem:[%s2714_s0 + $0x80] ss:$8 sps:$4 sm:$0xff]  }
  0x12   :  { %647 = vmatpush1.bf16.msra.mxu0 %v2026_v5  ;;  %2009 = vmatpush1.bf16.msra.mxu1 %v2026_v5  ;;  %v2093_v52 = vld [vmem:[%s2714_s0 + $0x1d0] ss:$8 sps:$4 sm:$0xff]   ;;  %v2091_v53 = vld [vmem:[%s2714_s0 + $0x94] ss:$8 sps:$4 sm:$0xff]   ;;  %v2095_v54 = vld [vmem:[%s2714_s0 + $0x1e4] ss:$8 sps:$4 sm:$0xff]  }
  0x13   :  { %648 = vmatprep.subr.bf16.mxu0 %v2160_v0  ;;  %1994 = vmatprep.subr.bf16.mxu1 %v2160_v0  ;;  %v2094_v55 = vld [vmem:[%s2714_s0 + $0x90] ss:$8 sps:$4 sm:$0xff]   ;;  %v2099_v56 = vld [vmem:[%s2714_s0 + $0x1e0] ss:$8 sps:$4 sm:$0xff]   ;;  %v2097_v57 = vld [vmem:[%s2714_s0 + $0xa4] ss:$8 sps:$4 sm:$0xff]  }
  0x14   :  { %v2101_v58 = vld [vmem:[%s2714_s0 + $0x1f4] ss:$8 sps:$4 sm:$0xff]   ;;  %v2100_v59 = vld [vmem:[%s2714_s0 + $0xa0] ss:$8 sps:$4 sm:$0xff]   ;;  %v2105_v60 = vld [vmem:[%s2714_s0 + $0x1f0] ss:$8 sps:$4 sm:$0xff]  }
  0x15   :  { %v2103_v61 = vld [vmem:[%s2714_s0 + $0xb4] ss:$8 sps:$4 sm:$0xff]   ;;  %v2107_v62 = vld [vmem:[%s2714_s0 + $0x204] ss:$8 sps:$4 sm:$0xff]   ;;  %v2106_v63 = vld [vmem:[%s2714_s0 + $0xb0] ss:$8 sps:$4 sm:$0xff]  }
  0x16   :  { %649 = vmatpush1.bf16.msra.mxu0 %v2027_v7  ;;  %2010 = vmatpush1.bf16.msra.mxu1 %v2027_v7  ;;  %v2109_v1 = vld [vmem:[%s2714_s0 + $0xc4] ss:$8 sps:$4 sm:$0xff]   ;;  %v2113_v2 = vld [vmem:[%s2714_s0 + $0x214] ss:$8 sps:$4 sm:$0xff]   ;;  %v2112_v3 = vld [vmem:[%s2714_s0 + $0xc0] ss:$8 sps:$4 sm:$0xff]  }
  0x17   :  { %650 = vmatprep.subr.bf16.mxu0 %v2160_v0  ;;  %1995 = vmatprep.subr.bf16.mxu1 %v2160_v0  ;;  %v2117_v4 = vld [vmem:[%s2714_s0 + $0x210] ss:$8 sps:$4 sm:$0xff]   ;;  %v2115_v5 = vld [vmem:[%s2714_s0 + $0xd4] ss:$8 sps:$4 sm:$0xff]   ;;  %v2119_v6 = vld [vmem:[%s2714_s0 + $0x224] ss:$8 sps:$4 sm:$0xff]  }
  0x18   :  { %v2118_v7 = vld [vmem:[%s2714_s0 + $0xd0] ss:$8 sps:$4 sm:$0xff]   ;;  %v2123_v8 = vld [vmem:[%s2714_s0 + $0x220] ss:$8 sps:$4 sm:$0xff]  }
  0x1a   :  { %651 = vmatpush1.bf16.msra.mxu0 %v2028_v9  ;;  %2011 = vmatpush1.bf16.msra.mxu1 %v2028_v9  ;;  %v2121_v9 = vld [vmem:[%s2714_s0 + $0xe4] ss:$8 sps:$4 sm:$0xff]  }
  0x1b   :  { %652 = vmatprep.subr.bf16.mxu0 %v2160_v0  ;;  %1996 = vmatprep.subr.bf16.mxu1 %v2160_v0 }
  0x1e   :  { %653 = vmatpush1.bf16.msra.mxu0 %v2029_v10  ;;  %2012 = vmatpush1.bf16.msra.mxu1 %v2029_v10  ;;  %v2125_v10 = vld [vmem:[%s2714_s0 + $0x234] ss:$8 sps:$4 sm:$0xff]  }
  0x1f   :  { %654 = vmatprep.subr.bf16.mxu0 %v2160_v0  ;;  %1997 = vmatprep.subr.bf16.mxu1 %v2160_v0 }
  0x22   :  { %655 = vmatpush1.bf16.msra.mxu0 %v2030_v11  ;;  %2013 = vmatpush1.bf16.msra.mxu1 %v2030_v11  ;;  %v2124_v11 = vld [vmem:[%s2714_s0 + $0xe0] ss:$8 sps:$4 sm:$0xff]  }
  0x23   :  { %656 = vmatprep.subr.bf16.mxu0 %v2160_v0  ;;  %1998 = vmatprep.subr.bf16.mxu1 %v2160_v0 }
  0x26   :  { %657 = vmatpush1.bf16.msra.mxu0 %v2031_v12  ;;  %2014 = vmatpush1.bf16.msra.mxu1 %v2031_v12  ;;  %v2129_v12 = vld [vmem:[%s2714_s0 + $0x230] ss:$8 sps:$4 sm:$0xff]  }
  0x27   :  { %658 = vmatprep.subr.bf16.mxu0 %v2160_v0  ;;  %1999 = vmatprep.subr.bf16.mxu1 %v2160_v0 }
  0x2a   :  { %659 = vmatpush1.bf16.msra.mxu0 %v2032_v13  ;;  %2015 = vmatpush1.bf16.msra.mxu1 %v2032_v13  ;;  %v2127_v13 = vld [vmem:[%s2714_s0 + $0xf4] ss:$8 sps:$4 sm:$0xff]  }
  0x2b   :  { %660 = vmatprep.subr.bf16.mxu0 %v2160_v0  ;;  %2000 = vmatprep.subr.bf16.mxu1 %v2160_v0 }
  0x2e   :  { %661 = vmatpush1.bf16.msra.mxu0 %v2033_v14  ;;  %2016 = vmatpush1.bf16.msra.mxu1 %v2033_v14  ;;  %v2131_v14 = vld [vmem:[%s2714_s0 + $0x244] ss:$8 sps:$4 sm:$0xff]  }
  0x2f   :  { %662 = vmatprep.subr.bf16.mxu0 %v2160_v0  ;;  %2001 = vmatprep.subr.bf16.mxu1 %v2160_v0 }
  0x32   :  { %663 = vmatpush1.bf16.msra.mxu0 %v2034_v15  ;;  %2017 = vmatpush1.bf16.msra.mxu1 %v2034_v15  ;;  %v2130_v15 = vld [vmem:[%s2714_s0 + $0xf0] ss:$8 sps:$4 sm:$0xff]  }
  0x33   :  { %664 = vmatprep.subr.bf16.mxu0 %v2160_v0  ;;  %2002 = vmatprep.subr.bf16.mxu1 %v2160_v0 }
  0x36   :  { %665 = vmatpush1.bf16.msra.mxu0 %v2035_v16  ;;  %2018 = vmatpush1.bf16.msra.mxu1 %v2035_v16  ;;  %v2135_v16 = vld [vmem:[%s2714_s0 + $0x240] ss:$8 sps:$4 sm:$0xff]  }
  0x37   :  { %666 = vmatprep.subr.bf16.mxu0 %v2160_v0  ;;  %2003 = vmatprep.subr.bf16.mxu1 %v2160_v0 }
  0x3a   :  { %667 = vmatpush1.bf16.msra.mxu0 %v2036_v17  ;;  %2019 = vmatpush1.bf16.msra.mxu1 %v2036_v17  ;;  %v2133_v17 = vld [vmem:[%s2714_s0 + $0x104] ss:$8 sps:$4 sm:$0xff]  }
  0x3b   :  { %668 = vmatprep.subr.bf16.mxu0 %v2160_v0  ;;  %2004 = vmatprep.subr.bf16.mxu1 %v2160_v0  ;;  %v2111_v0 = vld [vmem:[%s2714_s0 + $0x200] ss:$8 sps:$4 sm:$0xff]  }
  0x3e   :  { %669 = vmatpush1.bf16.msra.mxu0 %v2037_v18  ;;  %2020 = vmatpush1.bf16.msra.mxu1 %v2037_v18  ;;  %v2137_v18 = vld [vmem:[%s2714_s0 + $0x254] ss:$8 sps:$4 sm:$0xff]  }
  0x41   :  { %671 = vmatmul.mubr.bf16.vlgmr.msra.gmra.mrb[0].mxu0 %v2038_v19  ;;  %839 = vmatmul.mubr.bf16.vlgmr.msra.gmra.mrb[0].mxu1 %v2041_v20  ;;  %v2136_v19 = vld [vmem:[%s2714_s0 + $0x100] ss:$8 sps:$4 sm:$0xff]   ;;  %v2141_v20 = vld [vmem:[%s2714_s0 + $0x250] ss:$8 sps:$4 sm:$0xff]  }
  0x42   :  { %678 = vmatprep.mubr.bf16.mxu0 %v2044_v21  ;;  %846 = vmatprep.mubr.bf16.mxu1 %v2047_v22  ;;  %v2139_v21 = vld [vmem:[%s2714_s0 + $0x114] ss:$8 sps:$4 sm:$0xff]   ;;  %v2143_v22 = vld [vmem:[%s2714_s0 + $0x264] ss:$8 sps:$4 sm:$0xff]  }
  0x49   :  { %679 = vmatmul.mubr.bf16.gmra.mrb[4].mxu0 %v2046_v23  ;;  %847 = vmatmul.mubr.bf16.gmra.mrb[4].mxu1 %v2051_v24  ;;  %v2142_v23 = vld [vmem:[%s2714_s0 + $0x110] ss:$8 sps:$4 sm:$0xff]   ;;  %v2147_v24 = vld [vmem:[%s2714_s0 + $0x260] ss:$8 sps:$4 sm:$0xff]  }
  0x4a   :  { %686 = vmatprep.mubr.bf16.mxu0 %v2049_v25  ;;  %854 = vmatprep.mubr.bf16.mxu1 %v2053_v26  ;;  %v2145_v25 = vld [vmem:[%s2714_s0 + $0x124] ss:$8 sps:$4 sm:$0xff]   ;;  %v2149_v26 = vld [vmem:[%s2714_s0 + $0x274] ss:$8 sps:$4 sm:$0xff]  }
  0x51   :  { %687 = vmatmul.mubr.bf16.gmra.mrb[8].mxu0 %v2052_v27  ;;  %855 = vmatmul.mubr.bf16.gmra.mrb[8].mxu1 %v2057_v28  ;;  %v95_v27 = vld [vmem:[%s2714_s0 + $0x280] sm:$0xff] }
  0x52   :  { %694 = vmatprep.mubr.bf16.mxu0 %v2055_v29  ;;  %862 = vmatprep.mubr.bf16.mxu1 %v2059_v30  ;;  %v2148_v28 = vld [vmem:[%s2714_s0 + $0x120] ss:$8 sps:$4 sm:$0xff]   ;;  %v2153_v29 = vld [vmem:[%s2714_s0 + $0x270] ss:$8 sps:$4 sm:$0xff]   ;;  %v2151_v30 = vld [vmem:[%s2714_s0 + $0x134] ss:$8 sps:$4 sm:$0xff]  }
  0x59   :  { %695 = vmatmul.mubr.bf16.gmra.mrb[12].mxu0 %v2058_v31  ;;  %863 = vmatmul.mubr.bf16.gmra.mrb[12].mxu1 %v2063_v32  ;;  %v1571_v31 = vcombine.high %v95_v27, %v95_v27  ;;  %v2154_v32 = vld [vmem:[%s2714_s0 + $0x130] ss:$8 sps:$4 sm:$0xff]  }
  0x5a   :  { %702 = vmatprep.mubr.bf16.mxu0 %v2061_v33  ;;  %870 = vmatprep.mubr.bf16.mxu1 %v2065_v34  ;;  %v1570_v33 = vcombine.low %v95_v27, %v95_v27  ;;  %v2156_v34 = vld [vmem:[%s2714_s0 + $0x144] ss:$8 sps:$4 sm:$0xff]  }
  0x61   :  { %703 = vmatmul.mubr.bf16.gmra.mrb[16].mxu0 %v2064_v35  ;;  %871 = vmatmul.mubr.bf16.gmra.mrb[16].mxu1 %v2069_v36  ;;  %v2159_v35 = vld [vmem:[%s2714_s0 + $0x140] ss:$8 sps:$4 sm:$0xff]  }
  0x62   :  { %710 = vmatprep.mubr.bf16.mxu0 %v2067_v37  ;;  %878 = vmatprep.mubr.bf16.mxu1 %v2071_v38  ;;  %v2507_v36 = vld [vmem:[%s2715_s2] ss:$0 sm:$0xff] }
  0x69   :  { %711 = vmatmul.mubr.bf16.gmra.mrb[20].mxu0 %v2070_v39  ;;  %879 = vmatmul.mubr.bf16.gmra.mrb[20].mxu1 %v2075_v40 }
  0x6a   :  { %718 = vmatprep.mubr.bf16.mxu0 %v2073_v41  ;;  %886 = vmatprep.mubr.bf16.mxu1 %v2077_v42 }
  0x71   :  { %719 = vmatmul.mubr.bf16.gmra.mrb[24].mxu0 %v2076_v43  ;;  %887 = vmatmul.mubr.bf16.gmra.mrb[24].mxu1 %v2081_v44 }
  0x72   :  { %726 = vmatprep.mubr.bf16.mxu0 %v2079_v45  ;;  %894 = vmatprep.mubr.bf16.mxu1 %v2083_v46 }
  0x79   :  { %727 = vmatmul.mubr.bf16.gmra.mrb[28].mxu0 %v2082_v47  ;;  %895 = vmatmul.mubr.bf16.gmra.mrb[28].mxu1 %v2087_v48 }
  0x7a   :  { %734 = vmatprep.mubr.bf16.mxu0 %v2085_v49  ;;  %902 = vmatprep.mubr.bf16.mxu1 %v2089_v50 }
  0x81   :  { %735 = vmatmul.mubr.bf16.gmra.mrb[32].mxu0 %v2088_v51  ;;  %903 = vmatmul.mubr.bf16.gmra.mrb[32].mxu1 %v2093_v52 }
  0x82   :  { %742 = vmatprep.mubr.bf16.mxu0 %v2091_v53  ;;  %910 = vmatprep.mubr.bf16.mxu1 %v2095_v54 }
  0x89   :  { %743 = vmatmul.mubr.bf16.gmra.mrb[36].mxu0 %v2094_v55  ;;  %911 = vmatmul.mubr.bf16.gmra.mrb[36].mxu1 %v2099_v56 }
  0x8a   :  { %750 = vmatprep.mubr.bf16.mxu0 %v2097_v57  ;;  %918 = vmatprep.mubr.bf16.mxu1 %v2101_v58 }
  0x91   :  { %751 = vmatmul.mubr.bf16.gmra.mrb[40].mxu0 %v2100_v59  ;;  %919 = vmatmul.mubr.bf16.gmra.mrb[40].mxu1 %v2105_v60 }
  0x92   :  { %758 = vmatprep.mubr.bf16.mxu0 %v2103_v61  ;;  %926 = vmatprep.mubr.bf16.mxu1 %v2107_v62 }
  0x99   :  { %759 = vmatmul.mubr.bf16.gmra.mrb[44].mxu0 %v2106_v63  ;;  %927 = vmatmul.mubr.bf16.gmra.mrb[44].mxu1 %v2111_v0 }
  0x9a   :  { %766 = vmatprep.mubr.bf16.mxu0 %v2109_v1  ;;  %934 = vmatprep.mubr.bf16.mxu1 %v2113_v2 }
  0xa1   :  { %767 = vmatmul.mubr.bf16.gmra.mrb[48].mxu0 %v2112_v3  ;;  %935 = vmatmul.mubr.bf16.gmra.mrb[48].mxu1 %v2117_v4 }
  0xa2   :  { %774 = vmatprep.mubr.bf16.mxu0 %v2115_v5  ;;  %942 = vmatprep.mubr.bf16.mxu1 %v2119_v6 }
  0xa9   :  { %775 = vmatmul.mubr.bf16.gmra.mrb[52].mxu0 %v2118_v7  ;;  %943 = vmatmul.mubr.bf16.gmra.mrb[52].mxu1 %v2123_v8 }
  0xaa   :  { %782 = vmatprep.mubr.bf16.mxu0 %v2121_v9  ;;  %950 = vmatprep.mubr.bf16.mxu1 %v2125_v10 }
  0xb1   :  { %783 = vmatmul.mubr.bf16.gmra.mrb[56].mxu0 %v2124_v11  ;;  %951 = vmatmul.mubr.bf16.gmra.mrb[56].mxu1 %v2129_v12 }
  0xb2   :  { %790 = vmatprep.mubr.bf16.mxu0 %v2127_v13  ;;  %958 = vmatprep.mubr.bf16.mxu1 %v2131_v14 }
  0xb9   :  { %791 = vmatmul.mubr.bf16.gmra.mrb[60].mxu0 %v2130_v15  ;;  %959 = vmatmul.mubr.bf16.gmra.mrb[60].mxu1 %v2135_v16 }
  0xba   :  { %798 = vmatprep.mubr.bf16.mxu0 %v2133_v17  ;;  %966 = vmatprep.mubr.bf16.mxu1 %v2137_v18 }
  0xc1   :  { %799 = vmatmul.mubr.bf16.gmra.mrb[64].mxu0 %v2136_v19  ;;  %967 = vmatmul.mubr.bf16.gmra.mrb[64].mxu1 %v2141_v20 }
  0xc2   :  { %806 = vmatprep.mubr.bf16.mxu0 %v2139_v21  ;;  %974 = vmatprep.mubr.bf16.mxu1 %v2143_v22 }
  0xc9   :  { %807 = vmatmul.mubr.bf16.gmra.mrb[68].mxu0 %v2142_v23  ;;  %975 = vmatmul.mubr.bf16.gmra.mrb[68].mxu1 %v2147_v24 }
  0xca   :  { %814 = vmatprep.mubr.bf16.mxu0 %v2145_v25  ;;  %982 = vmatprep.mubr.bf16.mxu1 %v2149_v26 }
  0xd1   :  { %815 = vmatmul.mubr.bf16.gmra.mrb[72].mxu0 %v2148_v28  ;;  %983 = vmatmul.mubr.bf16.gmra.mrb[72].mxu1 %v2153_v29 }
  0xd2   :  { %822 = vmatprep.mubr.bf16.mxu0 %v2151_v30  ;;  %990 = vmatprep.mubr.bf16.mxu1 %v1571_v31 }
  0xd9   :  { %823 = vmatmul.mubr.bf16.gmra.mrb[76].mxu0 %v2154_v32  ;;  %991 = vmatmul.mubr.bf16.gmra.mrb[76].mxu1 %v1570_v33 }
  0xda   :  { %830 = vmatprep.mubr.bf16.mxu0 %v2156_v34 }
  0xe1   :  { %831 = vmatmul.mubr.bf16.gmra.mrb[80].mxu0 %v2159_v35 }
 0x114   :  { %v672_v37 = vpop.f32.mrb[0].mxu0  ;;  %v840_v38 = vpop.f32.mrb[0].mxu1 }
 0x115   :  { %v673_v39 = vadd.f32 %v2507_v36, %v672_v37  ;;  %v674_v40 = vpop.f32.mrb[1].mxu0  ;;  %v841_v41 = vadd.f32 %v2507_v36, %v840_v38  ;;  %v842_v42 = vpop.f32.mrb[1].mxu1 }
 0x116   :  { %v675_v43 = vpop.f32.mrb[2].mxu0  ;;  %v843_v44 = vpop.f32.mrb[2].mxu1 }
 0x117   :  { %v676_v45 = vadd.f32 %v2507_v36, %v675_v43  ;;  %v677_v46 = vpop.f32.mrb[3].mxu0  ;;  %v1040_v47 = vmax.f32 %v841_v41, 0.0  ;;  %v844_v48 = vadd.f32 %v2507_v36, %v843_v44  ;;  %v845_v49 = vpop.f32.mrb[3].mxu1  ;;  %v998_v50 = vmax.f32 %v673_v39, 0.0 }
 0x119   :  { %v999_v51 = vmax.f32 %v676_v45, 0.0  ;;  %v1041_v52 = vmax.f32 %v844_v48, 0.0 }
 0x11b   :  { %v1753_v53 = vpack.c.bf16 %v999_v51, %v998_v50  ;;  %v1858_v54 = vpack.c.bf16 %v1041_v52, %v1040_v47 }
 0x11c   :  { %v680_v55 = vpop.f32.mrb[4].mxu0  ;;  %v848_v56 = vpop.f32.mrb[4].mxu1 }
 0x11d   :  { %1754 = vst [vmem:[%s2716_s3] sm:$0xff] %v1753_v53   ;;  %v681_v57 = vadd.f32 %v2507_v36, %v680_v55  ;;  %v682_v58 = vpop.f32.mrb[5].mxu0  ;;  %1970 = vst [vmem:[%s2716_s3 + $0xa8] sm:$0xff] %v1858_v54   ;;  %v849_v59 = vadd.f32 %v2507_v36, %v848_v56  ;;  %v850_v60 = vpop.f32.mrb[5].mxu1 }
 0x11e   :  { %v683_v61 = vpop.f32.mrb[6].mxu0  ;;  %v851_v62 = vpop.f32.mrb[6].mxu1 }
 0x11f   :  { %v684_v63 = vadd.f32 %v2507_v36, %v683_v61  ;;  %v685_v0 = vpop.f32.mrb[7].mxu0  ;;  %v1042_v1 = vmax.f32 %v849_v59, 0.0  ;;  %v852_v2 = vadd.f32 %v2507_v36, %v851_v62  ;;  %v853_v3 = vpop.f32.mrb[7].mxu1  ;;  %v1000_v4 = vmax.f32 %v681_v57, 0.0 }
 0x121   :  { %v1001_v5 = vmax.f32 %v684_v63, 0.0  ;;  %v1043_v6 = vmax.f32 %v852_v2, 0.0 }
 0x123   :  { %v1758_v7 = vpack.c.bf16 %v1001_v5, %v1000_v4  ;;  %v1863_v8 = vpack.c.bf16 %v1043_v6, %v1042_v1 }
 0x124   :  { %v688_v9 = vpop.f32.mrb[8].mxu0  ;;  %v856_v10 = vpop.f32.mrb[8].mxu1 }
 0x125   :  { %1950 = vst [vmem:[%s2716_s3 + $0x8] sm:$0xff] %v1758_v7   ;;  %v689_v11 = vadd.f32 %v2507_v36, %v688_v9  ;;  %v690_v12 = vpop.f32.mrb[9].mxu0  ;;  %1971 = vst [vmem:[%s2716_s3 + $0xb0] sm:$0xff] %v1863_v8   ;;  %v857_v13 = vadd.f32 %v2507_v36, %v856_v10  ;;  %v858_v14 = vpop.f32.mrb[9].mxu1 }
 0x126   :  { %v691_v15 = vpop.f32.mrb[10].mxu0  ;;  %v859_v16 = vpop.f32.mrb[10].mxu1 }
 0x127   :  { %v692_v17 = vadd.f32 %v2507_v36, %v691_v15  ;;  %v693_v18 = vpop.f32.mrb[11].mxu0  ;;  %v1044_v19 = vmax.f32 %v857_v13, 0.0  ;;  %v860_v20 = vadd.f32 %v2507_v36, %v859_v16  ;;  %v861_v21 = vpop.f32.mrb[11].mxu1  ;;  %v1002_v22 = vmax.f32 %v689_v11, 0.0 }
 0x129   :  { %v1003_v23 = vmax.f32 %v692_v17, 0.0  ;;  %v1045_v24 = vmax.f32 %v860_v20, 0.0 }
 0x12b   :  { %v1763_v25 = vpack.c.bf16 %v1003_v23, %v1002_v22  ;;  %v1868_v26 = vpack.c.bf16 %v1045_v24, %v1044_v19 }
 0x12c   :  { %v696_v27 = vpop.f32.mrb[12].mxu0  ;;  %v864_v28 = vpop.f32.mrb[12].mxu1 }
 0x12d   :  { %1951 = vst [vmem:[%s2716_s3 + $0x10] sm:$0xff] %v1763_v25   ;;  %v697_v29 = vadd.f32 %v2507_v36, %v696_v27  ;;  %v698_v30 = vpop.f32.mrb[13].mxu0  ;;  %1972 = vst [vmem:[%s2716_s3 + $0xb8] sm:$0xff] %v1868_v26   ;;  %v865_v31 = vadd.f32 %v2507_v36, %v864_v28  ;;  %v866_v32 = vpop.f32.mrb[13].mxu1 }
 0x12e   :  { %v699_v33 = vpop.f32.mrb[14].mxu0  ;;  %v867_v34 = vpop.f32.mrb[14].mxu1 }
 0x12f   :  { %v700_v35 = vadd.f32 %v2507_v36, %v699_v33  ;;  %v701_v37 = vpop.f32.mrb[15].mxu0  ;;  %v1046_v38 = vmax.f32 %v865_v31, 0.0  ;;  %v868_v39 = vadd.f32 %v2507_v36, %v867_v34  ;;  %v869_v40 = vpop.f32.mrb[15].mxu1  ;;  %v1004_v41 = vmax.f32 %v697_v29, 0.0 }
 0x131   :  { %v1005_v42 = vmax.f32 %v700_v35, 0.0  ;;  %v1047_v43 = vmax.f32 %v868_v39, 0.0 }
 0x133   :  { %v1768_v44 = vpack.c.bf16 %v1005_v42, %v1004_v41  ;;  %v1873_v45 = vpack.c.bf16 %v1047_v43, %v1046_v38 }
 0x134   :  { %v704_v46 = vpop.f32.mrb[16].mxu0  ;;  %v872_v47 = vpop.f32.mrb[16].mxu1 }
 0x135   :  { %1952 = vst [vmem:[%s2716_s3 + $0x18] sm:$0xff] %v1768_v44   ;;  %v705_v48 = vadd.f32 %v2507_v36, %v704_v46  ;;  %v706_v49 = vpop.f32.mrb[17].mxu0  ;;  %1973 = vst [vmem:[%s2716_s3 + $0xc0] sm:$0xff] %v1873_v45   ;;  %v873_v50 = vadd.f32 %v2507_v36, %v872_v47  ;;  %v874_v51 = vpop.f32.mrb[17].mxu1 }
 0x136   :  { %v707_v52 = vpop.f32.mrb[18].mxu0  ;;  %v875_v53 = vpop.f32.mrb[18].mxu1 }
 0x137   :  { %v708_v54 = vadd.f32 %v2507_v36, %v707_v52  ;;  %v709_v55 = vpop.f32.mrb[19].mxu0  ;;  %v1048_v56 = vmax.f32 %v873_v50, 0.0  ;;  %v876_v57 = vadd.f32 %v2507_v36, %v875_v53  ;;  %v877_v58 = vpop.f32.mrb[19].mxu1  ;;  %v1006_v59 = vmax.f32 %v705_v48, 0.0 }
 0x139   :  { %v1007_v60 = vmax.f32 %v708_v54, 0.0  ;;  %v1049_v61 = vmax.f32 %v876_v57, 0.0 }
 0x13b   :  { %v1773_v62 = vpack.c.bf16 %v1007_v60, %v1006_v59  ;;  %v1878_v63 = vpack.c.bf16 %v1049_v61, %v1048_v56 }
 0x13c   :  { %v712_v0 = vpop.f32.mrb[20].mxu0  ;;  %v880_v1 = vpop.f32.mrb[20].mxu1 }
 0x13d   :  { %1953 = vst [vmem:[%s2716_s3 + $0x20] sm:$0xff] %v1773_v62   ;;  %v713_v2 = vadd.f32 %v2507_v36, %v712_v0  ;;  %v714_v3 = vpop.f32.mrb[21].mxu0  ;;  %1974 = vst [vmem:[%s2716_s3 + $0xc8] sm:$0xff] %v1878_v63   ;;  %v881_v4 = vadd.f32 %v2507_v36, %v880_v1  ;;  %v882_v5 = vpop.f32.mrb[21].mxu1 }
 0x13e   :  { %v715_v6 = vpop.f32.mrb[22].mxu0  ;;  %v883_v7 = vpop.f32.mrb[22].mxu1 }
 0x13f   :  { %v716_v8 = vadd.f32 %v2507_v36, %v715_v6  ;;  %v717_v9 = vpop.f32.mrb[23].mxu0  ;;  %v1050_v10 = vmax.f32 %v881_v4, 0.0  ;;  %v884_v11 = vadd.f32 %v2507_v36, %v883_v7  ;;  %v885_v12 = vpop.f32.mrb[23].mxu1  ;;  %v1008_v13 = vmax.f32 %v713_v2, 0.0 }
 0x141   :  { %v1009_v14 = vmax.f32 %v716_v8, 0.0  ;;  %v1051_v15 = vmax.f32 %v884_v11, 0.0 }
 0x143   :  { %v1778_v16 = vpack.c.bf16 %v1009_v14, %v1008_v13  ;;  %v1883_v17 = vpack.c.bf16 %v1051_v15, %v1050_v10 }
 0x144   :  { %v720_v18 = vpop.f32.mrb[24].mxu0  ;;  %v888_v19 = vpop.f32.mrb[24].mxu1 }
 0x145   :  { %1954 = vst [vmem:[%s2716_s3 + $0x28] sm:$0xff] %v1778_v16   ;;  %v721_v20 = vadd.f32 %v2507_v36, %v720_v18  ;;  %v722_v21 = vpop.f32.mrb[25].mxu0  ;;  %1975 = vst [vmem:[%s2716_s3 + $0xd0] sm:$0xff] %v1883_v17   ;;  %v889_v22 = vadd.f32 %v2507_v36, %v888_v19  ;;  %v890_v23 = vpop.f32.mrb[25].mxu1 }
 0x146   :  { %v723_v24 = vpop.f32.mrb[26].mxu0  ;;  %v891_v25 = vpop.f32.mrb[26].mxu1 }
 0x147   :  { %v724_v26 = vadd.f32 %v2507_v36, %v723_v24  ;;  %v725_v27 = vpop.f32.mrb[27].mxu0  ;;  %v1052_v28 = vmax.f32 %v889_v22, 0.0  ;;  %v892_v29 = vadd.f32 %v2507_v36, %v891_v25  ;;  %v893_v30 = vpop.f32.mrb[27].mxu1  ;;  %v1010_v31 = vmax.f32 %v721_v20, 0.0 }
 0x149   :  { %v1011_v32 = vmax.f32 %v724_v26, 0.0  ;;  %v1053_v33 = vmax.f32 %v892_v29, 0.0 }
 0x14b   :  { %v1783_v34 = vpack.c.bf16 %v1011_v32, %v1010_v31  ;;  %v1888_v35 = vpack.c.bf16 %v1053_v33, %v1052_v28 }
 0x14c   :  { %v728_v37 = vpop.f32.mrb[28].mxu0  ;;  %v896_v38 = vpop.f32.mrb[28].mxu1 }
 0x14d   :  { %1955 = vst [vmem:[%s2716_s3 + $0x30] sm:$0xff] %v1783_v34   ;;  %v729_v39 = vadd.f32 %v2507_v36, %v728_v37  ;;  %v730_v40 = vpop.f32.mrb[29].mxu0  ;;  %1976 = vst [vmem:[%s2716_s3 + $0xd8] sm:$0xff] %v1888_v35   ;;  %v897_v41 = vadd.f32 %v2507_v36, %v896_v38  ;;  %v898_v42 = vpop.f32.mrb[29].mxu1 }
 0x14e   :  { %v731_v43 = vpop.f32.mrb[30].mxu0  ;;  %v899_v44 = vpop.f32.mrb[30].mxu1 }
 0x14f   :  { %v732_v45 = vadd.f32 %v2507_v36, %v731_v43  ;;  %v733_v46 = vpop.f32.mrb[31].mxu0  ;;  %v1054_v47 = vmax.f32 %v897_v41, 0.0  ;;  %v900_v48 = vadd.f32 %v2507_v36, %v899_v44  ;;  %v901_v49 = vpop.f32.mrb[31].mxu1  ;;  %v1012_v50 = vmax.f32 %v729_v39, 0.0 }
 0x151   :  { %v1013_v51 = vmax.f32 %v732_v45, 0.0  ;;  %v1055_v52 = vmax.f32 %v900_v48, 0.0 }
 0x153   :  { %v1788_v53 = vpack.c.bf16 %v1013_v51, %v1012_v50  ;;  %v1893_v54 = vpack.c.bf16 %v1055_v52, %v1054_v47 }
 0x154   :  { %v736_v55 = vpop.f32.mrb[32].mxu0  ;;  %v904_v56 = vpop.f32.mrb[32].mxu1 }
 0x155   :  { %1956 = vst [vmem:[%s2716_s3 + $0x38] sm:$0xff] %v1788_v53   ;;  %v737_v57 = vadd.f32 %v2507_v36, %v736_v55  ;;  %v738_v58 = vpop.f32.mrb[33].mxu0  ;;  %1977 = vst [vmem:[%s2716_s3 + $0xe0] sm:$0xff] %v1893_v54   ;;  %v905_v59 = vadd.f32 %v2507_v36, %v904_v56  ;;  %v906_v60 = vpop.f32.mrb[33].mxu1 }
 0x156   :  { %v739_v61 = vpop.f32.mrb[34].mxu0  ;;  %v907_v62 = vpop.f32.mrb[34].mxu1 }
 0x157   :  { %v740_v63 = vadd.f32 %v2507_v36, %v739_v61  ;;  %v741_v0 = vpop.f32.mrb[35].mxu0  ;;  %v1056_v1 = vmax.f32 %v905_v59, 0.0  ;;  %v908_v2 = vadd.f32 %v2507_v36, %v907_v62  ;;  %v909_v3 = vpop.f32.mrb[35].mxu1  ;;  %v1014_v4 = vmax.f32 %v737_v57, 0.0 }
 0x159   :  { %v1015_v5 = vmax.f32 %v740_v63, 0.0  ;;  %v1057_v6 = vmax.f32 %v908_v2, 0.0 }
 0x15b   :  { %v1793_v7 = vpack.c.bf16 %v1015_v5, %v1014_v4  ;;  %v1898_v8 = vpack.c.bf16 %v1057_v6, %v1056_v1 }
 0x15c   :  { %v744_v9 = vpop.f32.mrb[36].mxu0  ;;  %v912_v10 = vpop.f32.mrb[36].mxu1 }
 0x15d   :  { %1957 = vst [vmem:[%s2716_s3 + $0x40] sm:$0xff] %v1793_v7   ;;  %v745_v11 = vadd.f32 %v2507_v36, %v744_v9  ;;  %v746_v12 = vpop.f32.mrb[37].mxu0  ;;  %1978 = vst [vmem:[%s2716_s3 + $0xe8] sm:$0xff] %v1898_v8   ;;  %v913_v13 = vadd.f32 %v2507_v36, %v912_v10  ;;  %v914_v14 = vpop.f32.mrb[37].mxu1 }
 0x15e   :  { %v747_v15 = vpop.f32.mrb[38].mxu0  ;;  %v915_v16 = vpop.f32.mrb[38].mxu1 }
 0x15f   :  { %v748_v17 = vadd.f32 %v2507_v36, %v747_v15  ;;  %v749_v18 = vpop.f32.mrb[39].mxu0  ;;  %v1058_v19 = vmax.f32 %v913_v13, 0.0  ;;  %v916_v20 = vadd.f32 %v2507_v36, %v915_v16  ;;  %v917_v21 = vpop.f32.mrb[39].mxu1  ;;  %v1016_v22 = vmax.f32 %v745_v11, 0.0 }
 0x161   :  { %v1017_v23 = vmax.f32 %v748_v17, 0.0  ;;  %v1059_v24 = vmax.f32 %v916_v20, 0.0 }
 0x163   :  { %v1798_v25 = vpack.c.bf16 %v1017_v23, %v1016_v22  ;;  %v1903_v26 = vpack.c.bf16 %v1059_v24, %v1058_v19 }
 0x164   :  { %v752_v27 = vpop.f32.mrb[40].mxu0  ;;  %v920_v28 = vpop.f32.mrb[40].mxu1 }
 0x165   :  { %1958 = vst [vmem:[%s2716_s3 + $0x48] sm:$0xff] %v1798_v25   ;;  %v753_v29 = vadd.f32 %v2507_v36, %v752_v27  ;;  %v754_v30 = vpop.f32.mrb[41].mxu0  ;;  %1979 = vst [vmem:[%s2716_s3 + $0xf0] sm:$0xff] %v1903_v26   ;;  %v921_v31 = vadd.f32 %v2507_v36, %v920_v28  ;;  %v922_v32 = vpop.f32.mrb[41].mxu1 }
 0x166   :  { %v755_v33 = vpop.f32.mrb[42].mxu0  ;;  %v923_v34 = vpop.f32.mrb[42].mxu1 }
 0x167   :  { %v756_v35 = vadd.f32 %v2507_v36, %v755_v33  ;;  %v757_v37 = vpop.f32.mrb[43].mxu0  ;;  %v1060_v38 = vmax.f32 %v921_v31, 0.0  ;;  %v924_v39 = vadd.f32 %v2507_v36, %v923_v34  ;;  %v925_v40 = vpop.f32.mrb[43].mxu1  ;;  %v1018_v41 = vmax.f32 %v753_v29, 0.0 }
 0x169   :  { %v1019_v42 = vmax.f32 %v756_v35, 0.0  ;;  %v1061_v43 = vmax.f32 %v924_v39, 0.0 }
 0x16b   :  { %v1803_v44 = vpack.c.bf16 %v1019_v42, %v1018_v41  ;;  %v1908_v45 = vpack.c.bf16 %v1061_v43, %v1060_v38 }
 0x16c   :  { %v760_v46 = vpop.f32.mrb[44].mxu0  ;;  %v928_v47 = vpop.f32.mrb[44].mxu1 }
 0x16d   :  { %1959 = vst [vmem:[%s2716_s3 + $0x50] sm:$0xff] %v1803_v44   ;;  %v761_v48 = vadd.f32 %v2507_v36, %v760_v46  ;;  %v762_v49 = vpop.f32.mrb[45].mxu0  ;;  %1980 = vst [vmem:[%s2716_s3 + $0xf8] sm:$0xff] %v1908_v45   ;;  %v929_v50 = vadd.f32 %v2507_v36, %v928_v47  ;;  %v930_v51 = vpop.f32.mrb[45].mxu1 }
 0x16e   :  { %v763_v52 = vpop.f32.mrb[46].mxu0  ;;  %v931_v53 = vpop.f32.mrb[46].mxu1 }
 0x16f   :  { %v764_v54 = vadd.f32 %v2507_v36, %v763_v52  ;;  %v765_v55 = vpop.f32.mrb[47].mxu0  ;;  %v1062_v56 = vmax.f32 %v929_v50, 0.0  ;;  %v932_v57 = vadd.f32 %v2507_v36, %v931_v53  ;;  %v933_v58 = vpop.f32.mrb[47].mxu1  ;;  %v1020_v59 = vmax.f32 %v761_v48, 0.0 }
 0x171   :  { %v1021_v60 = vmax.f32 %v764_v54, 0.0  ;;  %v1063_v61 = vmax.f32 %v932_v57, 0.0 }
 0x173   :  { %v1808_v62 = vpack.c.bf16 %v1021_v60, %v1020_v59  ;;  %v1913_v63 = vpack.c.bf16 %v1063_v61, %v1062_v56 }
 0x174   :  { %v768_v0 = vpop.f32.mrb[48].mxu0  ;;  %v936_v1 = vpop.f32.mrb[48].mxu1 }
 0x175   :  { %1960 = vst [vmem:[%s2716_s3 + $0x58] sm:$0xff] %v1808_v62   ;;  %v769_v2 = vadd.f32 %v2507_v36, %v768_v0  ;;  %v770_v3 = vpop.f32.mrb[49].mxu0  ;;  %1981 = vst [vmem:[%s2716_s3 + $0x100] sm:$0xff] %v1913_v63   ;;  %v937_v4 = vadd.f32 %v2507_v36, %v936_v1  ;;  %v938_v5 = vpop.f32.mrb[49].mxu1 }
 0x176   :  { %v771_v6 = vpop.f32.mrb[50].mxu0  ;;  %v939_v7 = vpop.f32.mrb[50].mxu1 }
 0x177   :  { %v772_v8 = vadd.f32 %v2507_v36, %v771_v6  ;;  %v773_v9 = vpop.f32.mrb[51].mxu0  ;;  %v1064_v10 = vmax.f32 %v937_v4, 0.0  ;;  %v940_v11 = vadd.f32 %v2507_v36, %v939_v7  ;;  %v941_v12 = vpop.f32.mrb[51].mxu1  ;;  %v1022_v13 = vmax.f32 %v769_v2, 0.0 }
 0x179   :  { %v1023_v14 = vmax.f32 %v772_v8, 0.0  ;;  %v1065_v15 = vmax.f32 %v940_v11, 0.0 }
 0x17b   :  { %v1813_v16 = vpack.c.bf16 %v1023_v14, %v1022_v13  ;;  %v1918_v17 = vpack.c.bf16 %v1065_v15, %v1064_v10 }
 0x17c   :  { %v776_v18 = vpop.f32.mrb[52].mxu0  ;;  %v944_v19 = vpop.f32.mrb[52].mxu1 }
 0x17d   :  { %1961 = vst [vmem:[%s2716_s3 + $0x60] sm:$0xff] %v1813_v16   ;;  %v777_v20 = vadd.f32 %v2507_v36, %v776_v18  ;;  %v778_v21 = vpop.f32.mrb[53].mxu0  ;;  %1982 = vst [vmem:[%s2716_s3 + $0x108] sm:$0xff] %v1918_v17   ;;  %v945_v22 = vadd.f32 %v2507_v36, %v944_v19  ;;  %v946_v23 = vpop.f32.mrb[53].mxu1 }
 0x17e   :  { %v779_v24 = vpop.f32.mrb[54].mxu0  ;;  %v947_v25 = vpop.f32.mrb[54].mxu1 }
 0x17f   :  { %v780_v26 = vadd.f32 %v2507_v36, %v779_v24  ;;  %v781_v27 = vpop.f32.mrb[55].mxu0  ;;  %v1066_v28 = vmax.f32 %v945_v22, 0.0  ;;  %v948_v29 = vadd.f32 %v2507_v36, %v947_v25  ;;  %v949_v30 = vpop.f32.mrb[55].mxu1  ;;  %v1024_v31 = vmax.f32 %v777_v20, 0.0 }
 0x181   :  { %v1025_v32 = vmax.f32 %v780_v26, 0.0  ;;  %v1067_v33 = vmax.f32 %v948_v29, 0.0 }
 0x183   :  { %v1818_v34 = vpack.c.bf16 %v1025_v32, %v1024_v31  ;;  %v1923_v35 = vpack.c.bf16 %v1067_v33, %v1066_v28 }
 0x184   :  { %v784_v37 = vpop.f32.mrb[56].mxu0  ;;  %v952_v38 = vpop.f32.mrb[56].mxu1 }
 0x185   :  { %1962 = vst [vmem:[%s2716_s3 + $0x68] sm:$0xff] %v1818_v34   ;;  %v785_v39 = vadd.f32 %v2507_v36, %v784_v37  ;;  %v786_v40 = vpop.f32.mrb[57].mxu0  ;;  %1983 = vst [vmem:[%s2716_s3 + $0x110] sm:$0xff] %v1923_v35   ;;  %v953_v41 = vadd.f32 %v2507_v36, %v952_v38  ;;  %v954_v42 = vpop.f32.mrb[57].mxu1 }
 0x186   :  { %v787_v43 = vpop.f32.mrb[58].mxu0  ;;  %v955_v44 = vpop.f32.mrb[58].mxu1 }
 0x187   :  { %v788_v45 = vadd.f32 %v2507_v36, %v787_v43  ;;  %v789_v46 = vpop.f32.mrb[59].mxu0  ;;  %v1068_v47 = vmax.f32 %v953_v41, 0.0  ;;  %v956_v48 = vadd.f32 %v2507_v36, %v955_v44  ;;  %v957_v49 = vpop.f32.mrb[59].mxu1  ;;  %v1026_v50 = vmax.f32 %v785_v39, 0.0 }
 0x189   :  { %v1027_v51 = vmax.f32 %v788_v45, 0.0  ;;  %v1069_v52 = vmax.f32 %v956_v48, 0.0 }
 0x18b   :  { %v1823_v53 = vpack.c.bf16 %v1027_v51, %v1026_v50  ;;  %v1928_v54 = vpack.c.bf16 %v1069_v52, %v1068_v47 }
 0x18c   :  { %v792_v55 = vpop.f32.mrb[60].mxu0  ;;  %v960_v56 = vpop.f32.mrb[60].mxu1 }
 0x18d   :  { %1963 = vst [vmem:[%s2716_s3 + $0x70] sm:$0xff] %v1823_v53   ;;  %v793_v57 = vadd.f32 %v2507_v36, %v792_v55  ;;  %v794_v58 = vpop.f32.mrb[61].mxu0  ;;  %1984 = vst [vmem:[%s2716_s3 + $0x118] sm:$0xff] %v1928_v54   ;;  %v961_v59 = vadd.f32 %v2507_v36, %v960_v56  ;;  %v962_v60 = vpop.f32.mrb[61].mxu1 }
 0x18e   :  { %v795_v61 = vpop.f32.mrb[62].mxu0  ;;  %v963_v62 = vpop.f32.mrb[62].mxu1 }
 0x18f   :  { %v796_v63 = vadd.f32 %v2507_v36, %v795_v61  ;;  %v797_v0 = vpop.f32.mrb[63].mxu0  ;;  %v1070_v1 = vmax.f32 %v961_v59, 0.0  ;;  %v964_v2 = vadd.f32 %v2507_v36, %v963_v62  ;;  %v965_v3 = vpop.f32.mrb[63].mxu1  ;;  %v1028_v4 = vmax.f32 %v793_v57, 0.0 }
 0x191   :  { %v1029_v5 = vmax.f32 %v796_v63, 0.0  ;;  %v1071_v6 = vmax.f32 %v964_v2, 0.0 }
 0x193   :  { %v1828_v7 = vpack.c.bf16 %v1029_v5, %v1028_v4  ;;  %v1933_v8 = vpack.c.bf16 %v1071_v6, %v1070_v1 }
 0x194   :  { %v800_v9 = vpop.f32.mrb[64].mxu0  ;;  %v968_v10 = vpop.f32.mrb[64].mxu1 }
 0x195   :  { %1964 = vst [vmem:[%s2716_s3 + $0x78] sm:$0xff] %v1828_v7   ;;  %v801_v11 = vadd.f32 %v2507_v36, %v800_v9  ;;  %v802_v12 = vpop.f32.mrb[65].mxu0  ;;  %1985 = vst [vmem:[%s2716_s3 + $0x120] sm:$0xff] %v1933_v8   ;;  %v969_v13 = vadd.f32 %v2507_v36, %v968_v10  ;;  %v970_v14 = vpop.f32.mrb[65].mxu1 }
 0x196   :  { %v803_v15 = vpop.f32.mrb[66].mxu0  ;;  %v971_v16 = vpop.f32.mrb[66].mxu1 }
 0x197   :  { %v804_v17 = vadd.f32 %v2507_v36, %v803_v15  ;;  %v805_v18 = vpop.f32.mrb[67].mxu0  ;;  %v1072_v19 = vmax.f32 %v969_v13, 0.0  ;;  %v972_v20 = vadd.f32 %v2507_v36, %v971_v16  ;;  %v973_v21 = vpop.f32.mrb[67].mxu1  ;;  %v1030_v22 = vmax.f32 %v801_v11, 0.0 }
 0x199   :  { %v1031_v23 = vmax.f32 %v804_v17, 0.0  ;;  %v1073_v24 = vmax.f32 %v972_v20, 0.0 }
 0x19b   :  { %v1833_v25 = vpack.c.bf16 %v1031_v23, %v1030_v22  ;;  %v1938_v26 = vpack.c.bf16 %v1073_v24, %v1072_v19 }
 0x19c   :  { %v808_v27 = vpop.f32.mrb[68].mxu0  ;;  %v976_v28 = vpop.f32.mrb[68].mxu1 }
 0x19d   :  { %1965 = vst [vmem:[%s2716_s3 + $0x80] sm:$0xff] %v1833_v25   ;;  %v809_v29 = vadd.f32 %v2507_v36, %v808_v27  ;;  %v810_v30 = vpop.f32.mrb[69].mxu0  ;;  %1986 = vst [vmem:[%s2716_s3 + $0x128] sm:$0xff] %v1938_v26   ;;  %v977_v31 = vadd.f32 %v2507_v36, %v976_v28  ;;  %v978_v32 = vpop.f32.mrb[69].mxu1 }
 0x19e   :  { %v811_v33 = vpop.f32.mrb[70].mxu0  ;;  %v979_v34 = vpop.f32.mrb[70].mxu1 }
 0x19f   :  { %v812_v35 = vadd.f32 %v2507_v36, %v811_v33  ;;  %v813_v37 = vpop.f32.mrb[71].mxu0  ;;  %v1074_v38 = vmax.f32 %v977_v31, 0.0  ;;  %v980_v39 = vadd.f32 %v2507_v36, %v979_v34  ;;  %v981_v40 = vpop.f32.mrb[71].mxu1  ;;  %v1032_v41 = vmax.f32 %v809_v29, 0.0 }
 0x1a1   :  { %v1033_v42 = vmax.f32 %v812_v35, 0.0  ;;  %v1075_v43 = vmax.f32 %v980_v39, 0.0 }
 0x1a3   :  { %v1838_v44 = vpack.c.bf16 %v1033_v42, %v1032_v41  ;;  %v1943_v45 = vpack.c.bf16 %v1075_v43, %v1074_v38 }
 0x1a4   :  { %v816_v46 = vpop.f32.mrb[72].mxu0  ;;  %v984_v47 = vpop.f32.mrb[72].mxu1 }
 0x1a5   :  { %1966 = vst [vmem:[%s2716_s3 + $0x88] sm:$0xff] %v1838_v44   ;;  %v817_v48 = vadd.f32 %v2507_v36, %v816_v46  ;;  %v818_v49 = vpop.f32.mrb[73].mxu0  ;;  %1987 = vst [vmem:[%s2716_s3 + $0x130] sm:$0xff] %v1943_v45   ;;  %v985_v50 = vadd.f32 %v2507_v36, %v984_v47  ;;  %v986_v51 = vpop.f32.mrb[73].mxu1 }
 0x1a6   :  { %v819_v52 = vpop.f32.mrb[74].mxu0  ;;  %v987_v53 = vpop.f32.mrb[74].mxu1 }
 0x1a7   :  { %v820_v54 = vadd.f32 %v2507_v36, %v819_v52  ;;  %v821_v55 = vpop.f32.mrb[75].mxu0  ;;  %v1076_v56 = vmax.f32 %v985_v50, 0.0  ;;  %v988_v57 = vadd.f32 %v2507_v36, %v987_v53  ;;  %v989_v58 = vpop.f32.mrb[75].mxu1  ;;  %v1034_v59 = vmax.f32 %v817_v48, 0.0 }
 0x1a9   :  { %v1035_v60 = vmax.f32 %v820_v54, 0.0  ;;  %v1077_v61 = vmax.f32 %v988_v57, 0.0 }
 0x1ab   :  { %v1843_v62 = vpack.c.bf16 %v1035_v60, %v1034_v59  ;;  %v1948_v63 = vpack.c.bf16 %v1077_v61, %v1076_v56 }
 0x1ac   :  { %v824_v0 = vpop.f32.mrb[76].mxu0  ;;  %v992_v1 = vpop.f32.mrb[76].mxu1 }
 0x1ad   :  { %1967 = vst [vmem:[%s2716_s3 + $0x90] sm:$0xff] %v1843_v62   ;;  %v825_v2 = vadd.f32 %v2507_v36, %v824_v0  ;;  %v826_v3 = vpop.f32.mrb[77].mxu0  ;;  %1988 = vst [vmem:[%s2716_s3 + $0x138] sm:$0xff] %v1948_v63   ;;  %v993_v4 = vadd.f32 %v2507_v36, %v992_v1  ;;  %v994_v5 = vpop.f32.mrb[77].mxu1 }
 0x1ae   :  { %v827_v6 = vpop.f32.mrb[78].mxu0  ;;  %v995_v7 = vpop.f32.mrb[78].mxu1 }
 0x1af   :  { %v828_v8 = vadd.f32 %v2507_v36, %v827_v6  ;;  %v829_v9 = vpop.f32.mrb[79].mxu0  ;;  %v1078_v10 = vmax.f32 %v993_v4, 0.0  ;;  %v996_v11 = vpop.f32.mrb[79].mxu1  ;;  %v1036_v12 = vmax.f32 %v825_v2, 0.0 }
 0x1b1   :  { %v1037_v13 = vmax.f32 %v828_v8, 0.0  ;;  %v1749_v14 = vpack.c.bf16 %v1078_v10, %v1078_v10 }
 0x1b3   :  { %v1848_v15 = vpack.c.bf16 %v1037_v13, %v1036_v12  ;;  %1484 = vst [vmem:[%s2716_s3 + $0x140] sm:$0xf] %v1749_v14 }
 0x1b4   :  { %v832_v16 = vpop.f32.mrb[80].mxu0 }
 0x1b5   :  { %1968 = vst [vmem:[%s2716_s3 + $0x98] sm:$0xff] %v1848_v15   ;;  %v833_v17 = vadd.f32 %v2507_v36, %v832_v16  ;;  %v834_v18 = vpop.f32.mrb[81].mxu0 }
 0x1b6   :  { %v835_v19 = vpop.f32.mrb[82].mxu0 }
 0x1b7   :  { %v836_v20 = vadd.f32 %v2507_v36, %v835_v19  ;;  %v837_v21 = vpop.f32.mrb[83].mxu0  ;;  %v1038_v22 = vmax.f32 %v833_v17, 0.0 }
 0x1b9   :  { %v1039_v23 = vmax.f32 %v836_v20, 0.0 }
 0x1bb   :  { %v1853_v24 = vpack.c.bf16 %v1039_v23, %v1038_v22 }
 0x1bd   :  { %1969 = vst [vmem:[%s2716_s3 + $0xa0] sm:$0xff] %v1853_v24  }

// kernel: value_forward.5
= control target key start
LH: loop header
LB: loop body
LE: loop exit
PB: predicated region body
PF: predicated region fallthrough
CT: control target
= control target key end

     0   :  { %s1373_s1 = inlined_call_operand.vmem [shape: bf16[512,128], index: 1, kind: input, shape index: {}]   ;;  %s1374_s0 = inlined_call_operand.vmem [shape: bf16[128,512], index: 0, kind: input, shape index: {}]   ;;  %s1375_s2 = inlined_call_operand.vmem [shape: f32[1,128], index: 2, kind: input, shape index: {}]   ;;  %s1376_s3 = inlined_call_operand.vmem [shape: bf16[128,128], index: 3, kind: output, shape index: {}]  }
   0x1   :  { %v1036_v0 = vld [vmem:[%s1373_s1 + $0x40] sm:$0xff]   ;;  %v1040_v4 = vld [vmem:[%s1373_s1 + $0x48] sm:$0xff]   ;;  %v1044_v8 = vld [vmem:[%s1373_s1 + $0x50] sm:$0xff]  }
   0x2   :  { %v1037_v1 = vld [vmem:[%s1373_s1 + $0xc0] sm:$0xff]   ;;  %908 = vmatprep.subr.bf16.mxu0 %v1036_v0  ;;  %v1041_v5 = vld [vmem:[%s1373_s1 + $0xc8] sm:$0xff]   ;;  %v1045_v9 = vld [vmem:[%s1373_s1 + $0xd0] sm:$0xff]  }
   0x3   :  { %v1038_v2 = vld [vmem:[%s1373_s1] sm:$0xff]   ;;  %972 = vmatprep.subr.bf16.mxu1 %v1037_v1  ;;  %v1042_v6 = vld [vmem:[%s1373_s1 + $0x8] sm:$0xff]   ;;  %v1046_v10 = vld [vmem:[%s1373_s1 + $0x10] sm:$0xff]  }
   0x4   :  { %v1039_v3 = vld [vmem:[%s1373_s1 + $0x80] sm:$0xff]   ;;  %909 = vmatpush3.bf16.msra.mxu0 %v1038_v2  ;;  %v1043_v7 = vld [vmem:[%s1373_s1 + $0x88] sm:$0xff]   ;;  %v1047_v11 = vld [vmem:[%s1373_s1 + $0x90] sm:$0xff]  }
   0x5   :  { %973 = vmatpush3.bf16.msra.mxu1 %v1039_v3  ;;  %910 = vmatprep.subr.bf16.mxu0 %v1040_v4  ;;  %v1048_v12 = vld [vmem:[%s1373_s1 + $0x58] sm:$0xff]   ;;  %v1052_v16 = vld [vmem:[%s1373_s1 + $0x60] sm:$0xff]   ;;  %v1056_v20 = vld [vmem:[%s1373_s1 + $0x68] sm:$0xff]  }
   0x6   :  { %974 = vmatprep.subr.bf16.mxu1 %v1041_v5  ;;  %v1049_v13 = vld [vmem:[%s1373_s1 + $0xd8] sm:$0xff]   ;;  %v1053_v17 = vld [vmem:[%s1373_s1 + $0xe0] sm:$0xff]   ;;  %v1057_v21 = vld [vmem:[%s1373_s1 + $0xe8] sm:$0xff]  }
   0x7   :  { %v1050_v14 = vld [vmem:[%s1373_s1 + $0x18] sm:$0xff]   ;;  %v1054_v18 = vld [vmem:[%s1373_s1 + $0x20] sm:$0xff]   ;;  %v1058_v22 = vld [vmem:[%s1373_s1 + $0x28] sm:$0xff]  }
   0x8   :  { %911 = vmatpush3.bf16.msra.mxu0 %v1042_v6  ;;  %v1051_v15 = vld [vmem:[%s1373_s1 + $0x98] sm:$0xff]   ;;  %v1055_v19 = vld [vmem:[%s1373_s1 + $0xa0] sm:$0xff]   ;;  %v1059_v23 = vld [vmem:[%s1373_s1 + $0xa8] sm:$0xff]  }
   0x9   :  { %975 = vmatpush3.bf16.msra.mxu1 %v1043_v7  ;;  %912 = vmatprep.subr.bf16.mxu0 %v1044_v8  ;;  %v1060_v24 = vld [vmem:[%s1373_s1 + $0x70] sm:$0xff]   ;;  %v1064_v28 = vld [vmem:[%s1373_s1 + $0x78] sm:$0xff]   ;;  %v1331_v2 = vld [vmem:[%s1375_s2] ss:$0 sm:$0xff] }
   0xa   :  { %976 = vmatprep.subr.bf16.mxu1 %v1045_v9  ;;  %v1061_v25 = vld [vmem:[%s1373_s1 + $0xf0] sm:$0xff]   ;;  %v1065_v29 = vld [vmem:[%s1373_s1 + $0xf8] sm:$0xff]  }
   0xb   :  { %v1062_v26 = vld [vmem:[%s1373_s1 + $0x30] sm:$0xff]   ;;  %v1066_v30 = vld [vmem:[%s1373_s1 + $0x38] sm:$0xff]  }
   0xc   :  { %913 = vmatpush3.bf16.msra.mxu0 %v1046_v10  ;;  %v1063_v27 = vld [vmem:[%s1373_s1 + $0xb0] sm:$0xff]   ;;  %v1067_v31 = vld [vmem:[%s1373_s1 + $0xb8] sm:$0xff]  }
   0xd   :  { %977 = vmatpush3.bf16.msra.mxu1 %v1047_v11  ;;  %914 = vmatprep.subr.bf16.mxu0 %v1048_v12  ;;  %v1068_v32 = vld [vmem:[%s1374_s0] ss:$16 sps:$4 sm:$0xff]   ;;  %v1070_v33 = vld [vmem:[%s1374_s0 + $0x4] ss:$16 sps:$4 sm:$0xff]   ;;  %v1071_v34 = vld [vmem:[%s1374_s0 + $0x8] ss:$16 sps:$4 sm:$0xff]  }
   0xe   :  { %978 = vmatprep.subr.bf16.mxu1 %v1049_v13  ;;  %v1073_v35 = vld [vmem:[%s1374_s0 + $0xc] ss:$16 sps:$4 sm:$0xff]   ;;  %502 = vmatprep.mubr.bf16.mxu0 %v1070_v33  ;;  %v1074_v36 = vld [vmem:[%s1374_s0 + $0x24] ss:$16 sps:$4 sm:$0xff]   ;;  %v1078_v38 = vld [vmem:[%s1374_s0 + $0x20] ss:$16 sps:$4 sm:$0xff]  }
   0xf   :  { %599 = vmatprep.mubr.bf16.mxu1 %v1073_v35  ;;  %v1076_v37 = vld [vmem:[%s1374_s0 + $0x2c] ss:$16 sps:$4 sm:$0xff]   ;;  %v1079_v39 = vld [vmem:[%s1374_s0 + $0x28] ss:$16 sps:$4 sm:$0xff]   ;;  %v1080_v40 = vld [vmem:[%s1374_s0 + $0x44] ss:$16 sps:$4 sm:$0xff]  }
  0x10   :  { %915 = vmatpush3.bf16.msra.mxu0 %v1050_v14  ;;  %v1082_v41 = vld [vmem:[%s1374_s0 + $0x4c] ss:$16 sps:$4 sm:$0xff]   ;;  %v1084_v42 = vld [vmem:[%s1374_s0 + $0x40] ss:$16 sps:$4 sm:$0xff]   ;;  %v1085_v43 = vld [vmem:[%s1374_s0 + $0x48] ss:$16 sps:$4 sm:$0xff]  }
  0x11   :  { %979 = vmatpush3.bf16.msra.mxu1 %v1051_v15  ;;  %916 = vmatprep.subr.bf16.mxu0 %v1052_v16  ;;  %v1086_v44 = vld [vmem:[%s1374_s0 + $0x64] ss:$16 sps:$4 sm:$0xff]   ;;  %v1088_v45 = vld [vmem:[%s1374_s0 + $0x6c] ss:$16 sps:$4 sm:$0xff]   ;;  %v1090_v46 = vld [vmem:[%s1374_s0 + $0x60] ss:$16 sps:$4 sm:$0xff]  }
  0x12   :  { %980 = vmatprep.subr.bf16.mxu1 %v1053_v17  ;;  %v1091_v47 = vld [vmem:[%s1374_s0 + $0x68] ss:$16 sps:$4 sm:$0xff]   ;;  %v1092_v48 = vld [vmem:[%s1374_s0 + $0x84] ss:$16 sps:$4 sm:$0xff]   ;;  %v1094_v49 = vld [vmem:[%s1374_s0 + $0x8c] ss:$16 sps:$4 sm:$0xff]  }
  0x13   :  { %v1096_v50 = vld [vmem:[%s1374_s0 + $0x80] ss:$16 sps:$4 sm:$0xff]   ;;  %v1097_v51 = vld [vmem:[%s1374_s0 + $0x88] ss:$16 sps:$4 sm:$0xff]   ;;  %v1098_v52 = vld [vmem:[%s1374_s0 + $0xa4] ss:$16 sps:$4 sm:$0xff]  }
  0x14   :  { %917 = vmatpush3.bf16.msra.mxu0 %v1054_v18  ;;  %v1100_v53 = vld [vmem:[%s1374_s0 + $0xac] ss:$16 sps:$4 sm:$0xff]   ;;  %v1102_v54 = vld [vmem:[%s1374_s0 + $0xa0] ss:$16 sps:$4 sm:$0xff]   ;;  %v1103_v55 = vld [vmem:[%s1374_s0 + $0xa8] ss:$16 sps:$4 sm:$0xff]  }
  0x15   :  { %981 = vmatpush3.bf16.msra.mxu1 %v1055_v19  ;;  %918 = vmatprep.subr.bf16.mxu0 %v1056_v20  ;;  %v1104_v56 = vld [vmem:[%s1374_s0 + $0xc4] ss:$16 sps:$4 sm:$0xff]   ;;  %v1106_v57 = vld [vmem:[%s1374_s0 + $0xcc] ss:$16 sps:$4 sm:$0xff]   ;;  %v1108_v58 = vld [vmem:[%s1374_s0 + $0xc0] ss:$16 sps:$4 sm:$0xff]  }
  0x16   :  { %982 = vmatprep.subr.bf16.mxu1 %v1057_v21  ;;  %v1109_v59 = vld [vmem:[%s1374_s0 + $0xc8] ss:$16 sps:$4 sm:$0xff]   ;;  %v1110_v60 = vld [vmem:[%s1374_s0 + $0xe4] ss:$16 sps:$4 sm:$0xff]   ;;  %v1112_v61 = vld [vmem:[%s1374_s0 + $0xec] ss:$16 sps:$4 sm:$0xff]  }
  0x17   :  { %v1114_v62 = vld [vmem:[%s1374_s0 + $0xe0] ss:$16 sps:$4 sm:$0xff]   ;;  %v1115_v63 = vld [vmem:[%s1374_s0 + $0xe8] ss:$16 sps:$4 sm:$0xff]  }
  0x18   :  { %919 = vmatpush3.bf16.msra.mxu0 %v1058_v22 }
  0x19   :  { %983 = vmatpush3.bf16.msra.mxu1 %v1059_v23  ;;  %920 = vmatprep.subr.bf16.mxu0 %v1060_v24 }
  0x1a   :  { %984 = vmatprep.subr.bf16.mxu1 %v1061_v25 }
  0x1c   :  { %921 = vmatpush3.bf16.msra.mxu0 %v1062_v26 }
  0x1d   :  { %985 = vmatpush3.bf16.msra.mxu1 %v1063_v27  ;;  %922 = vmatprep.subr.bf16.mxu0 %v1064_v28 }
  0x1e   :  { %986 = vmatprep.subr.bf16.mxu1 %v1065_v29 }
  0x20   :  { %923 = vmatpush3.bf16.msra.mxu0 %v1066_v30 }
  0x21   :  { %987 = vmatpush3.bf16.msra.mxu1 %v1067_v31 }
  0x23   :  { %503 = vmatmul.mubr.bf16.vlgmr.msra.gmra.mrb[0].mxu0 %v1068_v32 }
  0x24   :  { %600 = vmatmul.mubr.bf16.vlgmr.msra.gmra.mrb[0].mxu1 %v1071_v34  ;;  %510 = vmatprep.mubr.bf16.mxu0 %v1074_v36 }
  0x25   :  { %607 = vmatprep.mubr.bf16.mxu1 %v1076_v37 }
  0x2b   :  { %511 = vmatmul.mubr.bf16.gmra.mrb[4].mxu0 %v1078_v38 }
  0x2c   :  { %608 = vmatmul.mubr.bf16.gmra.mrb[4].mxu1 %v1079_v39  ;;  %518 = vmatprep.mubr.bf16.mxu0 %v1080_v40 }
  0x2d   :  { %615 = vmatprep.mubr.bf16.mxu1 %v1082_v41 }
  0x33   :  { %519 = vmatmul.mubr.bf16.gmra.mrb[8].mxu0 %v1084_v42 }
  0x34   :  { %616 = vmatmul.mubr.bf16.gmra.mrb[8].mxu1 %v1085_v43  ;;  %526 = vmatprep.mubr.bf16.mxu0 %v1086_v44 }
  0x35   :  { %623 = vmatprep.mubr.bf16.mxu1 %v1088_v45 }
  0x3b   :  { %527 = vmatmul.mubr.bf16.gmra.mrb[12].mxu0 %v1090_v46 }
  0x3c   :  { %624 = vmatmul.mubr.bf16.gmra.mrb[12].mxu1 %v1091_v47  ;;  %534 = vmatprep.mubr.bf16.mxu0 %v1092_v48 }
  0x3d   :  { %631 = vmatprep.mubr.bf16.mxu1 %v1094_v49 }
  0x43   :  { %535 = vmatmul.mubr.bf16.gmra.mrb[16].mxu0 %v1096_v50 }
  0x44   :  { %632 = vmatmul.mubr.bf16.gmra.mrb[16].mxu1 %v1097_v51  ;;  %542 = vmatprep.mubr.bf16.mxu0 %v1098_v52 }
  0x45   :  { %639 = vmatprep.mubr.bf16.mxu1 %v1100_v53 }
  0x4b   :  { %543 = vmatmul.mubr.bf16.gmra.mrb[20].mxu0 %v1102_v54 }
  0x4c   :  { %640 = vmatmul.mubr.bf16.gmra.mrb[20].mxu1 %v1103_v55  ;;  %550 = vmatprep.mubr.bf16.mxu0 %v1104_v56 }
  0x4d   :  { %647 = vmatprep.mubr.bf16.mxu1 %v1106_v57 }
  0x53   :  { %551 = vmatmul.mubr.bf16.gmra.mrb[24].mxu0 %v1108_v58 }
  0x54   :  { %648 = vmatmul.mubr.bf16.gmra.mrb[24].mxu1 %v1109_v59  ;;  %558 = vmatprep.mubr.bf16.mxu0 %v1110_v60 }
  0x55   :  { %655 = vmatprep.mubr.bf16.mxu1 %v1112_v61 }
  0x5b   :  { %559 = vmatmul.mubr.bf16.gmra.mrb[28].mxu0 %v1114_v62 }
  0x5c   :  { %656 = vmatmul.mubr.bf16.gmra.mrb[28].mxu1 %v1115_v63 }
  0xf6   :  { %v924_v0 = vpop.f32.mrb[0].mxu0 }
  0xf7   :  { %v988_v1 = vpop.f32.mrb[0].mxu1  ;;  %v925_v3 = vpop.f32.mrb[1].mxu0 }
  0xf8   :  { %v926_v4 = vadd.f32 %v925_v3, %v924_v0  ;;  %v989_v5 = vpop.f32.mrb[1].mxu1  ;;  %v927_v6 = vpop.f32.mrb[2].mxu0 }
  0xf9   :  { %v990_v7 = vadd.f32 %v989_v5, %v988_v1  ;;  %v991_v8 = vpop.f32.mrb[2].mxu1  ;;  %v928_v9 = vpop.f32.mrb[3].mxu0 }
  0xfa   :  { %v505_v10 = vadd.f32 %v926_v4, %v1331_v2  ;;  %v929_v11 = vadd.f32 %v928_v9, %v927_v6  ;;  %v992_v12 = vpop.f32.mrb[3].mxu1 }
  0xfb   :  { %v993_v13 = vadd.f32 %v992_v12, %v991_v8 }
  0xfc   :  { %v602_v14 = vadd.f32 %v990_v7, %v505_v10  ;;  %v508_v15 = vadd.f32 %v929_v11, %v1331_v2 }
  0xfe   :  { %v605_v16 = vadd.f32 %v993_v13, %v508_v15  ;;  %v930_v17 = vpop.f32.mrb[4].mxu0  ;;  %v664_v20 = vmax.f32 %v602_v14, 0.0 }
  0xff   :  { %v994_v18 = vpop.f32.mrb[4].mxu1  ;;  %v931_v19 = vpop.f32.mrb[5].mxu0 }
 0x100   :  { %v665_v21 = vmax.f32 %v605_v16, 0.0  ;;  %v932_v22 = vadd.f32 %v931_v19, %v930_v17  ;;  %v995_v23 = vpop.f32.mrb[5].mxu1  ;;  %v933_v24 = vpop.f32.mrb[6].mxu0 }
 0x101   :  { %v996_v25 = vadd.f32 %v995_v23, %v994_v18  ;;  %v997_v26 = vpop.f32.mrb[6].mxu1  ;;  %v934_v27 = vpop.f32.mrb[7].mxu0 }
 0x102   :  { %v864_v28 = vpack.c.bf16 %v665_v21, %v664_v20  ;;  %v513_v29 = vadd.f32 %v932_v22, %v1331_v2  ;;  %v935_v30 = vadd.f32 %v934_v27, %v933_v24  ;;  %v998_v31 = vpop.f32.mrb[7].mxu1 }
 0x103   :  { %v999_v32 = vadd.f32 %v998_v31, %v997_v26 }
 0x104   :  { %865 = vst [vmem:[%s1376_s3] sm:$0xff] %v864_v28   ;;  %v610_v33 = vadd.f32 %v996_v25, %v513_v29  ;;  %v516_v34 = vadd.f32 %v935_v30, %v1331_v2 }
 0x106   :  { %v613_v35 = vadd.f32 %v999_v32, %v516_v34  ;;  %v936_v36 = vpop.f32.mrb[8].mxu0  ;;  %v666_v39 = vmax.f32 %v610_v33, 0.0 }
 0x107   :  { %v1000_v37 = vpop.f32.mrb[8].mxu1  ;;  %v937_v38 = vpop.f32.mrb[9].mxu0 }
 0x108   :  { %v667_v40 = vmax.f32 %v613_v35, 0.0  ;;  %v938_v41 = vadd.f32 %v937_v38, %v936_v36  ;;  %v1001_v42 = vpop.f32.mrb[9].mxu1  ;;  %v939_v43 = vpop.f32.mrb[10].mxu0 }
 0x109   :  { %v1002_v44 = vadd.f32 %v1001_v42, %v1000_v37  ;;  %v1003_v45 = vpop.f32.mrb[10].mxu1  ;;  %v940_v46 = vpop.f32.mrb[11].mxu0 }
 0x10a   :  { %v869_v47 = vpack.c.bf16 %v667_v40, %v666_v39  ;;  %v521_v48 = vadd.f32 %v938_v41, %v1331_v2  ;;  %v941_v49 = vadd.f32 %v940_v46, %v939_v43  ;;  %v1004_v50 = vpop.f32.mrb[11].mxu1 }
 0x10b   :  { %v1005_v51 = vadd.f32 %v1004_v50, %v1003_v45 }
 0x10c   :  { %901 = vst [vmem:[%s1376_s3 + $0x8] sm:$0xff] %v869_v47   ;;  %v618_v52 = vadd.f32 %v1002_v44, %v521_v48  ;;  %v524_v53 = vadd.f32 %v941_v49, %v1331_v2 }
 0x10e   :  { %v621_v54 = vadd.f32 %v1005_v51, %v524_v53  ;;  %v942_v55 = vpop.f32.mrb[12].mxu0  ;;  %v668_v58 = vmax.f32 %v618_v52, 0.0 }
 0x10f   :  { %v1006_v56 = vpop.f32.mrb[12].mxu1  ;;  %v943_v57 = vpop.f32.mrb[13].mxu0 }
 0x110   :  { %v669_v59 = vmax.f32 %v621_v54, 0.0  ;;  %v944_v60 = vadd.f32 %v943_v57, %v942_v55  ;;  %v1007_v61 = vpop.f32.mrb[13].mxu1  ;;  %v945_v62 = vpop.f32.mrb[14].mxu0 }
 0x111   :  { %v1008_v63 = vadd.f32 %v1007_v61, %v1006_v56  ;;  %v1009_v0 = vpop.f32.mrb[14].mxu1  ;;  %v946_v1 = vpop.f32.mrb[15].mxu0 }
 0x112   :  { %v874_v3 = vpack.c.bf16 %v669_v59, %v668_v58  ;;  %v529_v4 = vadd.f32 %v944_v60, %v1331_v2  ;;  %v947_v5 = vadd.f32 %v946_v1, %v945_v62  ;;  %v1010_v6 = vpop.f32.mrb[15].mxu1 }
 0x113   :  { %v1011_v7 = vadd.f32 %v1010_v6, %v1009_v0 }
 0x114   :  { %902 = vst [vmem:[%s1376_s3 + $0x10] sm:$0xff] %v874_v3   ;;  %v626_v8 = vadd.f32 %v1008_v63, %v529_v4  ;;  %v532_v9 = vadd.f32 %v947_v5, %v1331_v2 }
 0x116   :  { %v629_v10 = vadd.f32 %v1011_v7, %v532_v9  ;;  %v948_v11 = vpop.f32.mrb[16].mxu0  ;;  %v670_v14 = vmax.f32 %v626_v8, 0.0 }
 0x117   :  { %v1012_v12 = vpop.f32.mrb[16].mxu1  ;;  %v949_v13 = vpop.f32.mrb[17].mxu0 }
 0x118   :  { %v671_v15 = vmax.f32 %v629_v10, 0.0  ;;  %v950_v16 = vadd.f32 %v949_v13, %v948_v11  ;;  %v1013_v17 = vpop.f32.mrb[17].mxu1  ;;  %v951_v18 = vpop.f32.mrb[18].mxu0 }
 0x119   :  { %v1014_v19 = vadd.f32 %v1013_v17, %v1012_v12  ;;  %v1015_v20 = vpop.f32.mrb[18].mxu1  ;;  %v952_v21 = vpop.f32.mrb[19].mxu0 }
 0x11a   :  { %v879_v22 = vpack.c.bf16 %v671_v15, %v670_v14  ;;  %v537_v23 = vadd.f32 %v950_v16, %v1331_v2  ;;  %v953_v24 = vadd.f32 %v952_v21, %v951_v18  ;;  %v1016_v25 = vpop.f32.mrb[19].mxu1 }
 0x11b   :  { %v1017_v26 = vadd.f32 %v1016_v25, %v1015_v20 }
 0x11c   :  { %903 = vst [vmem:[%s1376_s3 + $0x18] sm:$0xff] %v879_v22   ;;  %v634_v27 = vadd.f32 %v1014_v19, %v537_v23  ;;  %v540_v28 = vadd.f32 %v953_v24, %v1331_v2 }
 0x11e   :  { %v637_v29 = vadd.f32 %v1017_v26, %v540_v28  ;;  %v954_v30 = vpop.f32.mrb[20].mxu0  ;;  %v672_v33 = vmax.f32 %v634_v27, 0.0 }
 0x11f   :  { %v1018_v31 = vpop.f32.mrb[20].mxu1  ;;  %v955_v32 = vpop.f32.mrb[21].mxu0 }
 0x120   :  { %v673_v34 = vmax.f32 %v637_v29, 0.0  ;;  %v956_v35 = vadd.f32 %v955_v32, %v954_v30  ;;  %v1019_v36 = vpop.f32.mrb[21].mxu1  ;;  %v957_v37 = vpop.f32.mrb[22].mxu0 }
 0x121   :  { %v1020_v38 = vadd.f32 %v1019_v36, %v1018_v31  ;;  %v1021_v39 = vpop.f32.mrb[22].mxu1  ;;  %v958_v40 = vpop.f32.mrb[23].mxu0 }
 0x122   :  { %v884_v41 = vpack.c.bf16 %v673_v34, %v672_v33  ;;  %v545_v42 = vadd.f32 %v956_v35, %v1331_v2  ;;  %v959_v43 = vadd.f32 %v958_v40, %v957_v37  ;;  %v1022_v44 = vpop.f32.mrb[23].mxu1 }
 0x123   :  { %v1023_v45 = vadd.f32 %v1022_v44, %v1021_v39 }
 0x124   :  { %904 = vst [vmem:[%s1376_s3 + $0x20] sm:$0xff] %v884_v41   ;;  %v642_v46 = vadd.f32 %v1020_v38, %v545_v42  ;;  %v548_v47 = vadd.f32 %v959_v43, %v1331_v2 }
 0x126   :  { %v645_v48 = vadd.f32 %v1023_v45, %v548_v47  ;;  %v960_v49 = vpop.f32.mrb[24].mxu0  ;;  %v674_v52 = vmax.f32 %v642_v46, 0.0 }
 0x127   :  { %v1024_v50 = vpop.f32.mrb[24].mxu1  ;;  %v961_v51 = vpop.f32.mrb[25].mxu0 }
 0x128   :  { %v675_v53 = vmax.f32 %v645_v48, 0.0  ;;  %v962_v54 = vadd.f32 %v961_v51, %v960_v49  ;;  %v1025_v55 = vpop.f32.mrb[25].mxu1  ;;  %v963_v56 = vpop.f32.mrb[26].mxu0 }
 0x129   :  { %v1026_v57 = vadd.f32 %v1025_v55, %v1024_v50  ;;  %v1027_v58 = vpop.f32.mrb[26].mxu1  ;;  %v964_v59 = vpop.f32.mrb[27].mxu0 }
 0x12a   :  { %v889_v60 = vpack.c.bf16 %v675_v53, %v674_v52  ;;  %v553_v61 = vadd.f32 %v962_v54, %v1331_v2  ;;  %v965_v62 = vadd.f32 %v964_v59, %v963_v56  ;;  %v1028_v63 = vpop.f32.mrb[27].mxu1 }
 0x12b   :  { %v1029_v0 = vadd.f32 %v1028_v63, %v1027_v58 }
 0x12c   :  { %905 = vst [vmem:[%s1376_s3 + $0x28] sm:$0xff] %v889_v60   ;;  %v650_v1 = vadd.f32 %v1026_v57, %v553_v61  ;;  %v556_v3 = vadd.f32 %v965_v62, %v1331_v2 }
 0x12e   :  { %v653_v4 = vadd.f32 %v1029_v0, %v556_v3  ;;  %v966_v5 = vpop.f32.mrb[28].mxu0  ;;  %v676_v8 = vmax.f32 %v650_v1, 0.0 }
 0x12f   :  { %v1030_v6 = vpop.f32.mrb[28].mxu1  ;;  %v967_v7 = vpop.f32.mrb[29].mxu0 }
 0x130   :  { %v677_v9 = vmax.f32 %v653_v4, 0.0  ;;  %v968_v10 = vadd.f32 %v967_v7, %v966_v5  ;;  %v1031_v11 = vpop.f32.mrb[29].mxu1  ;;  %v969_v12 = vpop.f32.mrb[30].mxu0 }
 0x131   :  { %v1032_v13 = vadd.f32 %v1031_v11, %v1030_v6  ;;  %v1033_v14 = vpop.f32.mrb[30].mxu1  ;;  %v970_v15 = vpop.f32.mrb[31].mxu0 }
 0x132   :  { %v894_v16 = vpack.c.bf16 %v677_v9, %v676_v8  ;;  %v561_v17 = vadd.f32 %v968_v10, %v1331_v2  ;;  %v971_v18 = vadd.f32 %v970_v15, %v969_v12  ;;  %v1034_v19 = vpop.f32.mrb[31].mxu1 }
 0x133   :  { %v1035_v20 = vadd.f32 %v1034_v19, %v1033_v14 }
 0x134   :  { %906 = vst [vmem:[%s1376_s3 + $0x30] sm:$0xff] %v894_v16   ;;  %v658_v21 = vadd.f32 %v1032_v13, %v561_v17  ;;  %v564_v22 = vadd.f32 %v971_v18, %v1331_v2 }
 0x136   :  { %v661_v23 = vadd.f32 %v1035_v20, %v564_v22  ;;  %v678_v24 = vmax.f32 %v658_v21, 0.0 }
 0x138   :  { %v679_v25 = vmax.f32 %v661_v23, 0.0 }
 0x13a   :  { %v899_v26 = vpack.c.bf16 %v679_v25, %v678_v24 }
 0x13c   :  { %907 = vst [vmem:[%s1376_s3 + $0x38] sm:$0xff] %v899_v26  }

// kernel: value_forward.6
= control target key start
LH: loop header
LB: loop body
LE: loop exit
PB: predicated region body
PF: predicated region fallthrough
CT: control target
= control target key end

     0   :  { %v1061_v34 = vmov 0.0   ;;  %vm1062_vm0 = vmmov 0   ;;  %vm454_vm1 = vcmask 523264   ;;  %s1320_s1 = inlined_call_operand.vmem [shape: bf16[576,128], index: 1, kind: input, shape index: {}]   ;;  %s1321_s0 = inlined_call_operand.vmem [shape: bf16[72,576], index: 0, kind: input, shape index: {}]   ;;  %s1322_s2 = inlined_call_operand.vmem [shape: f32[1,128], index: 2, kind: input, shape index: {}]   ;;  %s1323_s3 = inlined_call_operand.vmem [shape: bf16[72,128], index: 3, kind: output, shape index: {}]  }
   0x1   :  { %v992_v0 = vld [vmem:[%s1320_s1 + $0x40] sm:$0xff]   ;;  %v996_v4 = vld [vmem:[%s1320_s1 + $0x48] sm:$0xff]   ;;  %v1000_v8 = vld [vmem:[%s1320_s1 + $0x50] sm:$0xff]  }
   0x2   :  { %v993_v1 = vld [vmem:[%s1320_s1 + $0xc0] sm:$0xff]   ;;  %853 = vmatprep.subr.bf16.mxu0 %v992_v0  ;;  %v997_v5 = vld [vmem:[%s1320_s1 + $0xc8] sm:$0xff]   ;;  %v1001_v9 = vld [vmem:[%s1320_s1 + $0xd0] sm:$0xff]  }
   0x3   :  { %v994_v2 = vld [vmem:[%s1320_s1] sm:$0xff]   ;;  %899 = vmatprep.subr.bf16.mxu1 %v993_v1  ;;  %v998_v6 = vld [vmem:[%s1320_s1 + $0x8] sm:$0xff]   ;;  %v1002_v10 = vld [vmem:[%s1320_s1 + $0x10] sm:$0xff]  }
   0x4   :  { %v995_v3 = vld [vmem:[%s1320_s1 + $0x80] sm:$0xff]   ;;  %854 = vmatpush3.bf16.msra.mxu0 %v994_v2  ;;  %v999_v7 = vld [vmem:[%s1320_s1 + $0x88] sm:$0xff]   ;;  %v1003_v11 = vld [vmem:[%s1320_s1 + $0x90] sm:$0xff]  }
   0x5   :  { %900 = vmatpush3.bf16.msra.mxu1 %v995_v3  ;;  %855 = vmatprep.subr.bf16.mxu0 %v996_v4  ;;  %v1004_v12 = vld [vmem:[%s1320_s1 + $0x58] sm:$0xff]   ;;  %v1008_v16 = vld [vmem:[%s1320_s1 + $0x60] sm:$0xff]   ;;  %v1012_v20 = vld [vmem:[%s1320_s1 + $0x68] sm:$0xff]  }
   0x6   :  { %901 = vmatprep.subr.bf16.mxu1 %v997_v5  ;;  %v1005_v13 = vld [vmem:[%s1320_s1 + $0xd8] sm:$0xff]   ;;  %v1009_v17 = vld [vmem:[%s1320_s1 + $0xe0] sm:$0xff]   ;;  %v1013_v21 = vld [vmem:[%s1320_s1 + $0xe8] sm:$0xff]  }
   0x7   :  { %v1006_v14 = vld [vmem:[%s1320_s1 + $0x18] sm:$0xff]   ;;  %v1010_v18 = vld [vmem:[%s1320_s1 + $0x20] sm:$0xff]   ;;  %v1014_v22 = vld [vmem:[%s1320_s1 + $0x28] sm:$0xff]  }
   0x8   :  { %856 = vmatpush3.bf16.msra.mxu0 %v998_v6  ;;  %v1007_v15 = vld [vmem:[%s1320_s1 + $0x98] sm:$0xff]   ;;  %v1011_v19 = vld [vmem:[%s1320_s1 + $0xa0] sm:$0xff]   ;;  %v1015_v23 = vld [vmem:[%s1320_s1 + $0xa8] sm:$0xff]  }
   0x9   :  { %902 = vmatpush3.bf16.msra.mxu1 %v999_v7  ;;  %857 = vmatprep.subr.bf16.mxu0 %v1000_v8  ;;  %v1016_v24 = vld [vmem:[%s1320_s1 + $0x70] sm:$0xff]   ;;  %v1020_v28 = vld [vmem:[%s1320_s1 + $0x78] sm:$0xff]   ;;  %v1029_v36 = vld [vmem:[%s1321_s0 + $0xc] ss:$20 sps:$4 sm:$0xff]  }
   0xa   :  { %903 = vmatprep.subr.bf16.mxu1 %v1001_v9  ;;  %v1017_v25 = vld [vmem:[%s1320_s1 + $0xf0] sm:$0xff]   ;;  %v1021_v29 = vld [vmem:[%s1320_s1 + $0xf8] sm:$0xff]   ;;  %v1030_v37 = vld [vmem:[%s1320_s1 + $0x100] sm:$0xff]   ;;  %574 = vmatprep.mubr.bf16.mxu1 %v1029_v36 }
   0xb   :  { %v1018_v26 = vld [vmem:[%s1320_s1 + $0x30] sm:$0xff]   ;;  %v1022_v30 = vld [vmem:[%s1320_s1 + $0x38] sm:$0xff]   ;;  %v1031_v38 = vld [vmem:[%s1321_s0 + $0x2c] ss:$20 sps:$4 sm:$0xff]  }
   0xc   :  { %858 = vmatpush3.bf16.msra.mxu0 %v1002_v10  ;;  %v1019_v27 = vld [vmem:[%s1320_s1 + $0xb0] sm:$0xff]   ;;  %v1023_v31 = vld [vmem:[%s1320_s1 + $0xb8] sm:$0xff]   ;;  %v1037_v40 = vld [vmem:[%s1320_s1 + $0x108] sm:$0xff]  }
   0xd   :  { %904 = vmatpush3.bf16.msra.mxu1 %v1003_v11  ;;  %859 = vmatprep.subr.bf16.mxu0 %v1004_v12  ;;  %v1024_v32 = vld [vmem:[%s1321_s0] ss:$20 sps:$4 sm:$0xff]   ;;  %v1026_v33 = vld [vmem:[%s1321_s0 + $0x4] ss:$20 sps:$4 sm:$0xff]   ;;  %v1027_v35 = vld [vmem:[%s1321_s0 + $0x8] ss:$20 sps:$4 sm:$0xff]  }
   0xe   :  { %905 = vmatprep.subr.bf16.mxu1 %v1005_v13  ;;  %502 = vmatprep.mubr.bf16.mxu0 %v1026_v33  ;;  %v1033_v39 = vld [vmem:[%s1321_s0 + $0x34] ss:$20 sps:$4 sm:$0xff]   ;;  %v1036_v42 = vld [vmem:[%s1321_s0 + $0x30] ss:$20 sps:$4 sm:$0xff]   ;;  %v1053_v47 = vld [vmem:[%s1320_s1 + $0x118] sm:$0xff]  }
   0xf   :  { %v1035_v41 = vld [vmem:[%s1321_s0 + $0x28] ss:$20 sps:$4 sm:$0xff]   ;;  %v1044_v45 = vld [vmem:[%s1320_s1 + $0x110] sm:$0xff]   ;;  %v1043_v48 = vld [vmem:[%s1321_s0 + $0x58] ss:$20 sps:$4 sm:$0xff]  }
  0x10   :  { %860 = vmatpush3.bf16.msra.mxu0 %v1006_v14  ;;  %v1038_v43 = vld [vmem:[%s1321_s0 + $0x54] ss:$20 sps:$4 sm:$0xff]   ;;  %v1040_v44 = vld [vmem:[%s1321_s0 + $0x5c] ss:$20 sps:$4 sm:$0xff]   ;;  %v1047_v50 = vld [vmem:[%s1321_s0 + $0x84] ss:$20 sps:$4 sm:$0xff]  }
  0x11   :  { %906 = vmatpush3.bf16.msra.mxu1 %v1007_v15  ;;  %861 = vmatprep.subr.bf16.mxu0 %v1008_v16  ;;  %v1042_v46 = vld [vmem:[%s1321_s0 + $0x50] ss:$20 sps:$4 sm:$0xff]   ;;  %v40_v52 = vld [vmem:[%s1321_s0 + $0xa8] sm:$0xff]  ;;  %v1050_v54 = vld [vmem:[%s1321_s0 + $0x80] ss:$20 sps:$4 sm:$0xff]  }
  0x12   :  { %907 = vmatprep.subr.bf16.mxu1 %v1009_v17  ;;  %v1045_v49 = vld [vmem:[%s1321_s0 + $0x7c] ss:$20 sps:$4 sm:$0xff]   ;;  %v39_v51 = vld [vmem:[%s1321_s0 + $0xa0] sm:$0xff]  ;;  %v1049_v53 = vld [vmem:[%s1321_s0 + $0x78] ss:$20 sps:$4 sm:$0xff]   ;;  %v769_v56 = vcombine.high %v40_v52, %v40_v52  ;;  %v768_v58 = vcombine.low %v40_v52, %v40_v52 }
  0x13   :  { %v767_v55 = vcombine.high %v39_v51, %v39_v51  ;;  %v766_v57 = vcombine.low %v39_v51, %v39_v51  ;;  %v1056_v59 = vld [vmem:[%s1321_s0 + $0x10] ss:$20 sps:$4 sm:$0xff]   ;;  %v1057_v60 = vld [vmem:[%s1321_s0 + $0x88] ss:$20 sps:$4 sm:$0xff]   ;;  %v1058_v61 = vld [vmem:[%s1321_s0 + $0x38] ss:$20 sps:$4 sm:$0xff]  }
  0x14   :  { %862 = vmatpush3.bf16.msra.mxu0 %v1010_v18  ;;  %v1059_v62 = vld [vmem:[%s1321_s0 + $0xb0] ss:$0 sps:$4 sm:$0xff]   ;;  %v1060_v63 = vld [vmem:[%s1321_s0 + $0x60] ss:$20 sps:$4 sm:$0xff]  }
  0x15   :  { %908 = vmatpush3.bf16.msra.mxu1 %v1011_v19  ;;  %863 = vmatprep.subr.bf16.mxu0 %v1012_v20  ;;  %v1276_v1 = vld [vmem:[%s1322_s2] ss:$0 sm:$0xff] }
  0x16   :  { %909 = vmatprep.subr.bf16.mxu1 %v1013_v21 }
  0x18   :  { %864 = vmatpush3.bf16.msra.mxu0 %v1014_v22 }
  0x19   :  { %910 = vmatpush3.bf16.msra.mxu1 %v1015_v23  ;;  %865 = vmatprep.subr.bf16.mxu0 %v1016_v24 }
  0x1a   :  { %911 = vmatprep.subr.bf16.mxu1 %v1017_v25 }
  0x1c   :  { %866 = vmatpush3.bf16.msra.mxu0 %v1018_v26 }
  0x1d   :  { %912 = vmatpush3.bf16.msra.mxu1 %v1019_v27  ;;  %867 = vmatprep.subr.bf16.mxu0 %v1020_v28 }
  0x1e   :  { %913 = vmatprep.subr.bf16.mxu1 %v1021_v29 }
  0x20   :  { %868 = vmatpush3.bf16.msra.mxu0 %v1022_v30 }
  0x21   :  { %914 = vmatpush3.bf16.msra.mxu1 %v1023_v31  ;;  %954 = vmatprep.subr.bf16.mxu0 %v1061_v34 }
  0x22   :  { %982 = vmatprep.subr.bf16.mxu1 %v1061_v34 }
  0x23   :  { %503 = vmatmul.mubr.bf16.vlgmr.msra.gmra.mrb[0].mxu0 %v1024_v32 }
  0x24   :  { %575 = vmatmul.mubr.bf16.vlgmr.msra.gmra.mrb[0].mxu1 %v1027_v35  ;;  %955 = vmatpush3.bf16.msra.mxu0 %v1030_v37 }
  0x25   :  { %510 = vmatprep.mubr.bf16.mxu0 %v1031_v38  ;;  %956 = vmatprep.subr.bf16.mxu0 %v1061_v34 }
  0x26   :  { %582 = vmatprep.mubr.bf16.mxu1 %v1033_v39  ;;  %986 = vmatpush3.bf16.msra.mxu1 %v1030_v37 }
  0x27   :  { %983 = vmatprep.subr.bf16.mxu1 %v1061_v34 }
  0x28   :  { %957 = vmatpush3.bf16.msra.mxu0 %v1037_v40 }
  0x29   :  { %958 = vmatprep.subr.bf16.mxu0 %v1061_v34 }
  0x2a   :  { %987 = vmatpush3.bf16.msra.mxu1 %v1037_v40 }
  0x2b   :  { %511 = vmatmul.mubr.bf16.gmra.mrb[4].mxu0 %v1035_v41  ;;  %984 = vmatprep.subr.bf16.mxu1 %v1061_v34 }
  0x2c   :  { %583 = vmatmul.mubr.bf16.gmra.mrb[4].mxu1 %v1036_v42  ;;  %518 = vmatprep.mubr.bf16.mxu0 %v1038_v43 }
  0x2d   :  { %590 = vmatprep.mubr.bf16.mxu1 %v1040_v44  ;;  %959 = vmatpush3.bf16.msra.mxu0 %v1044_v45 }
  0x2e   :  { %960 = vmatprep.subr.bf16.mxu0 %v1061_v34  ;;  %988 = vmatpush3.bf16.msra.mxu1 %v1044_v45 }
  0x2f   :  { %985 = vmatprep.subr.bf16.mxu1 %v1061_v34 }
  0x31   :  { %961 = vmatpush3.bf16.msra.mxu0 %v1053_v47 }
  0x32   :  { %989 = vmatpush3.bf16.msra.mxu1 %v1053_v47 }
  0x33   :  { %519 = vmatmul.mubr.bf16.gmra.mrb[8].mxu0 %v1042_v46 }
  0x34   :  { %591 = vmatmul.mubr.bf16.gmra.mrb[8].mxu1 %v1043_v48  ;;  %526 = vmatprep.mubr.bf16.mxu0 %v1045_v49 }
  0x35   :  { %598 = vmatprep.mubr.bf16.mxu1 %v1047_v50 }
  0x3b   :  { %527 = vmatmul.mubr.bf16.gmra.mrb[12].mxu0 %v1049_v53 }
  0x3c   :  { %599 = vmatmul.mubr.bf16.gmra.mrb[12].mxu1 %v1050_v54  ;;  %534 = vmatprep.mubr.bf16.mxu0 %v767_v55 }
  0x3d   :  { %606 = vmatprep.mubr.bf16.mxu1 %v769_v56 }
  0x43   :  { %535 = vmatmul.mubr.bf16.gmra.mrb[16].mxu0 %v766_v57 }
  0x44   :  { %607 = vmatmul.mubr.bf16.gmra.mrb[16].mxu1 %v768_v58  ;;  %962 = vmatprep.mubr.msk.bf16.mxu0 %vm1062_vm0, %v1061_v34 }
  0x45   :  { %974 = vmatprep.mubr.msk.bf16.mxu1 %vm1062_vm0, %v1061_v34 }
  0x4b   :  { %963 = vmatmul.mubr.msk.bf16.vlgmr.msra.gmra.mrb[20].mxu0 %vm454_vm1, %v1056_v59 }
  0x4c   :  { %975 = vmatmul.mubr.msk.bf16.vlgmr.msra.gmra.mrb[20].mxu1 %vm454_vm1, %v1057_v60  ;;  %966 = vmatprep.mubr.msk.bf16.mxu0 %vm1062_vm0, %v1061_v34 }
  0x4d   :  { %978 = vmatprep.mubr.msk.bf16.mxu1 %vm1062_vm0, %v1061_v34 }
  0x53   :  { %967 = vmatmul.mubr.msk.bf16.gmra.mrb[24].mxu0 %vm454_vm1, %v1058_v61 }
  0x54   :  { %979 = vmatmul.mubr.msk.bf16.gmra.mrb[24].mxu1 %vm454_vm1, %v1059_v62  ;;  %970 = vmatprep.mubr.msk.bf16.mxu0 %vm1062_vm0, %v1061_v34 }
  0x5b   :  { %971 = vmatmul.mubr.msk.bf16.gmra.mrb[28].mxu0 %vm454_vm1, %v1060_v63 }
  0xf6   :  { %v869_v0 = vpop.f32.mrb[0].mxu0 }
  0xf7   :  { %v870_v2 = vpop.f32.mrb[1].mxu0  ;;  %v915_v3 = vpop.f32.mrb[0].mxu1 }
  0xf8   :  { %v871_v4 = vadd.f32 %v870_v2, %v869_v0  ;;  %v872_v5 = vpop.f32.mrb[2].mxu0  ;;  %v916_v6 = vpop.f32.mrb[1].mxu1 }
  0xf9   :  { %v873_v7 = vpop.f32.mrb[3].mxu0  ;;  %v917_v8 = vadd.f32 %v916_v6, %v915_v3  ;;  %v918_v9 = vpop.f32.mrb[2].mxu1 }
  0xfa   :  { %v505_v10 = vadd.f32 %v871_v4, %v1276_v1  ;;  %v874_v11 = vadd.f32 %v873_v7, %v872_v5  ;;  %v919_v12 = vpop.f32.mrb[3].mxu1 }
  0xfb   :  { %v920_v13 = vadd.f32 %v919_v12, %v918_v9 }
  0xfc   :  { %v508_v14 = vadd.f32 %v874_v11, %v1276_v1  ;;  %v1280_v15 = vadd.f32 %v917_v8, %v505_v10 }
  0xfe   :  { %v875_v16 = vpop.f32.mrb[4].mxu0  ;;  %v1282_v17 = vadd.f32 %v920_v13, %v508_v14 }
  0xff   :  { %v876_v18 = vpop.f32.mrb[5].mxu0  ;;  %v921_v19 = vpop.f32.mrb[4].mxu1 }
 0x100   :  { %v877_v20 = vadd.f32 %v876_v18, %v875_v16  ;;  %v878_v21 = vpop.f32.mrb[6].mxu0  ;;  %v922_v22 = vpop.f32.mrb[5].mxu1 }
 0x101   :  { %v879_v23 = vpop.f32.mrb[7].mxu0  ;;  %v923_v24 = vadd.f32 %v922_v22, %v921_v19  ;;  %v924_v25 = vpop.f32.mrb[6].mxu1 }
 0x102   :  { %v513_v26 = vadd.f32 %v877_v20, %v1276_v1  ;;  %v880_v27 = vadd.f32 %v879_v23, %v878_v21  ;;  %v925_v28 = vpop.f32.mrb[7].mxu1 }
 0x103   :  { %v926_v29 = vadd.f32 %v925_v28, %v924_v25 }
 0x104   :  { %v516_v30 = vadd.f32 %v880_v27, %v1276_v1  ;;  %v1286_v31 = vadd.f32 %v923_v24, %v513_v26 }
 0x106   :  { %v881_v32 = vpop.f32.mrb[8].mxu0  ;;  %v1288_v33 = vadd.f32 %v926_v29, %v516_v30 }
 0x107   :  { %v882_v34 = vpop.f32.mrb[9].mxu0  ;;  %v927_v35 = vpop.f32.mrb[8].mxu1 }
 0x108   :  { %v883_v36 = vadd.f32 %v882_v34, %v881_v32  ;;  %v884_v37 = vpop.f32.mrb[10].mxu0  ;;  %v928_v38 = vpop.f32.mrb[9].mxu1 }
 0x109   :  { %v885_v39 = vpop.f32.mrb[11].mxu0  ;;  %v929_v40 = vadd.f32 %v928_v38, %v927_v35  ;;  %v930_v41 = vpop.f32.mrb[10].mxu1 }
 0x10a   :  { %v521_v42 = vadd.f32 %v883_v36, %v1276_v1  ;;  %v886_v43 = vadd.f32 %v885_v39, %v884_v37  ;;  %v931_v44 = vpop.f32.mrb[11].mxu1 }
 0x10b   :  { %v932_v45 = vadd.f32 %v931_v44, %v930_v41 }
 0x10c   :  { %v524_v46 = vadd.f32 %v886_v43, %v1276_v1  ;;  %v1292_v47 = vadd.f32 %v929_v40, %v521_v42 }
 0x10e   :  { %v887_v48 = vpop.f32.mrb[12].mxu0  ;;  %v1294_v49 = vadd.f32 %v932_v45, %v524_v46 }
 0x10f   :  { %v888_v50 = vpop.f32.mrb[13].mxu0  ;;  %v933_v51 = vpop.f32.mrb[12].mxu1 }
 0x110   :  { %v889_v52 = vadd.f32 %v888_v50, %v887_v48  ;;  %v890_v53 = vpop.f32.mrb[14].mxu0  ;;  %v934_v54 = vpop.f32.mrb[13].mxu1 }
 0x111   :  { %v891_v55 = vpop.f32.mrb[15].mxu0  ;;  %v935_v56 = vadd.f32 %v934_v54, %v933_v51  ;;  %v936_v57 = vpop.f32.mrb[14].mxu1 }
 0x112   :  { %v529_v58 = vadd.f32 %v889_v52, %v1276_v1  ;;  %v892_v59 = vadd.f32 %v891_v55, %v890_v53  ;;  %v937_v60 = vpop.f32.mrb[15].mxu1 }
 0x113   :  { %v938_v61 = vadd.f32 %v937_v60, %v936_v57 }
 0x114   :  { %v532_v62 = vadd.f32 %v892_v59, %v1276_v1  ;;  %v601_v63 = vadd.f32 %v935_v56, %v529_v58 }
 0x116   :  { %v893_v0 = vpop.f32.mrb[16].mxu0  ;;  %v604_v2 = vadd.f32 %v938_v61, %v532_v62 }
 0x117   :  { %v894_v3 = vpop.f32.mrb[17].mxu0  ;;  %v939_v4 = vpop.f32.mrb[16].mxu1 }
 0x118   :  { %v895_v5 = vadd.f32 %v894_v3, %v893_v0  ;;  %v896_v6 = vpop.f32.mrb[18].mxu0  ;;  %v940_v7 = vpop.f32.mrb[17].mxu1 }
 0x119   :  { %v897_v8 = vpop.f32.mrb[19].mxu0  ;;  %v941_v9 = vadd.f32 %v940_v7, %v939_v4  ;;  %v942_v10 = vpop.f32.mrb[18].mxu1 }
 0x11a   :  { %v537_v11 = vadd.f32 %v895_v5, %v1276_v1  ;;  %v943_v12 = vpop.f32.mrb[19].mxu1 }
 0x11c   :  { %v609_v13 = vadd.f32 %v941_v9, %v537_v11 }
 0x11e   :  { %v648_v14 = vpop.f32.mrb[20].mxu0 }
 0x11f   :  { %v649_v16 = vadd.f32 %v648_v14, %v1280_v15  ;;  %v672_v18 = vpop.f32.mrb[20].mxu1  ;;  %v964_v19 = vpop.f32.mrb[21].mxu0 }
 0x120   :  { %v673_v20 = vadd.f32 %v672_v18, %v601_v63  ;;  %v976_v21 = vpop.f32.mrb[21].mxu1  ;;  %v651_v22 = vpop.f32.mrb[22].mxu0 }
 0x121   :  { %v652_v23 = vadd.f32 %v651_v22, %v1282_v17  ;;  %v675_v24 = vpop.f32.mrb[22].mxu1  ;;  %v965_v25 = vpop.f32.mrb[23].mxu0  ;;  %v686_v28 = vmax.f32 %v649_v16, 0.0 }
 0x122   :  { %v676_v26 = vadd.f32 %v675_v24, %v604_v2  ;;  %v977_v27 = vpop.f32.mrb[23].mxu1  ;;  %v692_v30 = vmax.f32 %v673_v20, 0.0 }
 0x123   :  { %v687_v29 = vmax.f32 %v652_v23, 0.0 }
 0x124   :  { %v693_v1 = vmax.f32 %v676_v26, 0.0 }
 0x125   :  { %v833_v32 = vpack.c.bf16 %v687_v29, %v686_v28 }
 0x126   :  { %v848_v34 = vpack.c.bf16 %v693_v1, %v692_v30  ;;  %v656_v35 = vpop.f32.mrb[24].mxu0 }
 0x127   :  { %834 = vst [vmem:[%s1323_s3] sm:$0xff] %v833_v32   ;;  %v657_v15 = vadd.f32 %v656_v35, %v1286_v31  ;;  %v680_v36 = vpop.f32.mrb[24].mxu1  ;;  %v968_v37 = vpop.f32.mrb[25].mxu0 }
 0x128   :  { %852 = vst [vmem:[%s1323_s3 + $0x18] sm:$0xff] %v848_v34   ;;  %v681_v17 = vadd.f32 %v680_v36, %v609_v13  ;;  %v659_v38 = vpop.f32.mrb[26].mxu0  ;;  %v980_v39 = vpop.f32.mrb[25].mxu1 }
 0x129   :  { %v660_v40 = vadd.f32 %v659_v38, %v1288_v33  ;;  %v969_v41 = vpop.f32.mrb[27].mxu0  ;;  %v683_v42 = vpop.f32.mrb[26].mxu1  ;;  %v688_v45 = vmax.f32 %v657_v15, 0.0 }
 0x12a   :  { %v694_v43 = vmax.f32 %v681_v17, 0.0  ;;  %v981_v44 = vpop.f32.mrb[27].mxu1 }
 0x12b   :  { %v689_v46 = vmax.f32 %v660_v40, 0.0 }
 0x12c   :  { %v829_v48 = vpack.c.bf16 %v694_v43, %v694_v43 }
 0x12d   :  { %v838_v50 = vpack.c.bf16 %v689_v46, %v688_v45 }
 0x12e   :  { %740 = vst [vmem:[%s1323_s3 + $0x20] sm:$0xf] %v829_v48  ;;  %v664_v31 = vpop.f32.mrb[28].mxu0 }
 0x12f   :  { %850 = vst [vmem:[%s1323_s3 + $0x8] sm:$0xff] %v838_v50   ;;  %v665_v51 = vadd.f32 %v664_v31, %v1292_v47  ;;  %v972_v33 = vpop.f32.mrb[29].mxu0 }
 0x130   :  { %v667_v52 = vpop.f32.mrb[30].mxu0 }
 0x131   :  { %v668_v53 = vadd.f32 %v667_v52, %v1294_v49  ;;  %v973_v54 = vpop.f32.mrb[31].mxu0  ;;  %v690_v55 = vmax.f32 %v665_v51, 0.0 }
 0x133   :  { %v691_v56 = vmax.f32 %v668_v53, 0.0 }
 0x135   :  { %v843_v57 = vpack.c.bf16 %v691_v56, %v690_v55 }
 0x137   :  { %851 = vst [vmem:[%s1323_s3 + $0x10] sm:$0xff] %v843_v57  }

// kernel: value_forward.7
= control target key start
LH: loop header
LB: loop body
LE: loop exit
PB: predicated region body
PF: predicated region fallthrough
CT: control target
= control target key end

     0   :  { %v609_v7 = vlaneseq  ;;  %v7325_v8 = vmov 1966171168   ;;  %s9461_s0 = inlined_call_operand.vmem [shape: bf16[2,2304], index: 0, kind: input, shape index: {}]   ;;  %s9462_s1 = inlined_call_operand.vmem [shape: bf16[2304,384], index: 1, kind: input, shape index: {}]   ;;  %s9463_s2 = inlined_call_operand.vmem [shape: f32[1,384], index: 2, kind: input, shape index: {}]   ;;  %s9464_s3 = inlined_call_operand.vmem [shape: bf16[384,768], index: 3, kind: input, shape index: {}]   ;;  %s9465_s4 = inlined_call_operand.vmem [shape: f32[1,768], index: 4, kind: input, shape index: {}]   ;;  %s9466_s5 = inlined_call_operand.vmem [shape: bf16[768,128], index: 5, kind: input, shape index: {}]   ;;  %s9467_s6 = inlined_call_operand.vmem [shape: f32[1,128], index: 6, kind: input, shape index: {}]   ;;  %s9468_s7 = inlined_call_operand.hbm [shape: f32[2,128], index: 7, kind: output, shape index: {}]  }
   0x1   :  { %v6459_v0 = vld [vmem:[%s9462_s1 + $0x4] ss:$12 sps:$4 sm:$0xff]   ;;  %v6461_v1 = vld [vmem:[%s9462_s1] ss:$12 sps:$4 sm:$0xff]   ;;  %v6462_v2 = vld [vmem:[%s9462_s1 + $0x1c] ss:$12 sps:$4 sm:$0xff]   ;;  %v629_v9 = vunpack.c.l.s4 %v7325_v8 }
   0x2   :  { %3069 = vmatprep.subr.bf16.mxu0 %v6459_v0  ;;  %v6464_v3 = vld [vmem:[%s9462_s1 + $0x18] ss:$12 sps:$4 sm:$0xff]   ;;  %v6465_v4 = vld [vmem:[%s9462_s1 + $0x34] ss:$12 sps:$4 sm:$0xff]   ;;  %v6467_v5 = vld [vmem:[%s9462_s1 + $0x30] ss:$12 sps:$4 sm:$0xff]  }
   0x3   :  { %3070 = vmatpush1.bf16.msra.mxu0 %v6461_v1  ;;  %v6468_v6 = vld [vmem:[%s9462_s1 + $0x4c] ss:$12 sps:$4 sm:$0xff]   ;;  %v6470_v10 = vld [vmem:[%s9462_s1 + $0x48] ss:$12 sps:$4 sm:$0xff]   ;;  %v6471_v11 = vld [vmem:[%s9462_s1 + $0x64] ss:$12 sps:$4 sm:$0xff]   ;;  %v630_v13 = vunpack.c.0.s8 %v629_v9 }
   0x4   :  { %3071 = vmatprep.subr.bf16.mxu0 %v6462_v2  ;;  %v7397_v12 = vshrl.u32 %v609_v7, 7  ;;  %v6473_v14 = vld [vmem:[%s9462_s1 + $0x60] ss:$12 sps:$4 sm:$0xff]   ;;  %v6474_v15 = vld [vmem:[%s9462_s1 + $0x7c] ss:$12 sps:$4 sm:$0xff]  }
   0x5   :  { %v6476_v17 = vld [vmem:[%s9462_s1 + $0x78] ss:$12 sps:$4 sm:$0xff]   ;;  %v6477_v18 = vld [vmem:[%s9462_s1 + $0x94] ss:$12 sps:$4 sm:$0xff]   ;;  %v6479_v21 = vld [vmem:[%s9462_s1 + $0x90] ss:$12 sps:$4 sm:$0xff]  }
   0x6   :  { %v7406_v16 = vsub.s32 %v630_v13, %v7397_v12  ;;  %v7417_v19 = vld [vmem:[%s9461_s0] sm:$0xff]  ;;  %v6480_v22 = vld [vmem:[%s9462_s1 + $0xac] ss:$12 sps:$4 sm:$0xff]   ;;  %v6482_v24 = vld [vmem:[%s9462_s1 + $0xa8] ss:$12 sps:$4 sm:$0xff]  }
   0x7   :  { %3072 = vmatpush1.bf16.msra.mxu0 %v6464_v3  ;;  %v6519_v26 = vld [vmem:[%s9462_s1 + $0xc8] ss:$12 sps:$4 sm:$0xff]   ;;  %v6483_v27 = vld [vmem:[%s9462_s1 + $0xc4] ss:$12 sps:$4 sm:$0xff]   ;;  %v6485_v28 = vld [vmem:[%s9462_s1 + $0xc0] ss:$12 sps:$4 sm:$0xff]  }
   0x8   :  { %3073 = vmatprep.subr.bf16.mxu0 %v6465_v4  ;;  %v7421_v20 = vrot.slane %v7417_v19, %v7406_v16  ;;  %6136 = vmatprep.subr.bf16.mxu1 %v6519_v26  ;;  %v6523_v29 = vld [vmem:[%s9462_s1 + $0x8] ss:$12 sps:$4 sm:$0xff]   ;;  %v6524_v30 = vld [vmem:[%s9462_s1 + $0xe0] ss:$12 sps:$4 sm:$0xff]   ;;  %v6529_v33 = vld [vmem:[%s9462_s1 + $0xf8] ss:$12 sps:$4 sm:$0xff]  }
   0x9   :  { %v6486_v31 = vld [vmem:[%s9462_s1 + $0xdc] ss:$12 sps:$4 sm:$0xff]   ;;  %6137 = vmatpush3.bf16.msra.mxu1 %v6523_v29  ;;  %v6528_v32 = vld [vmem:[%s9462_s1 + $0x20] ss:$12 sps:$4 sm:$0xff]   ;;  %v6488_v34 = vld [vmem:[%s9462_s1 + $0xd8] ss:$12 sps:$4 sm:$0xff]  }
   0xa   :  { %v642_v23 = vcombine.high %v7421_v20, %v7421_v20  ;;  %6138 = vmatprep.subr.bf16.mxu1 %v6524_v30  ;;  %v6489_v35 = vld [vmem:[%s9462_s1 + $0xf4] ss:$12 sps:$4 sm:$0xff]   ;;  %v6533_v36 = vld [vmem:[%s9462_s1 + $0x38] ss:$12 sps:$4 sm:$0xff]   ;;  %v6534_v37 = vld [vmem:[%s9462_s1 + $0x110] ss:$12 sps:$4 sm:$0xff]   ;;  %v7546_v61 = vrot.slane %v7421_v20, %v7406_v16 }
   0xb   :  { %3074 = vmatpush1.bf16.msra.mxu0 %v6467_v5  ;;  %v6491_v38 = vld [vmem:[%s9462_s1 + $0xf0] ss:$12 sps:$4 sm:$0xff]   ;;  %v6492_v39 = vld [vmem:[%s9462_s1 + $0x10c] ss:$12 sps:$4 sm:$0xff]   ;;  %v6539_v41 = vld [vmem:[%s9462_s1 + $0x128] ss:$12 sps:$4 sm:$0xff]  }
   0xc   :  { %3075 = vmatprep.subr.bf16.mxu0 %v6468_v6  ;;  %v7435_v25 = vrot.slane %v642_v23, %v7406_v16  ;;  %v6538_v40 = vld [vmem:[%s9462_s1 + $0x50] ss:$12 sps:$4 sm:$0xff]   ;;  %v6494_v42 = vld [vmem:[%s9462_s1 + $0x108] ss:$12 sps:$4 sm:$0xff]   ;;  %v6544_v45 = vld [vmem:[%s9462_s1 + $0x140] ss:$12 sps:$4 sm:$0xff]  }
   0xd   :  { %6139 = vmatpush3.bf16.msra.mxu1 %v6528_v32  ;;  %v6495_v43 = vld [vmem:[%s9462_s1 + $0x124] ss:$12 sps:$4 sm:$0xff]   ;;  %v6543_v44 = vld [vmem:[%s9462_s1 + $0x68] ss:$12 sps:$4 sm:$0xff]   ;;  %v6497_v46 = vld [vmem:[%s9462_s1 + $0x120] ss:$12 sps:$4 sm:$0xff]  }
   0xe   :  { %3101 = vmatprep.mubr.bf16.mxu0 %v7435_v25  ;;  %3470 = vmatprep.mubr.bf16.mxu1 %v7435_v25  ;;  %v6498_v47 = vld [vmem:[%s9462_s1 + $0x13c] ss:$12 sps:$4 sm:$0xff]   ;;  %v6548_v48 = vld [vmem:[%s9462_s1 + $0x80] ss:$12 sps:$4 sm:$0xff]   ;;  %v6549_v49 = vld [vmem:[%s9462_s1 + $0x158] ss:$12 sps:$4 sm:$0xff]   ;;  %v674_v1 = vcombine.high %v7435_v25, %v7435_v25 }
   0xf   :  { %3076 = vmatpush1.bf16.msra.mxu0 %v6470_v10  ;;  %6140 = vmatprep.subr.bf16.mxu1 %v6529_v33  ;;  %v6500_v50 = vld [vmem:[%s9462_s1 + $0x138] ss:$12 sps:$4 sm:$0xff]   ;;  %v6501_v51 = vld [vmem:[%s9462_s1 + $0x154] ss:$12 sps:$4 sm:$0xff]   ;;  %v6554_v53 = vld [vmem:[%s9462_s1 + $0x170] ss:$12 sps:$4 sm:$0xff]  }
  0x10   :  { %3077 = vmatprep.subr.bf16.mxu0 %v6471_v11  ;;  %v6553_v52 = vld [vmem:[%s9462_s1 + $0x98] ss:$12 sps:$4 sm:$0xff]   ;;  %v6503_v54 = vld [vmem:[%s9462_s1 + $0x150] ss:$12 sps:$4 sm:$0xff]   ;;  %v6559_v57 = vld [vmem:[%s9462_s1 + $0x248] ss:$12 sps:$4 sm:$0xff]  }
  0x11   :  { %6141 = vmatpush3.bf16.msra.mxu1 %v6533_v36  ;;  %v6504_v55 = vld [vmem:[%s9462_s1 + $0x16c] ss:$12 sps:$4 sm:$0xff]   ;;  %v6558_v56 = vld [vmem:[%s9462_s1 + $0xb0] ss:$12 sps:$4 sm:$0xff]   ;;  %v6506_v58 = vld [vmem:[%s9462_s1 + $0x168] ss:$12 sps:$4 sm:$0xff]  }
  0x12   :  { %6142 = vmatprep.subr.bf16.mxu1 %v6534_v37  ;;  %v6509_v59 = vld [vmem:[%s9462_s1 + $0x184] ss:$12 sps:$4 sm:$0xff]   ;;  %v6563_v60 = vld [vmem:[%s9462_s1 + $0x188] ss:$12 sps:$4 sm:$0xff]   ;;  %v6564_v62 = vld [vmem:[%s9462_s1 + $0x260] ss:$12 sps:$4 sm:$0xff]   ;;  %v7657_v37 = vcombine.high %v7546_v61, %v7546_v61 }
  0x13   :  { %3078 = vmatpush1.bf16.msra.mxu0 %v6473_v14  ;;  %v6507_v63 = vld [vmem:[%s9462_s1 + $0x180] ss:$12 sps:$4 sm:$0xff]   ;;  %v6512_v0 = vld [vmem:[%s9462_s1 + $0x19c] ss:$12 sps:$4 sm:$0xff]   ;;  %v6569_v3 = vld [vmem:[%s9462_s1 + $0x278] ss:$12 sps:$4 sm:$0xff]  }
  0x14   :  { %3079 = vmatprep.subr.bf16.mxu0 %v6474_v15  ;;  %v6568_v2 = vld [vmem:[%s9462_s1 + $0x1a0] ss:$12 sps:$4 sm:$0xff]   ;;  %v6510_v4 = vld [vmem:[%s9462_s1 + $0x198] ss:$12 sps:$4 sm:$0xff]   ;;  %v6574_v8 = vld [vmem:[%s9462_s1 + $0x290] ss:$12 sps:$4 sm:$0xff]  }
  0x15   :  { %6143 = vmatpush3.bf16.msra.mxu1 %v6538_v40  ;;  %v6515_v5 = vld [vmem:[%s9462_s1 + $0x1b4] ss:$12 sps:$4 sm:$0xff]   ;;  %v6573_v6 = vld [vmem:[%s9462_s1 + $0x1b8] ss:$12 sps:$4 sm:$0xff]   ;;  %v6513_v9 = vld [vmem:[%s9462_s1 + $0x1b0] ss:$12 sps:$4 sm:$0xff]  }
  0x16   :  { %6144 = vmatprep.subr.bf16.mxu1 %v6539_v41  ;;  %v6518_v10 = vld [vmem:[%s9462_s1 + $0x1cc] ss:$12 sps:$4 sm:$0xff]   ;;  %v6578_v11 = vld [vmem:[%s9462_s1 + $0x1d0] ss:$12 sps:$4 sm:$0xff]   ;;  %v6579_v13 = vld [vmem:[%s9462_s1 + $0x2a8] ss:$12 sps:$4 sm:$0xff]  }
  0x17   :  { %3080 = vmatpush1.bf16.msra.mxu0 %v6476_v17  ;;  %v6516_v14 = vld [vmem:[%s9462_s1 + $0x1c8] ss:$12 sps:$4 sm:$0xff]   ;;  %v6522_v15 = vld [vmem:[%s9462_s1 + $0x1e4] ss:$12 sps:$4 sm:$0xff]   ;;  %v6520_v20 = vld [vmem:[%s9462_s1 + $0x1e0] ss:$12 sps:$4 sm:$0xff]  }
  0x18   :  { %3081 = vmatprep.subr.bf16.mxu0 %v6477_v18  ;;  %v6583_v17 = vld [vmem:[%s9462_s1 + $0x1e8] ss:$12 sps:$4 sm:$0xff]   ;;  %v6584_v18 = vld [vmem:[%s9462_s1 + $0x2c0] ss:$12 sps:$4 sm:$0xff]   ;;  %v6589_v23 = vld [vmem:[%s9462_s1 + $0x2d8] ss:$12 sps:$4 sm:$0xff]  }
  0x19   :  { %6145 = vmatpush3.bf16.msra.mxu1 %v6543_v44  ;;  %v6525_v25 = vld [vmem:[%s9462_s1 + $0x1f8] ss:$12 sps:$4 sm:$0xff]   ;;  %v6532_v26 = vld [vmem:[%s9462_s1 + $0x214] ss:$12 sps:$4 sm:$0xff]   ;;  %v6530_v29 = vld [vmem:[%s9462_s1 + $0x210] ss:$12 sps:$4 sm:$0xff]  }
  0x1a   :  { %6146 = vmatprep.subr.bf16.mxu1 %v6544_v45  ;;  %v6537_v30 = vld [vmem:[%s9462_s1 + $0x22c] ss:$12 sps:$4 sm:$0xff]   ;;  %v6599_v32 = vld [vmem:[%s9462_s1 + $0x3c8] ss:$12 sps:$4 sm:$0xff]  }
  0x1b   :  { %3082 = vmatpush1.bf16.msra.mxu0 %v6479_v21  ;;  %v6527_v21 = vld [vmem:[%s9462_s1 + $0x1fc] ss:$12 sps:$4 sm:$0xff]   ;;  %v6540_v40 = vld [vmem:[%s9462_s1 + $0x240] ss:$12 sps:$4 sm:$0xff]   ;;  %v6545_v44 = vld [vmem:[%s9462_s1 + $0x258] ss:$12 sps:$4 sm:$0xff]  }
  0x1c   :  { %3083 = vmatprep.subr.bf16.mxu0 %v6480_v22  ;;  %v6588_v22 = vld [vmem:[%s9462_s1 + $0x200] ss:$12 sps:$4 sm:$0xff]   ;;  %v6603_v36 = vld [vmem:[%s9462_s1 + $0x308] ss:$12 sps:$4 sm:$0xff]  }
  0x1d   :  { %6147 = vmatpush3.bf16.msra.mxu1 %v6548_v48  ;;  %v6547_v41 = vld [vmem:[%s9462_s1 + $0x25c] ss:$12 sps:$4 sm:$0xff]   ;;  %v6552_v45 = vld [vmem:[%s9462_s1 + $0x274] ss:$12 sps:$4 sm:$0xff]  }
  0x1e   :  { %6148 = vmatprep.subr.bf16.mxu1 %v6549_v49  ;;  %v6550_v48 = vld [vmem:[%s9462_s1 + $0x270] ss:$12 sps:$4 sm:$0xff]   ;;  %v6557_v49 = vld [vmem:[%s9462_s1 + $0x28c] ss:$12 sps:$4 sm:$0xff]  }
  0x1f   :  { %3084 = vmatpush1.bf16.msra.mxu0 %v6482_v24  ;;  %v627_v24 = vcombine.high %v7417_v19, %v7417_v19  ;;  %v6594_v19 = vld [vmem:[%s9462_s1 + $0x2f0] ss:$12 sps:$4 sm:$0xff]  }
  0x20   :  { %3085 = vmatprep.subr.bf16.mxu0 %v6483_v27  ;;  %v6593_v27 = vld [vmem:[%s9462_s1 + $0x218] ss:$12 sps:$4 sm:$0xff]  }
  0x21   :  { %6149 = vmatpush3.bf16.msra.mxu1 %v6553_v52  ;;  %v6555_v52 = vld [vmem:[%s9462_s1 + $0x288] ss:$12 sps:$4 sm:$0xff]  }
  0x22   :  { %6150 = vmatprep.subr.bf16.mxu1 %v6554_v53  ;;  %v6562_v53 = vld [vmem:[%s9462_s1 + $0x2a4] ss:$12 sps:$4 sm:$0xff]  }
  0x23   :  { %3086 = vmatpush1.bf16.msra.mxu0 %v6485_v28  ;;  %v7630_v28 = vrot.slane %v627_v24, %v7406_v16  ;;  %v6659_v24 = vld [vmem:[%s9462_s1 + $0x4d0] ss:$12 sps:$4 sm:$0xff]  }
  0x24   :  { %3087 = vmatprep.subr.bf16.mxu0 %v6486_v31  ;;  %v6598_v31 = vld [vmem:[%s9462_s1 + $0x230] ss:$12 sps:$4 sm:$0xff]  }
  0x25   :  { %6151 = vmatpush3.bf16.msra.mxu1 %v6558_v56  ;;  %v643_v33 = vcombine.high %v7630_v28, %v7630_v28  ;;  %v6560_v56 = vld [vmem:[%s9462_s1 + $0x2a0] ss:$12 sps:$4 sm:$0xff]  }
  0x26   :  { %6158 = vmatprep.subr.bf16.mxu1 %v6559_v57  ;;  %v6567_v57 = vld [vmem:[%s9462_s1 + $0x2bc] ss:$12 sps:$4 sm:$0xff]  }
  0x27   :  { %3088 = vmatpush1.bf16.msra.mxu0 %v6488_v34  ;;  %v6535_v34 = vld [vmem:[%s9462_s1 + $0x228] ss:$12 sps:$4 sm:$0xff]  }
  0x28   :  { %3089 = vmatprep.subr.bf16.mxu0 %v6489_v35  ;;  %3471 = vmatmul.mubr.bf16.vlgmr.msra.gmra.mrb[0].mxu1 %v7546_v61  ;;  %v6542_v35 = vld [vmem:[%s9462_s1 + $0x244] ss:$12 sps:$4 sm:$0xff]  }
  0x29   :  { %6159 = vmatpush3.bf16.msra.mxu1 %v6563_v60  ;;  %3510 = vmatprep.mubr.bf16.mxu1 %v674_v1  ;;  %v6565_v60 = vld [vmem:[%s9462_s1 + $0x2b8] ss:$12 sps:$4 sm:$0xff]  }
  0x2a   :  { %6160 = vmatprep.subr.bf16.mxu1 %v6564_v62  ;;  %v6633_v62 = vld [vmem:[%s9462_s1 + $0x398] ss:$12 sps:$4 sm:$0xff]  }
  0x2b   :  { %3090 = vmatpush1.bf16.msra.mxu0 %v6491_v38  ;;  %v6604_v38 = vld [vmem:[%s9462_s1 + $0x3e0] ss:$12 sps:$4 sm:$0xff]  }
  0x2c   :  { %3091 = vmatprep.subr.bf16.mxu0 %v6492_v39  ;;  %v7663_v39 = vrot.slane %v643_v33, %v7406_v16  ;;  %v6605_v33 = vld [vmem:[%s9462_s1 + $0x378] ss:$12 sps:$4 sm:$0xff]  }
  0x2d   :  { %6161 = vmatpush3.bf16.msra.mxu1 %v6568_v2  ;;  %v6638_v2 = vld [vmem:[%s9462_s1 + $0x3b0] ss:$12 sps:$4 sm:$0xff]  }
  0x2e   :  { %6162 = vmatprep.subr.bf16.mxu1 %v6569_v3  ;;  %v6640_v3 = vld [vmem:[%s9462_s1 + $0x548] ss:$12 sps:$4 sm:$0xff]  }
  0x2f   :  { %3092 = vmatpush1.bf16.msra.mxu0 %v6494_v42  ;;  %v6608_v42 = vld [vmem:[%s9462_s1 + $0x320] ss:$12 sps:$4 sm:$0xff]  }
  0x30   :  { %3093 = vmatprep.subr.bf16.mxu0 %v6495_v43  ;;  %v6609_v43 = vld [vmem:[%s9462_s1 + $0x3f8] ss:$12 sps:$4 sm:$0xff]  }
  0x31   :  { %6163 = vmatpush3.bf16.msra.mxu1 %v6573_v6  ;;  %v7759_v6 = vrot.slane %v7630_v28, %v7406_v16  ;;  %v6665_v28 = vld [vmem:[%s9462_s1 + $0x5c0] ss:$12 sps:$4 sm:$0xff]  }
  0x32   :  { %6164 = vmatprep.subr.bf16.mxu1 %v6574_v8  ;;  %v6644_v8 = vld [vmem:[%s9462_s1 + $0x488] ss:$12 sps:$4 sm:$0xff]  }
  0x33   :  { %3094 = vmatpush1.bf16.msra.mxu0 %v6497_v46  ;;  %v6613_v46 = vld [vmem:[%s9462_s1 + $0x338] ss:$12 sps:$4 sm:$0xff]  }
  0x34   :  { %3095 = vmatprep.subr.bf16.mxu0 %v6498_v47  ;;  %v6614_v47 = vld [vmem:[%s9462_s1 + $0x410] ss:$12 sps:$4 sm:$0xff]  }
  0x35   :  { %6165 = vmatpush3.bf16.msra.mxu1 %v6578_v11  ;;  %v6580_v11 = vld [vmem:[%s9462_s1 + $0x300] ss:$12 sps:$4 sm:$0xff]  }
  0x36   :  { %6166 = vmatprep.subr.bf16.mxu1 %v6579_v13  ;;  %v6587_v13 = vld [vmem:[%s9462_s1 + $0x31c] ss:$12 sps:$4 sm:$0xff]  }
  0x37   :  { %3096 = vmatpush1.bf16.msra.mxu0 %v6500_v50  ;;  %v6618_v50 = vld [vmem:[%s9462_s1 + $0x350] ss:$12 sps:$4 sm:$0xff]  }
  0x38   :  { %3097 = vmatprep.subr.bf16.mxu0 %v6501_v51  ;;  %v6619_v51 = vld [vmem:[%s9462_s1 + $0x428] ss:$12 sps:$4 sm:$0xff]  }
  0x39   :  { %6167 = vmatpush3.bf16.msra.mxu1 %v6583_v17  ;;  %v6585_v17 = vld [vmem:[%s9462_s1 + $0x318] ss:$12 sps:$4 sm:$0xff]  }
  0x3a   :  { %6168 = vmatprep.subr.bf16.mxu1 %v6584_v18  ;;  %v6592_v18 = vld [vmem:[%s9462_s1 + $0x334] ss:$12 sps:$4 sm:$0xff]  }
  0x3b   :  { %3098 = vmatpush1.bf16.msra.mxu0 %v6503_v54  ;;  %v6623_v54 = vld [vmem:[%s9462_s1 + $0x368] ss:$12 sps:$4 sm:$0xff]  }
  0x3c   :  { %3099 = vmatprep.subr.bf16.mxu0 %v6504_v55  ;;  %v6624_v55 = vld [vmem:[%s9462_s1 + $0x440] ss:$12 sps:$4 sm:$0xff]  }
  0x3d   :  { %6169 = vmatpush3.bf16.msra.mxu1 %v6588_v22  ;;  %v6590_v22 = vld [vmem:[%s9462_s1 + $0x330] ss:$12 sps:$4 sm:$0xff]  }
  0x3e   :  { %6170 = vmatprep.subr.bf16.mxu1 %v6589_v23  ;;  %v6597_v23 = vld [vmem:[%s9462_s1 + $0x34c] ss:$12 sps:$4 sm:$0xff]  }
  0x3f   :  { %3100 = vmatpush1.bf16.msra.mxu0 %v6506_v58  ;;  %v6628_v58 = vld [vmem:[%s9462_s1 + $0x380] ss:$12 sps:$4 sm:$0xff]  }
  0x40   :  { %3110 = vmatprep.subr.bf16.mxu0 %v6509_v59  ;;  %v6629_v59 = vld [vmem:[%s9462_s1 + $0x458] ss:$12 sps:$4 sm:$0xff]  }
  0x41   :  { %6171 = vmatpush3.bf16.msra.mxu1 %v6593_v27  ;;  %v6602_v27 = vld [vmem:[%s9462_s1 + $0x364] ss:$12 sps:$4 sm:$0xff]  }
  0x42   :  { %3102 = vmatmul.mubr.bf16.vlgmr.msra.gmra.mrb[0].mxu0 %v7546_v61  ;;  %6172 = vmatprep.subr.bf16.mxu1 %v6594_v19  ;;  %v6572_v61 = vld [vmem:[%s9462_s1 + $0x2d4] ss:$12 sps:$4 sm:$0xff]  }
  0x43   :  { %3111 = vmatpush1.bf16.msra.mxu0 %v6507_v63  ;;  %3142 = vmatprep.mubr.bf16.mxu0 %v674_v1  ;;  %v6634_v63 = vld [vmem:[%s9462_s1 + $0x470] ss:$12 sps:$4 sm:$0xff]   ;;  %v6577_v1 = vld [vmem:[%s9462_s1 + $0x2ec] ss:$12 sps:$4 sm:$0xff]   ;;  %v6664_v19 = vld [vmem:[%s9462_s1 + $0x4e8] ss:$12 sps:$4 sm:$0xff]  }
  0x44   :  { %3112 = vmatprep.subr.bf16.mxu0 %v6512_v0  ;;  %v6570_v0 = vld [vmem:[%s9462_s1 + $0x2d0] ss:$12 sps:$4 sm:$0xff]  }
  0x45   :  { %6173 = vmatpush3.bf16.msra.mxu1 %v6598_v31  ;;  %v6669_v31 = vld [vmem:[%s9462_s1 + $0x500] ss:$12 sps:$4 sm:$0xff]  }
  0x46   :  { %6180 = vmatprep.subr.bf16.mxu1 %v6599_v32  ;;  %v6670_v32 = vld [vmem:[%s9462_s1 + $0x5d8] ss:$12 sps:$4 sm:$0xff]  }
  0x47   :  { %3113 = vmatpush1.bf16.msra.mxu0 %v6510_v4  ;;  %v6575_v4 = vld [vmem:[%s9462_s1 + $0x2e8] ss:$12 sps:$4 sm:$0xff]  }
  0x48   :  { %3114 = vmatprep.subr.bf16.mxu0 %v6515_v5  ;;  %3511 = vmatmul.mubr.bf16.vlgmr.msra.gmra.mrb[4].mxu1 %v7657_v37  ;;  %v6582_v5 = vld [vmem:[%s9462_s1 + $0x304] ss:$12 sps:$4 sm:$0xff]  }
  0x49   :  { %6181 = vmatpush3.bf16.msra.mxu1 %v6603_v36  ;;  %3550 = vmatprep.mubr.bf16.mxu1 %v7663_v39  ;;  %v6675_v36 = vld [vmem:[%s9462_s1 + $0x5f0] ss:$12 sps:$4 sm:$0xff]  }
  0x4a   :  { %6182 = vmatprep.subr.bf16.mxu1 %v6604_v38  ;;  %v6617_v38 = vld [vmem:[%s9462_s1 + $0x3ac] ss:$12 sps:$4 sm:$0xff]  }
  0x4b   :  { %3115 = vmatpush1.bf16.msra.mxu0 %v6513_v9  ;;  %v6645_v9 = vld [vmem:[%s9462_s1 + $0x560] ss:$12 sps:$4 sm:$0xff]  }
  0x4c   :  { %3116 = vmatprep.subr.bf16.mxu0 %v6518_v10  ;;  %v7769_v10 = vcombine.high %v7663_v39, %v7663_v39 }
  0x4d   :  { %6183 = vmatpush3.bf16.msra.mxu1 %v6608_v42  ;;  %v6622_v42 = vld [vmem:[%s9462_s1 + $0x3c4] ss:$12 sps:$4 sm:$0xff]  }
  0x4e   :  { %6184 = vmatprep.subr.bf16.mxu1 %v6609_v43  ;;  %v7867_v43 = vcombine.high %v7759_v6, %v7759_v6 }
  0x4f   :  { %3117 = vmatpush1.bf16.msra.mxu0 %v6516_v14  ;;  %v6649_v14 = vld [vmem:[%s9462_s1 + $0x4a0] ss:$12 sps:$4 sm:$0xff]  }
  0x50   :  { %3118 = vmatprep.subr.bf16.mxu0 %v6522_v15  ;;  %v6650_v15 = vld [vmem:[%s9462_s1 + $0x578] ss:$12 sps:$4 sm:$0xff]  }
  0x51   :  { %6185 = vmatpush3.bf16.msra.mxu1 %v6613_v46  ;;  %v6620_v46 = vld [vmem:[%s9462_s1 + $0x3c0] ss:$12 sps:$4 sm:$0xff]  }
  0x52   :  { %6186 = vmatprep.subr.bf16.mxu1 %v6614_v47  ;;  %v6627_v47 = vld [vmem:[%s9462_s1 + $0x3dc] ss:$12 sps:$4 sm:$0xff]  }
  0x53   :  { %3119 = vmatpush1.bf16.msra.mxu0 %v6520_v20  ;;  %v6654_v20 = vld [vmem:[%s9462_s1 + $0x4b8] ss:$12 sps:$4 sm:$0xff]  }
  0x54   :  { %3120 = vmatprep.subr.bf16.mxu0 %v6527_v21  ;;  %v6655_v21 = vld [vmem:[%s9462_s1 + $0x590] ss:$12 sps:$4 sm:$0xff]  }
  0x55   :  { %6187 = vmatpush3.bf16.msra.mxu1 %v6618_v50  ;;  %v6690_v50 = vld [vmem:[%s9462_s1 + $0x6f8] ss:$12 sps:$4 sm:$0xff]  }
  0x56   :  { %6188 = vmatprep.subr.bf16.mxu1 %v6619_v51 }
  0x57   :  { %3121 = vmatpush1.bf16.msra.mxu0 %v6525_v25  ;;  %v6660_v25 = vld [vmem:[%s9462_s1 + $0x5a8] ss:$12 sps:$4 sm:$0xff]  }
  0x58   :  { %3122 = vmatprep.subr.bf16.mxu0 %v6532_v26  ;;  %v6595_v26 = vld [vmem:[%s9462_s1 + $0x348] ss:$12 sps:$4 sm:$0xff]  }
  0x59   :  { %6189 = vmatpush3.bf16.msra.mxu1 %v6623_v54 }
  0x5a   :  { %6190 = vmatprep.subr.bf16.mxu1 %v6624_v55  ;;  %v6694_v55 = vld [vmem:[%s9462_s1 + $0x638] ss:$12 sps:$4 sm:$0xff]  }
  0x5b   :  { %3123 = vmatpush1.bf16.msra.mxu0 %v6530_v29  ;;  %v6600_v29 = vld [vmem:[%s9462_s1 + $0x360] ss:$12 sps:$4 sm:$0xff]  }
  0x5c   :  { %3124 = vmatprep.subr.bf16.mxu0 %v6537_v30  ;;  %v6607_v30 = vld [vmem:[%s9462_s1 + $0x37c] ss:$12 sps:$4 sm:$0xff]  }
  0x5d   :  { %6191 = vmatpush3.bf16.msra.mxu1 %v6628_v58  ;;  %v6630_v58 = vld [vmem:[%s9462_s1 + $0x3f0] ss:$12 sps:$4 sm:$0xff]  }
  0x5e   :  { %6192 = vmatprep.subr.bf16.mxu1 %v6629_v59  ;;  %v6637_v59 = vld [vmem:[%s9462_s1 + $0x40c] ss:$12 sps:$4 sm:$0xff]  }
  0x5f   :  { %3125 = vmatpush1.bf16.msra.mxu0 %v6535_v34  ;;  %v6612_v34 = vld [vmem:[%s9462_s1 + $0x394] ss:$12 sps:$4 sm:$0xff]  }
  0x60   :  { %3126 = vmatprep.subr.bf16.mxu0 %v6542_v35  ;;  %v6674_v35 = vld [vmem:[%s9462_s1 + $0x518] ss:$12 sps:$4 sm:$0xff]  }
  0x61   :  { %6193 = vmatpush3.bf16.msra.mxu1 %v6633_v62  ;;  %v6635_v62 = vld [vmem:[%s9462_s1 + $0x408] ss:$12 sps:$4 sm:$0xff]  }
  0x62   :  { %6194 = vmatprep.subr.bf16.mxu1 %v6634_v63  ;;  %v6643_v63 = vld [vmem:[%s9462_s1 + $0x424] ss:$12 sps:$4 sm:$0xff]  }
  0x63   :  { %3127 = vmatpush1.bf16.msra.mxu0 %v6540_v40  ;;  %v6680_v40 = vld [vmem:[%s9462_s1 + $0x6c8] ss:$12 sps:$4 sm:$0xff]  }
  0x64   :  { %3128 = vmatprep.subr.bf16.mxu0 %v6547_v41  ;;  %v6615_v41 = vld [vmem:[%s9462_s1 + $0x3a8] ss:$12 sps:$4 sm:$0xff]  }
  0x65   :  { %6195 = vmatpush3.bf16.msra.mxu1 %v6638_v2  ;;  %v6641_v2 = vld [vmem:[%s9462_s1 + $0x420] ss:$12 sps:$4 sm:$0xff]  }
  0x66   :  { %6202 = vmatprep.subr.bf16.mxu1 %v6640_v3  ;;  %v6648_v3 = vld [vmem:[%s9462_s1 + $0x43c] ss:$12 sps:$4 sm:$0xff]  }
  0x67   :  { %3129 = vmatpush1.bf16.msra.mxu0 %v6545_v44  ;;  %v6684_v44 = vld [vmem:[%s9462_s1 + $0x608] ss:$12 sps:$4 sm:$0xff]  }
  0x68   :  { %3130 = vmatprep.subr.bf16.mxu0 %v6552_v45  ;;  %3551 = vmatmul.mubr.bf16.vlgmr.msra.gmra.mrb[8].mxu1 %v7759_v6  ;;  %v6685_v45 = vld [vmem:[%s9462_s1 + $0x6e0] ss:$12 sps:$4 sm:$0xff]  }
  0x69   :  { %6203 = vmatpush3.bf16.msra.mxu1 %v6644_v8  ;;  %3590 = vmatprep.mubr.bf16.mxu1 %v7769_v10  ;;  %v6646_v8 = vld [vmem:[%s9462_s1 + $0x438] ss:$12 sps:$4 sm:$0xff]  }
  0x6a   :  { %6204 = vmatprep.subr.bf16.mxu1 %v6645_v9  ;;  %v6653_v9 = vld [vmem:[%s9462_s1 + $0x454] ss:$12 sps:$4 sm:$0xff]  }
  0x6b   :  { %3131 = vmatpush1.bf16.msra.mxu0 %v6550_v48  ;;  %v6689_v48 = vld [vmem:[%s9462_s1 + $0x620] ss:$12 sps:$4 sm:$0xff]  }
  0x6c   :  { %3132 = vmatprep.subr.bf16.mxu0 %v6557_v49  ;;  %v7888_v49 = vld [vmem:[%s9461_s0 + $0x8] sm:$0xff] }
  0x6d   :  { %6205 = vmatpush3.bf16.msra.mxu1 %v6649_v14  ;;  %v683_v51 = vrot.slane %v7888_v49, %v7406_v16  ;;  %v6651_v14 = vld [vmem:[%s9462_s1 + $0x450] ss:$12 sps:$4 sm:$0xff]  }
  0x6e   :  { %6206 = vmatprep.subr.bf16.mxu1 %v6650_v15  ;;  %v6658_v15 = vld [vmem:[%s9462_s1 + $0x46c] ss:$12 sps:$4 sm:$0xff]  }
  0x6f   :  { %3133 = vmatpush1.bf16.msra.mxu0 %v6555_v52  ;;  %v6625_v52 = vld [vmem:[%s9462_s1 + $0x3d8] ss:$12 sps:$4 sm:$0xff]   ;;  %v691_v54 = vcombine.high %v683_v51, %v683_v51 }
  0x70   :  { %3134 = vmatprep.subr.bf16.mxu0 %v6562_v53  ;;  %v6632_v53 = vld [vmem:[%s9462_s1 + $0x3f4] ss:$12 sps:$4 sm:$0xff]  }
  0x71   :  { %6207 = vmatpush3.bf16.msra.mxu1 %v6654_v20  ;;  %v6656_v20 = vld [vmem:[%s9462_s1 + $0x468] ss:$12 sps:$4 sm:$0xff]  }
  0x72   :  { %6208 = vmatprep.subr.bf16.mxu1 %v6655_v21  ;;  %v6663_v21 = vld [vmem:[%s9462_s1 + $0x484] ss:$12 sps:$4 sm:$0xff]  }
  0x73   :  { %3135 = vmatpush1.bf16.msra.mxu0 %v6560_v56  ;;  %v6695_v56 = vld [vmem:[%s9462_s1 + $0x710] ss:$12 sps:$4 sm:$0xff]  }
  0x74   :  { %3136 = vmatprep.subr.bf16.mxu0 %v6567_v57  ;;  %v7908_v57 = vrot.slane %v691_v54, %v7406_v16 }
  0x75   :  { %6209 = vmatpush3.bf16.msra.mxu1 %v6659_v24  ;;  %v6725_v24 = vld [vmem:[%s9462_s1 + $0x860] ss:$12 sps:$4 sm:$0xff]  }
  0x76   :  { %6210 = vmatprep.subr.bf16.mxu1 %v6660_v25  ;;  %v7988_v25 = vcombine.high %v7908_v57, %v7908_v57 }
  0x77   :  { %3137 = vmatpush1.bf16.msra.mxu0 %v6565_v60  ;;  %v6699_v60 = vld [vmem:[%s9462_s1 + $0x650] ss:$12 sps:$4 sm:$0xff]  }
  0x78   :  { %3138 = vmatprep.subr.bf16.mxu0 %v6572_v61  ;;  %v6700_v61 = vld [vmem:[%s9462_s1 + $0x728] ss:$12 sps:$4 sm:$0xff]  }
  0x79   :  { %6211 = vmatpush3.bf16.msra.mxu1 %v6664_v19  ;;  %v6729_v19 = vld [vmem:[%s9462_s1 + $0x7a0] ss:$12 sps:$4 sm:$0xff]  }
  0x7a   :  { %6212 = vmatprep.subr.bf16.mxu1 %v6665_v28  ;;  %v6730_v28 = vld [vmem:[%s9462_s1 + $0x878] ss:$12 sps:$4 sm:$0xff]  }
  0x7b   :  { %3139 = vmatpush1.bf16.msra.mxu0 %v6570_v0  ;;  %v6704_v0 = vld [vmem:[%s9462_s1 + $0x668] ss:$12 sps:$4 sm:$0xff]  }
  0x7c   :  { %3140 = vmatprep.subr.bf16.mxu0 %v6577_v1  ;;  %v6705_v1 = vld [vmem:[%s9462_s1 + $0x740] ss:$12 sps:$4 sm:$0xff]  }
  0x7d   :  { %6213 = vmatpush3.bf16.msra.mxu1 %v6669_v31  ;;  %v6734_v31 = vld [vmem:[%s9462_s1 + $0x7b8] ss:$12 sps:$4 sm:$0xff]  }
  0x7e   :  { %6214 = vmatprep.subr.bf16.mxu1 %v6670_v32  ;;  %v6671_v32 = vld [vmem:[%s9462_s1 + $0x4b0] ss:$12 sps:$4 sm:$0xff]  }
  0x7f   :  { %3141 = vmatpush1.bf16.msra.mxu0 %v6575_v4  ;;  %v6709_v4 = vld [vmem:[%s9462_s1 + $0x680] ss:$12 sps:$4 sm:$0xff]  }
  0x80   :  { %3151 = vmatprep.subr.bf16.mxu0 %v6582_v5  ;;  %v6710_v5 = vld [vmem:[%s9462_s1 + $0x758] ss:$12 sps:$4 sm:$0xff]  }
  0x81   :  { %6215 = vmatpush3.bf16.msra.mxu1 %v6674_v35  ;;  %v6676_v35 = vld [vmem:[%s9462_s1 + $0x4c8] ss:$12 sps:$4 sm:$0xff]  }
  0x82   :  { %3143 = vmatmul.mubr.bf16.vlgmr.msra.gmra.mrb[0].mxu0 %v7657_v37  ;;  %v6610_v37 = vld [vmem:[%s9462_s1 + $0x390] ss:$12 sps:$4 sm:$0xff]   ;;  %6216 = vmatprep.subr.bf16.mxu1 %v6675_v36 }
  0x83   :  { %3152 = vmatpush1.bf16.msra.mxu0 %v6580_v11  ;;  %3183 = vmatprep.mubr.bf16.mxu0 %v7663_v39  ;;  %v6679_v39 = vld [vmem:[%s9462_s1 + $0x530] ss:$12 sps:$4 sm:$0xff]   ;;  %v6714_v11 = vld [vmem:[%s9462_s1 + $0x698] ss:$12 sps:$4 sm:$0xff]  }
  0x84   :  { %3153 = vmatprep.subr.bf16.mxu0 %v6587_v13  ;;  %v6715_v13 = vld [vmem:[%s9462_s1 + $0x770] ss:$12 sps:$4 sm:$0xff]  }
  0x85   :  { %6217 = vmatpush3.bf16.msra.mxu1 %v6679_v39  ;;  %v6683_v36 = vld [vmem:[%s9462_s1 + $0x4e4] ss:$12 sps:$4 sm:$0xff]   ;;  %v6681_v39 = vld [vmem:[%s9462_s1 + $0x4e0] ss:$12 sps:$4 sm:$0xff]  }
  0x86   :  { %6224 = vmatprep.subr.bf16.mxu1 %v6680_v40  ;;  %v6688_v40 = vld [vmem:[%s9462_s1 + $0x4fc] ss:$12 sps:$4 sm:$0xff]  }
  0x87   :  { %3154 = vmatpush1.bf16.msra.mxu0 %v6585_v17  ;;  %v6719_v17 = vld [vmem:[%s9462_s1 + $0x6b0] ss:$12 sps:$4 sm:$0xff]  }
  0x88   :  { %3155 = vmatprep.subr.bf16.mxu0 %v6592_v18  ;;  %3591 = vmatmul.mubr.bf16.vlgmr.msra.gmra.mrb[12].mxu1 %v7867_v43  ;;  %v6720_v18 = vld [vmem:[%s9462_s1 + $0x848] ss:$12 sps:$4 sm:$0xff]  }
  0x89   :  { %6225 = vmatpush3.bf16.msra.mxu1 %v6684_v44  ;;  %3630 = vmatprep.mubr.bf16.mxu1 %v7908_v57  ;;  %v676_v44 = vcombine.high %v7888_v49, %v7888_v49 }
  0x8a   :  { %6226 = vmatprep.subr.bf16.mxu1 %v6685_v45  ;;  %v6686_v45 = vld [vmem:[%s9462_s1 + $0x4f8] ss:$12 sps:$4 sm:$0xff]  }
  0x8b   :  { %3156 = vmatpush1.bf16.msra.mxu0 %v6590_v22  ;;  %v7978_v22 = vrot.slane %v683_v51, %v7406_v16  ;;  %v8069_v49 = vrot.slane %v676_v44, %v7406_v16  ;;  %v6698_v51 = vld [vmem:[%s9462_s1 + $0x52c] ss:$12 sps:$4 sm:$0xff]  }
  0x8c   :  { %3157 = vmatprep.subr.bf16.mxu0 %v6597_v23  ;;  %v6724_v23 = vld [vmem:[%s9462_s1 + $0x788] ss:$12 sps:$4 sm:$0xff]   ;;  %v6815_v44 = vld [vmem:[%s9462_s1 + $0xab8] ss:$12 sps:$4 sm:$0xff]  }
  0x8d   :  { %6227 = vmatpush3.bf16.msra.mxu1 %v6689_v48  ;;  %v6755_v48 = vld [vmem:[%s9462_s1 + $0x8f0] ss:$12 sps:$4 sm:$0xff]   ;;  %v692_v54 = vcombine.high %v8069_v49, %v8069_v49 }
  0x8e   :  { %6228 = vmatprep.subr.bf16.mxu1 %v6690_v50  ;;  %v6691_v50 = vld [vmem:[%s9462_s1 + $0x510] ss:$12 sps:$4 sm:$0xff]  }
  0x8f   :  { %3158 = vmatpush1.bf16.msra.mxu0 %v6595_v26  ;;  %v6661_v26 = vld [vmem:[%s9462_s1 + $0x480] ss:$12 sps:$4 sm:$0xff]  }
  0x90   :  { %3159 = vmatprep.subr.bf16.mxu0 %v6602_v27  ;;  %v6668_v27 = vld [vmem:[%s9462_s1 + $0x49c] ss:$12 sps:$4 sm:$0xff]  }
  0x91   :  { %6229 = vmatpush3.bf16.msra.mxu1 %v6694_v55  ;;  %v6696_v55 = vld [vmem:[%s9462_s1 + $0x528] ss:$12 sps:$4 sm:$0xff]  }
  0x92   :  { %6230 = vmatprep.subr.bf16.mxu1 %v6695_v56  ;;  %v6703_v56 = vld [vmem:[%s9462_s1 + $0x544] ss:$12 sps:$4 sm:$0xff]  }
  0x93   :  { %3160 = vmatpush1.bf16.msra.mxu0 %v6600_v29  ;;  %v6666_v29 = vld [vmem:[%s9462_s1 + $0x498] ss:$12 sps:$4 sm:$0xff]  }
  0x94   :  { %3161 = vmatprep.subr.bf16.mxu0 %v6607_v30  ;;  %v6673_v30 = vld [vmem:[%s9462_s1 + $0x4b4] ss:$12 sps:$4 sm:$0xff]  }
  0x95   :  { %6231 = vmatpush3.bf16.msra.mxu1 %v6699_v60  ;;  %v6765_v60 = vld [vmem:[%s9462_s1 + $0x9e0] ss:$12 sps:$4 sm:$0xff]  }
  0x96   :  { %6232 = vmatprep.subr.bf16.mxu1 %v6700_v61  ;;  %v8102_v61 = vrot.slane %v692_v54, %v7406_v16  ;;  %v6830_v54 = vld [vmem:[%s9462_s1 + $0xb00] ss:$12 sps:$4 sm:$0xff]  }
  0x97   :  { %3162 = vmatpush1.bf16.msra.mxu0 %v6605_v33  ;;  %v6739_v33 = vld [vmem:[%s9462_s1 + $0x7d0] ss:$12 sps:$4 sm:$0xff]  }
  0x98   :  { %3163 = vmatprep.subr.bf16.mxu0 %v6612_v34  ;;  %v6740_v34 = vld [vmem:[%s9462_s1 + $0x8a8] ss:$12 sps:$4 sm:$0xff]  }
  0x99   :  { %6233 = vmatpush3.bf16.msra.mxu1 %v6704_v0  ;;  %v6769_v0 = vld [vmem:[%s9462_s1 + $0x920] ss:$12 sps:$4 sm:$0xff]  }
  0x9a   :  { %6234 = vmatprep.subr.bf16.mxu1 %v6705_v1  ;;  %v6770_v1 = vld [vmem:[%s9462_s1 + $0x9f8] ss:$12 sps:$4 sm:$0xff]  }
  0x9b   :  { %3164 = vmatpush1.bf16.msra.mxu0 %v6610_v37  ;;  %v6744_v37 = vld [vmem:[%s9462_s1 + $0x7e8] ss:$12 sps:$4 sm:$0xff]  }
  0x9c   :  { %3165 = vmatprep.subr.bf16.mxu0 %v6617_v38  ;;  %v6745_v38 = vld [vmem:[%s9462_s1 + $0x8c0] ss:$12 sps:$4 sm:$0xff]  }
  0x9d   :  { %6235 = vmatpush3.bf16.msra.mxu1 %v6709_v4  ;;  %v6774_v4 = vld [vmem:[%s9462_s1 + $0x938] ss:$12 sps:$4 sm:$0xff]  }
  0x9e   :  { %6236 = vmatprep.subr.bf16.mxu1 %v6710_v5  ;;  %v6775_v5 = vld [vmem:[%s9462_s1 + $0xa10] ss:$12 sps:$4 sm:$0xff]  }
  0x9f   :  { %3166 = vmatpush1.bf16.msra.mxu0 %v6615_v41  ;;  %v6749_v41 = vld [vmem:[%s9462_s1 + $0x800] ss:$12 sps:$4 sm:$0xff]  }
  0xa0   :  { %3167 = vmatprep.subr.bf16.mxu0 %v6622_v42  ;;  %v6750_v42 = vld [vmem:[%s9462_s1 + $0x8d8] ss:$12 sps:$4 sm:$0xff]  }
  0xa1   :  { %6237 = vmatpush3.bf16.msra.mxu1 %v6714_v11  ;;  %v6779_v11 = vld [vmem:[%s9462_s1 + $0x950] ss:$12 sps:$4 sm:$0xff]  }
  0xa2   :  { %6238 = vmatprep.subr.bf16.mxu1 %v6715_v13  ;;  %v6780_v13 = vld [vmem:[%s9462_s1 + $0xa28] ss:$12 sps:$4 sm:$0xff]  }
  0xa3   :  { %3168 = vmatpush1.bf16.msra.mxu0 %v6620_v46  ;;  %v6693_v46 = vld [vmem:[%s9462_s1 + $0x514] ss:$12 sps:$4 sm:$0xff]  }
  0xa4   :  { %3169 = vmatprep.subr.bf16.mxu0 %v6627_v47  ;;  %v6754_v47 = vld [vmem:[%s9462_s1 + $0x818] ss:$12 sps:$4 sm:$0xff]  }
  0xa5   :  { %6239 = vmatpush3.bf16.msra.mxu1 %v6719_v17  ;;  %v6784_v17 = vld [vmem:[%s9462_s1 + $0x968] ss:$12 sps:$4 sm:$0xff]  }
  0xa6   :  { %6246 = vmatprep.subr.bf16.mxu1 %v6720_v18  ;;  %v6785_v18 = vld [vmem:[%s9462_s1 + $0xa40] ss:$12 sps:$4 sm:$0xff]  }
  0xa7   :  { %3170 = vmatpush1.bf16.msra.mxu0 %v6625_v52  ;;  %v6759_v52 = vld [vmem:[%s9462_s1 + $0x830] ss:$12 sps:$4 sm:$0xff]  }
  0xa8   :  { %3171 = vmatprep.subr.bf16.mxu0 %v6632_v53  ;;  %3631 = vmatmul.mubr.bf16.vlgmr.msra.gmra.mrb[16].mxu1 %v7978_v22  ;;  %v6760_v53 = vld [vmem:[%s9462_s1 + $0x9c8] ss:$12 sps:$4 sm:$0xff]  }
  0xa9   :  { %6247 = vmatpush3.bf16.msra.mxu1 %v6724_v23  ;;  %3670 = vmatprep.mubr.bf16.mxu1 %v7988_v25  ;;  %v6789_v23 = vld [vmem:[%s9462_s1 + $0x980] ss:$12 sps:$4 sm:$0xff]  }
  0xaa   :  { %6248 = vmatprep.subr.bf16.mxu1 %v6725_v24  ;;  %v6790_v24 = vld [vmem:[%s9462_s1 + $0xa58] ss:$12 sps:$4 sm:$0xff]  }
  0xab   :  { %3172 = vmatpush1.bf16.msra.mxu0 %v6630_v58  ;;  %v8093_v58 = vcombine.high %v7978_v22, %v7978_v22 }
  0xac   :  { %3173 = vmatprep.subr.bf16.mxu0 %v6637_v59  ;;  %v6764_v59 = vld [vmem:[%s9462_s1 + $0x908] ss:$12 sps:$4 sm:$0xff]  }
  0xad   :  { %6249 = vmatpush3.bf16.msra.mxu1 %v6729_v19  ;;  %v6794_v19 = vld [vmem:[%s9462_s1 + $0x998] ss:$12 sps:$4 sm:$0xff]  }
  0xae   :  { %6250 = vmatprep.subr.bf16.mxu1 %v6730_v28  ;;  %v6795_v28 = vld [vmem:[%s9462_s1 + $0xa70] ss:$12 sps:$4 sm:$0xff]  }
  0xaf   :  { %3174 = vmatpush1.bf16.msra.mxu0 %v6635_v62  ;;  %v6701_v62 = vld [vmem:[%s9462_s1 + $0x540] ss:$12 sps:$4 sm:$0xff]  }
  0xb0   :  { %3175 = vmatprep.subr.bf16.mxu0 %v6643_v63  ;;  %v6708_v63 = vld [vmem:[%s9462_s1 + $0x55c] ss:$12 sps:$4 sm:$0xff]  }
  0xb1   :  { %6251 = vmatpush3.bf16.msra.mxu1 %v6734_v31  ;;  %v6799_v31 = vld [vmem:[%s9462_s1 + $0x9b0] ss:$12 sps:$4 sm:$0xff]  }
  0xb3   :  { %3176 = vmatpush1.bf16.msra.mxu0 %v6641_v2  ;;  %v6706_v2 = vld [vmem:[%s9462_s1 + $0x558] ss:$12 sps:$4 sm:$0xff]  }
  0xb4   :  { %3177 = vmatprep.subr.bf16.mxu0 %v6648_v3  ;;  %v6713_v3 = vld [vmem:[%s9462_s1 + $0x574] ss:$12 sps:$4 sm:$0xff]  }
  0xb7   :  { %3178 = vmatpush1.bf16.msra.mxu0 %v6646_v8  ;;  %v6711_v8 = vld [vmem:[%s9462_s1 + $0x570] ss:$12 sps:$4 sm:$0xff]  }
  0xb8   :  { %3179 = vmatprep.subr.bf16.mxu0 %v6653_v9  ;;  %v6718_v9 = vld [vmem:[%s9462_s1 + $0x58c] ss:$12 sps:$4 sm:$0xff]  }
  0xbb   :  { %3180 = vmatpush1.bf16.msra.mxu0 %v6651_v14  ;;  %v6716_v14 = vld [vmem:[%s9462_s1 + $0x588] ss:$12 sps:$4 sm:$0xff]  }
  0xbc   :  { %3181 = vmatprep.subr.bf16.mxu0 %v6658_v15  ;;  %v6723_v15 = vld [vmem:[%s9462_s1 + $0x5a4] ss:$12 sps:$4 sm:$0xff]  }
  0xbf   :  { %3182 = vmatpush1.bf16.msra.mxu0 %v6656_v20  ;;  %v6721_v20 = vld [vmem:[%s9462_s1 + $0x5a0] ss:$12 sps:$4 sm:$0xff]  }
  0xc0   :  { %3192 = vmatprep.subr.bf16.mxu0 %v6663_v21  ;;  %v6728_v21 = vld [vmem:[%s9462_s1 + $0x5bc] ss:$12 sps:$4 sm:$0xff]  }
  0xc2   :  { %3184 = vmatmul.mubr.bf16.vlgmr.msra.gmra.mrb[0].mxu0 %v7759_v6  ;;  %v6735_v6 = vld [vmem:[%s9462_s1 + $0x890] ss:$12 sps:$4 sm:$0xff]  }
  0xc3   :  { %3193 = vmatpush1.bf16.msra.mxu0 %v6661_v26  ;;  %3224 = vmatprep.mubr.bf16.mxu0 %v7769_v10  ;;  %v6678_v10 = vld [vmem:[%s9462_s1 + $0x4cc] ss:$12 sps:$4 sm:$0xff]  }
  0xc4   :  { %3194 = vmatprep.subr.bf16.mxu0 %v6668_v27  ;;  %6252 = vmatprep.subr.bf16.mxu1 %v6735_v6  ;;  %v6726_v26 = vld [vmem:[%s9462_s1 + $0x5b8] ss:$12 sps:$4 sm:$0xff]   ;;  %v6733_v27 = vld [vmem:[%s9462_s1 + $0x5d4] ss:$12 sps:$4 sm:$0xff]  }
  0xc5   :  { %6253 = vmatpush3.bf16.msra.mxu1 %v6739_v33  ;;  %v6801_v6 = vld [vmem:[%s9462_s1 + $0xb48] ss:$12 sps:$4 sm:$0xff]   ;;  %v6743_v33 = vld [vmem:[%s9462_s1 + $0x604] ss:$12 sps:$4 sm:$0xff]  }
  0xc6   :  { %6254 = vmatprep.subr.bf16.mxu1 %v6740_v34  ;;  %v6805_v34 = vld [vmem:[%s9462_s1 + $0xa88] ss:$12 sps:$4 sm:$0xff]  }
  0xc7   :  { %3195 = vmatpush1.bf16.msra.mxu0 %v6666_v29  ;;  %v6731_v29 = vld [vmem:[%s9462_s1 + $0x5d0] ss:$12 sps:$4 sm:$0xff]  }
  0xc8   :  { %3196 = vmatprep.subr.bf16.mxu0 %v6673_v30  ;;  %v6738_v30 = vld [vmem:[%s9462_s1 + $0x5ec] ss:$12 sps:$4 sm:$0xff]  }
  0xc9   :  { %6255 = vmatpush3.bf16.msra.mxu1 %v6744_v37  ;;  %v6741_v37 = vld [vmem:[%s9462_s1 + $0x600] ss:$12 sps:$4 sm:$0xff]  }
  0xca   :  { %6256 = vmatprep.subr.bf16.mxu1 %v6745_v38  ;;  %v6748_v38 = vld [vmem:[%s9462_s1 + $0x61c] ss:$12 sps:$4 sm:$0xff]  }
  0xcb   :  { %3197 = vmatpush1.bf16.msra.mxu0 %v6671_v32  ;;  %v6736_v32 = vld [vmem:[%s9462_s1 + $0x5e8] ss:$12 sps:$4 sm:$0xff]  }
  0xcc   :  { %3198 = vmatprep.subr.bf16.mxu0 %v6678_v10  ;;  %v8195_v10 = vrot.slane %v8069_v49, %v7406_v16  ;;  %v6763_v49 = vld [vmem:[%s9462_s1 + $0x664] ss:$12 sps:$4 sm:$0xff]  }
  0xcd   :  { %6257 = vmatpush3.bf16.msra.mxu1 %v6749_v41  ;;  %v6746_v41 = vld [vmem:[%s9462_s1 + $0x618] ss:$12 sps:$4 sm:$0xff]  }
  0xce   :  { %6258 = vmatprep.subr.bf16.mxu1 %v6750_v42  ;;  %v6753_v42 = vld [vmem:[%s9462_s1 + $0x634] ss:$12 sps:$4 sm:$0xff]  }
  0xcf   :  { %3199 = vmatpush1.bf16.msra.mxu0 %v6676_v35  ;;  %v6806_v35 = vld [vmem:[%s9462_s1 + $0xb60] ss:$12 sps:$4 sm:$0xff]  }
  0xd0   :  { %3200 = vmatprep.subr.bf16.mxu0 %v6683_v36  ;;  %v8208_v36 = vcombine.high %v8102_v61, %v8102_v61 }
  0xd1   :  { %6259 = vmatpush3.bf16.msra.mxu1 %v6754_v47  ;;  %v6821_v47 = vld [vmem:[%s9462_s1 + $0xba8] ss:$12 sps:$4 sm:$0xff]  }
  0xd2   :  { %6260 = vmatprep.subr.bf16.mxu1 %v6755_v48  ;;  %v6756_v48 = vld [vmem:[%s9462_s1 + $0x648] ss:$12 sps:$4 sm:$0xff]  }
  0xd3   :  { %3201 = vmatpush1.bf16.msra.mxu0 %v6681_v39  ;;  %v6810_v39 = vld [vmem:[%s9462_s1 + $0xaa0] ss:$12 sps:$4 sm:$0xff]  }
  0xd4   :  { %3202 = vmatprep.subr.bf16.mxu0 %v6688_v40  ;;  %v6811_v40 = vld [vmem:[%s9462_s1 + $0xb78] ss:$12 sps:$4 sm:$0xff]  }
  0xd5   :  { %6261 = vmatpush3.bf16.msra.mxu1 %v6759_v52  ;;  %v6761_v52 = vld [vmem:[%s9462_s1 + $0x660] ss:$12 sps:$4 sm:$0xff]  }
  0xd6   :  { %6268 = vmatprep.subr.bf16.mxu1 %v6760_v53  ;;  %v6768_v53 = vld [vmem:[%s9462_s1 + $0x67c] ss:$12 sps:$4 sm:$0xff]  }
  0xd7   :  { %3203 = vmatpush1.bf16.msra.mxu0 %v6686_v45  ;;  %v6751_v45 = vld [vmem:[%s9462_s1 + $0x630] ss:$12 sps:$4 sm:$0xff]  }
  0xd8   :  { %3204 = vmatprep.subr.bf16.mxu0 %v6693_v46  ;;  %3671 = vmatmul.mubr.bf16.vlgmr.msra.gmra.mrb[20].mxu1 %v8093_v58  ;;  %v6820_v46 = vld [vmem:[%s9462_s1 + $0xad0] ss:$12 sps:$4 sm:$0xff]  }
  0xd9   :  { %6269 = vmatpush3.bf16.msra.mxu1 %v6764_v59  ;;  %3710 = vmatprep.mubr.bf16.mxu1 %v8102_v61  ;;  %v6773_v59 = vld [vmem:[%s9462_s1 + $0x694] ss:$12 sps:$4 sm:$0xff]  }
  0xda   :  { %6270 = vmatprep.subr.bf16.mxu1 %v6765_v60  ;;  %v6835_v60 = vld [vmem:[%s9462_s1 + $0xb18] ss:$12 sps:$4 sm:$0xff]  }
  0xdb   :  { %3205 = vmatpush1.bf16.msra.mxu0 %v6691_v50  ;;  %v6825_v50 = vld [vmem:[%s9462_s1 + $0xae8] ss:$12 sps:$4 sm:$0xff]  }
  0xdc   :  { %3206 = vmatprep.subr.bf16.mxu0 %v6698_v51  ;;  %v6826_v51 = vld [vmem:[%s9462_s1 + $0xbc0] ss:$12 sps:$4 sm:$0xff]  }
  0xdd   :  { %6271 = vmatpush3.bf16.msra.mxu1 %v6769_v0  ;;  %v6771_v0 = vld [vmem:[%s9462_s1 + $0x690] ss:$12 sps:$4 sm:$0xff]  }
  0xde   :  { %6272 = vmatprep.subr.bf16.mxu1 %v6770_v1  ;;  %v6778_v1 = vld [vmem:[%s9462_s1 + $0x6ac] ss:$12 sps:$4 sm:$0xff]  }
  0xdf   :  { %3207 = vmatpush1.bf16.msra.mxu0 %v6696_v55  ;;  %v6831_v55 = vld [vmem:[%s9462_s1 + $0xbd8] ss:$12 sps:$4 sm:$0xff]  }
  0xe0   :  { %3208 = vmatprep.subr.bf16.mxu0 %v6703_v56  ;;  %v6766_v56 = vld [vmem:[%s9462_s1 + $0x678] ss:$12 sps:$4 sm:$0xff]  }
  0xe1   :  { %6273 = vmatpush3.bf16.msra.mxu1 %v6774_v4 }
  0xe2   :  { %6274 = vmatprep.subr.bf16.mxu1 %v6775_v5  ;;  %v6776_v5 = vld [vmem:[%s9462_s1 + $0x6a8] ss:$12 sps:$4 sm:$0xff]  }
  0xe3   :  { %3209 = vmatpush1.bf16.msra.mxu0 %v6701_v62  ;;  %v6836_v62 = vld [vmem:[%s9462_s1 + $0xbf0] ss:$12 sps:$4 sm:$0xff]  }
  0xe4   :  { %3210 = vmatprep.subr.bf16.mxu0 %v6708_v63  ;;  %v8289_v63 = vld.sshfl [vmem:[%s9461_s0 + $0x10] sm:$0x11 pattern:$0x75316420] }
  0xe5   :  { %6275 = vmatpush3.bf16.msra.mxu1 %v6779_v11  ;;  %v732_v4 = vcombine.high %v8289_v63, %v8289_v63  ;;  %v6845_v11 = vld [vmem:[%s9462_s1 + $0xc08] ss:$12 sps:$4 sm:$0xff]  }
  0xe6   :  { %6276 = vmatprep.subr.bf16.mxu1 %v6780_v13  ;;  %v6846_v13 = vld [vmem:[%s9462_s1 + $0xce0] ss:$12 sps:$4 sm:$0xff]  }
  0xe7   :  { %3211 = vmatpush1.bf16.msra.mxu0 %v6706_v2  ;;  %v6840_v2 = vld [vmem:[%s9462_s1 + $0xb30] ss:$12 sps:$4 sm:$0xff]  }
  0xe8   :  { %3212 = vmatprep.subr.bf16.mxu0 %v6713_v3  ;;  %v6841_v3 = vld [vmem:[%s9462_s1 + $0xcc8] ss:$12 sps:$4 sm:$0xff]  }
  0xe9   :  { %6277 = vmatpush3.bf16.msra.mxu1 %v6784_v17  ;;  %v6788_v17 = vld [vmem:[%s9462_s1 + $0x6dc] ss:$12 sps:$4 sm:$0xff]  }
  0xea   :  { %6278 = vmatprep.subr.bf16.mxu1 %v6785_v18  ;;  %v6850_v18 = vld [vmem:[%s9462_s1 + $0xc20] ss:$12 sps:$4 sm:$0xff]  }
  0xeb   :  { %3213 = vmatpush1.bf16.msra.mxu0 %v6711_v8  ;;  %v6783_v8 = vld [vmem:[%s9462_s1 + $0x6c4] ss:$12 sps:$4 sm:$0xff]  }
  0xec   :  { %3214 = vmatprep.subr.bf16.mxu0 %v6718_v9  ;;  %v8313_v9 = vcombine.high %v8195_v10, %v8195_v10 }
  0xed   :  { %6279 = vmatpush3.bf16.msra.mxu1 %v6789_v23  ;;  %v6793_v23 = vld [vmem:[%s9462_s1 + $0x6f4] ss:$12 sps:$4 sm:$0xff]  }
  0xee   :  { %6280 = vmatprep.subr.bf16.mxu1 %v6790_v24  ;;  %v6855_v24 = vld [vmem:[%s9462_s1 + $0xc38] ss:$12 sps:$4 sm:$0xff]  }
  0xef   :  { %3215 = vmatpush1.bf16.msra.mxu0 %v6716_v14  ;;  %v6781_v14 = vld [vmem:[%s9462_s1 + $0x6c0] ss:$12 sps:$4 sm:$0xff]  }
  0xf0   :  { %3216 = vmatprep.subr.bf16.mxu0 %v6723_v15  ;;  %v8325_v15 = vrot.slane %v732_v4, %v7406_v16  ;;  %v6879_v4 = vld [vmem:[%s9462_s1 + $0x88c] ss:$12 sps:$4 sm:$0xff]  }
  0xf1   :  { %6281 = vmatpush3.bf16.msra.mxu1 %v6794_v19  ;;  %v6798_v19 = vld [vmem:[%s9462_s1 + $0x70c] ss:$12 sps:$4 sm:$0xff]  }
  0xf2   :  { %6282 = vmatprep.subr.bf16.mxu1 %v6795_v28  ;;  %v6860_v28 = vld [vmem:[%s9462_s1 + $0xc50] ss:$12 sps:$4 sm:$0xff]  }
  0xf3   :  { %3217 = vmatpush1.bf16.msra.mxu0 %v6721_v20  ;;  %v6851_v20 = vld [vmem:[%s9462_s1 + $0xcf8] ss:$12 sps:$4 sm:$0xff]  }
  0xf4   :  { %3218 = vmatprep.subr.bf16.mxu0 %v6728_v21  ;;  %v6786_v21 = vld [vmem:[%s9462_s1 + $0x6d8] ss:$12 sps:$4 sm:$0xff]  }
  0xf5   :  { %6283 = vmatpush3.bf16.msra.mxu1 %v6799_v31  ;;  %v6804_v31 = vld [vmem:[%s9462_s1 + $0x724] ss:$12 sps:$4 sm:$0xff]  }
  0xf6   :  { %6290 = vmatprep.subr.bf16.mxu1 %v6801_v6  ;;  %v6865_v6 = vld [vmem:[%s9462_s1 + $0xc68] ss:$12 sps:$4 sm:$0xff]  }
  0xf7   :  { %3219 = vmatpush1.bf16.msra.mxu0 %v6726_v26  ;;  %v6856_v26 = vld [vmem:[%s9462_s1 + $0xd10] ss:$12 sps:$4 sm:$0xff]  }
  0xf8   :  { %3220 = vmatprep.subr.bf16.mxu0 %v6733_v27  ;;  %3711 = vmatmul.mubr.bf16.vlgmr.msra.gmra.mrb[24].mxu1 %v8195_v10  ;;  %v6791_v27 = vld [vmem:[%s9462_s1 + $0x6f0] ss:$12 sps:$4 sm:$0xff]  }
  0xf9   :  { %6291 = vmatpush3.bf16.msra.mxu1 %v6805_v34  ;;  %3750 = vmatprep.mubr.bf16.mxu1 %v8208_v36  ;;  %v6809_v34 = vld [vmem:[%s9462_s1 + $0x73c] ss:$12 sps:$4 sm:$0xff]  }
  0xfa   :  { %6292 = vmatprep.subr.bf16.mxu1 %v6806_v35  ;;  %v6870_v35 = vld [vmem:[%s9462_s1 + $0xc80] ss:$12 sps:$4 sm:$0xff]  }
  0xfb   :  { %3221 = vmatpush1.bf16.msra.mxu0 %v6731_v29  ;;  %v6861_v29 = vld [vmem:[%s9462_s1 + $0xd28] ss:$12 sps:$4 sm:$0xff]  }
  0xfc   :  { %3222 = vmatprep.subr.bf16.mxu0 %v6738_v30  ;;  %v6796_v30 = vld [vmem:[%s9462_s1 + $0x708] ss:$12 sps:$4 sm:$0xff]  }
  0xfd   :  { %6293 = vmatpush3.bf16.msra.mxu1 %v6810_v39  ;;  %v6814_v39 = vld [vmem:[%s9462_s1 + $0x754] ss:$12 sps:$4 sm:$0xff]  }
  0xfe   :  { %6294 = vmatprep.subr.bf16.mxu1 %v6811_v40  ;;  %v6875_v40 = vld [vmem:[%s9462_s1 + $0xc98] ss:$12 sps:$4 sm:$0xff]  }
  0xff   :  { %3223 = vmatpush1.bf16.msra.mxu0 %v6736_v32  ;;  %v6866_v32 = vld [vmem:[%s9462_s1 + $0xd40] ss:$12 sps:$4 sm:$0xff]  }
 0x100   :  { %3233 = vmatprep.subr.bf16.mxu0 %v6743_v33  ;;  %v6802_v33 = vld [vmem:[%s9462_s1 + $0x720] ss:$12 sps:$4 sm:$0xff]  }
 0x101   :  { %6295 = vmatpush3.bf16.msra.mxu1 %v6815_v44  ;;  %v6819_v44 = vld [vmem:[%s9462_s1 + $0x76c] ss:$12 sps:$4 sm:$0xff]  }
 0x102   :  { %3225 = vmatmul.mubr.bf16.vlgmr.msra.gmra.mrb[0].mxu0 %v7867_v43  ;;  %v6816_v43 = vld [vmem:[%s9462_s1 + $0xb90] ss:$12 sps:$4 sm:$0xff]  }
 0x103   :  { %3234 = vmatpush1.bf16.msra.mxu0 %v6741_v37  ;;  %3265 = vmatprep.mubr.bf16.mxu0 %v7908_v57  ;;  %v6758_v57 = vld [vmem:[%s9462_s1 + $0x64c] ss:$12 sps:$4 sm:$0xff]  }
 0x104   :  { %3235 = vmatprep.subr.bf16.mxu0 %v6748_v38  ;;  %6296 = vmatprep.subr.bf16.mxu1 %v6816_v43  ;;  %v6871_v37 = vld [vmem:[%s9462_s1 + $0xd58] ss:$12 sps:$4 sm:$0xff]   ;;  %v6880_v43 = vld [vmem:[%s9462_s1 + $0xcb0] ss:$12 sps:$4 sm:$0xff]  }
 0x105   :  { %6297 = vmatpush3.bf16.msra.mxu1 %v6820_v46  ;;  %v6807_v38 = vld [vmem:[%s9462_s1 + $0x738] ss:$12 sps:$4 sm:$0xff]   ;;  %v8415_v46 = vrot.slane %v8289_v63, %v7406_v16  ;;  %v6862_v63 = vld [vmem:[%s9462_s1 + $0x840] ss:$12 sps:$4 sm:$0xff]  }
 0x106   :  { %6298 = vmatprep.subr.bf16.mxu1 %v6821_v47  ;;  %v6822_v47 = vld [vmem:[%s9462_s1 + $0x780] ss:$12 sps:$4 sm:$0xff]   ;;  %v6827_v16 = vld [vmem:[%s9462_s1 + $0x798] ss:$12 sps:$4 sm:$0xff]  }
 0x107   :  { %3236 = vmatpush1.bf16.msra.mxu0 %v6746_v41  ;;  %v6876_v41 = vld [vmem:[%s9462_s1 + $0xd70] ss:$12 sps:$4 sm:$0xff]  }
 0x108   :  { %3237 = vmatprep.subr.bf16.mxu0 %v6753_v42  ;;  %v6812_v42 = vld [vmem:[%s9462_s1 + $0x750] ss:$12 sps:$4 sm:$0xff]  }
 0x109   :  { %6299 = vmatpush3.bf16.msra.mxu1 %v6825_v50  ;;  %v6832_v50 = vld [vmem:[%s9462_s1 + $0x7b0] ss:$12 sps:$4 sm:$0xff]  }
 0x10a   :  { %6300 = vmatprep.subr.bf16.mxu1 %v6826_v51  ;;  %v6837_v51 = vld [vmem:[%s9462_s1 + $0x7c8] ss:$12 sps:$4 sm:$0xff]  }
 0x10b   :  { %3238 = vmatpush1.bf16.msra.mxu0 %v6751_v45  ;;  %v6817_v45 = vld [vmem:[%s9462_s1 + $0x768] ss:$12 sps:$4 sm:$0xff]  }
 0x10c   :  { %3239 = vmatprep.subr.bf16.mxu0 %v6758_v57  ;;  %v6824_v57 = vld [vmem:[%s9462_s1 + $0x784] ss:$12 sps:$4 sm:$0xff]  }
 0x10d   :  { %6301 = vmatpush3.bf16.msra.mxu1 %v6830_v54  ;;  %v6847_v54 = vld [vmem:[%s9462_s1 + $0x7f8] ss:$12 sps:$4 sm:$0xff]  }
 0x10e   :  { %6302 = vmatprep.subr.bf16.mxu1 %v6831_v55  ;;  %v6854_v55 = vld [vmem:[%s9462_s1 + $0x814] ss:$12 sps:$4 sm:$0xff]  }
 0x10f   :  { %3240 = vmatpush1.bf16.msra.mxu0 %v6756_v48  ;;  %v6829_v48 = vld [vmem:[%s9462_s1 + $0x79c] ss:$12 sps:$4 sm:$0xff]  }
 0x110   :  { %3241 = vmatprep.subr.bf16.mxu0 %v6763_v49  ;;  %v6834_v49 = vld [vmem:[%s9462_s1 + $0x7b4] ss:$12 sps:$4 sm:$0xff]  }
 0x111   :  { %6303 = vmatpush3.bf16.msra.mxu1 %v6835_v60  ;;  %v6857_v60 = vld [vmem:[%s9462_s1 + $0x828] ss:$12 sps:$4 sm:$0xff]  }
 0x112   :  { %6304 = vmatprep.subr.bf16.mxu1 %v6836_v62  ;;  %v6864_v62 = vld [vmem:[%s9462_s1 + $0x844] ss:$12 sps:$4 sm:$0xff]  }
 0x113   :  { %3242 = vmatpush1.bf16.msra.mxu0 %v6761_v52  ;;  %v6842_v52 = vld [vmem:[%s9462_s1 + $0x7e0] ss:$12 sps:$4 sm:$0xff]  }
 0x114   :  { %3243 = vmatprep.subr.bf16.mxu0 %v6768_v53  ;;  %v6849_v53 = vld [vmem:[%s9462_s1 + $0x7fc] ss:$12 sps:$4 sm:$0xff]  }
 0x115   :  { %6305 = vmatpush3.bf16.msra.mxu1 %v6840_v2  ;;  %v6874_v2 = vld [vmem:[%s9462_s1 + $0x874] ss:$12 sps:$4 sm:$0xff]  }
 0x116   :  { %6312 = vmatprep.subr.bf16.mxu1 %v6841_v3  ;;  %v6872_v3 = vld [vmem:[%s9462_s1 + $0x870] ss:$12 sps:$4 sm:$0xff]  }
 0x117   :  { %3244 = vmatpush1.bf16.msra.mxu0 %v6766_v56  ;;  %v6852_v56 = vld [vmem:[%s9462_s1 + $0x810] ss:$12 sps:$4 sm:$0xff]  }
 0x118   :  { %3245 = vmatprep.subr.bf16.mxu0 %v6773_v59  ;;  %3751 = vmatmul.mubr.bf16.vlgmr.msra.gmra.mrb[28].mxu1 %v8313_v9  ;;  %v6859_v59 = vld [vmem:[%s9462_s1 + $0x82c] ss:$12 sps:$4 sm:$0xff]  }
 0x119   :  { %6313 = vmatpush3.bf16.msra.mxu1 %v6845_v11  ;;  %3790 = vmatprep.mubr.bf16.mxu1 %v8325_v15  ;;  %v6881_v11 = vld [vmem:[%s9462_s1 + $0x8a0] ss:$12 sps:$4 sm:$0xff]  }
 0x11a   :  { %6314 = vmatprep.subr.bf16.mxu1 %v6846_v13  ;;  %v6886_v13 = vld [vmem:[%s9462_s1 + $0x8bc] ss:$12 sps:$4 sm:$0xff]  }
 0x11b   :  { %3246 = vmatpush1.bf16.msra.mxu0 %v6771_v0  ;;  %v6869_v0 = vld [vmem:[%s9462_s1 + $0x85c] ss:$12 sps:$4 sm:$0xff]  }
 0x11c   :  { %3247 = vmatprep.subr.bf16.mxu0 %v6778_v1  ;;  %v6867_v1 = vld [vmem:[%s9462_s1 + $0x858] ss:$12 sps:$4 sm:$0xff]  }
 0x11d   :  { %6315 = vmatpush3.bf16.msra.mxu1 %v6850_v18  ;;  %v6887_v18 = vld [vmem:[%s9462_s1 + $0x8d0] ss:$12 sps:$4 sm:$0xff]  }
 0x11e   :  { %6316 = vmatprep.subr.bf16.mxu1 %v6851_v20  ;;  %v6892_v20 = vld [vmem:[%s9462_s1 + $0x8ec] ss:$12 sps:$4 sm:$0xff]  }
 0x11f   :  { %3248 = vmatpush1.bf16.msra.mxu0 %v6776_v5  ;;  %v6877_v5 = vld [vmem:[%s9462_s1 + $0x888] ss:$12 sps:$4 sm:$0xff]  }
 0x120   :  { %3249 = vmatprep.subr.bf16.mxu0 %v6783_v8  ;;  %v6883_v8 = vld [vmem:[%s9462_s1 + $0x8a4] ss:$12 sps:$4 sm:$0xff]  }
 0x121   :  { %6317 = vmatpush3.bf16.msra.mxu1 %v6855_v24  ;;  %v6893_v24 = vld [vmem:[%s9462_s1 + $0x900] ss:$12 sps:$4 sm:$0xff]  }
 0x122   :  { %6318 = vmatprep.subr.bf16.mxu1 %v6856_v26  ;;  %v6898_v26 = vld [vmem:[%s9462_s1 + $0x91c] ss:$12 sps:$4 sm:$0xff]  }
 0x123   :  { %3250 = vmatpush1.bf16.msra.mxu0 %v6781_v14  ;;  %v6884_v14 = vld [vmem:[%s9462_s1 + $0x8b8] ss:$12 sps:$4 sm:$0xff]  }
 0x124   :  { %3251 = vmatprep.subr.bf16.mxu0 %v6788_v17  ;;  %v6889_v17 = vld [vmem:[%s9462_s1 + $0x8d4] ss:$12 sps:$4 sm:$0xff]  }
 0x125   :  { %6319 = vmatpush3.bf16.msra.mxu1 %v6860_v28  ;;  %v6899_v28 = vld [vmem:[%s9462_s1 + $0x930] ss:$12 sps:$4 sm:$0xff]  }
 0x126   :  { %6320 = vmatprep.subr.bf16.mxu1 %v6861_v29  ;;  %v6902_v29 = vld [vmem:[%s9462_s1 + $0x948] ss:$12 sps:$4 sm:$0xff]  }
 0x127   :  { %3252 = vmatpush1.bf16.msra.mxu0 %v6786_v21  ;;  %v6890_v21 = vld [vmem:[%s9462_s1 + $0x8e8] ss:$12 sps:$4 sm:$0xff]  }
 0x128   :  { %3253 = vmatprep.subr.bf16.mxu0 %v6793_v23  ;;  %v6895_v23 = vld [vmem:[%s9462_s1 + $0x904] ss:$12 sps:$4 sm:$0xff]  }
 0x129   :  { %6321 = vmatpush3.bf16.msra.mxu1 %v6865_v6  ;;  %v6908_v6 = vld [vmem:[%s9462_s1 + $0x978] ss:$12 sps:$4 sm:$0xff]  }
 0x12a   :  { %6322 = vmatprep.subr.bf16.mxu1 %v6866_v32  ;;  %v6913_v32 = vld [vmem:[%s9462_s1 + $0x994] ss:$12 sps:$4 sm:$0xff]  }
 0x12b   :  { %3254 = vmatpush1.bf16.msra.mxu0 %v6791_v27  ;;  %v6896_v27 = vld [vmem:[%s9462_s1 + $0x918] ss:$12 sps:$4 sm:$0xff]  }
 0x12c   :  { %3255 = vmatprep.subr.bf16.mxu0 %v6798_v19  ;;  %v6901_v19 = vld [vmem:[%s9462_s1 + $0x934] ss:$12 sps:$4 sm:$0xff]  }
 0x12d   :  { %6323 = vmatpush3.bf16.msra.mxu1 %v6870_v35  ;;  %v6914_v35 = vld [vmem:[%s9462_s1 + $0x9a8] ss:$12 sps:$4 sm:$0xff]  }
 0x12e   :  { %6324 = vmatprep.subr.bf16.mxu1 %v6871_v37  ;;  %v6919_v37 = vld [vmem:[%s9462_s1 + $0x9c4] ss:$12 sps:$4 sm:$0xff]  }
 0x12f   :  { %3256 = vmatpush1.bf16.msra.mxu0 %v6796_v30  ;;  %v6905_v30 = vld [vmem:[%s9462_s1 + $0x960] ss:$12 sps:$4 sm:$0xff]  }
 0x130   :  { %3257 = vmatprep.subr.bf16.mxu0 %v6804_v31  ;;  %v6910_v31 = vld [vmem:[%s9462_s1 + $0x97c] ss:$12 sps:$4 sm:$0xff]  }
 0x131   :  { %6325 = vmatpush3.bf16.msra.mxu1 %v6875_v40 }
 0x132   :  { %6326 = vmatprep.subr.bf16.mxu1 %v6876_v41 }
 0x133   :  { %3258 = vmatpush1.bf16.msra.mxu0 %v6802_v33  ;;  %v6911_v33 = vld [vmem:[%s9462_s1 + $0x990] ss:$12 sps:$4 sm:$0xff]  }
 0x134   :  { %3259 = vmatprep.subr.bf16.mxu0 %v6809_v34  ;;  %v6916_v34 = vld [vmem:[%s9462_s1 + $0x9ac] ss:$12 sps:$4 sm:$0xff]  }
 0x135   :  { %6327 = vmatpush3.bf16.msra.mxu1 %v6880_v43 }
 0x137   :  { %3260 = vmatpush1.bf16.msra.mxu0 %v6807_v38 }
 0x138   :  { %3261 = vmatprep.subr.bf16.mxu0 %v6814_v39  ;;  %3791 = vmatmul.mubr.bf16.vlgmr.msra.gmra.mrb[32].mxu1 %v8415_v46 }
 0x13b   :  { %3262 = vmatpush1.bf16.msra.mxu0 %v6812_v42 }
 0x13c   :  { %3263 = vmatprep.subr.bf16.mxu0 %v6819_v44 }
 0x13f   :  { %3264 = vmatpush1.bf16.msra.mxu0 %v6817_v45 }
 0x140   :  { %3274 = vmatprep.subr.bf16.mxu0 %v6824_v57 }
 0x142   :  { %3266 = vmatmul.mubr.bf16.vlgmr.msra.gmra.mrb[0].mxu0 %v7978_v22  ;;  %v6839_v22 = vld [vmem:[%s9462_s1 + $0x7cc] ss:$12 sps:$4 sm:$0xff]  }
 0x143   :  { %3275 = vmatpush1.bf16.msra.mxu0 %v6822_v47  ;;  %3306 = vmatprep.mubr.bf16.mxu0 %v7988_v25  ;;  %v6844_v25 = vld [vmem:[%s9462_s1 + $0x7e4] ss:$12 sps:$4 sm:$0xff]  }
 0x144   :  { %3276 = vmatprep.subr.bf16.mxu0 %v6829_v48 }
 0x147   :  { %3277 = vmatpush1.bf16.msra.mxu0 %v6827_v16 }
 0x148   :  { %3278 = vmatprep.subr.bf16.mxu0 %v6834_v49 }
 0x14b   :  { %3279 = vmatpush1.bf16.msra.mxu0 %v6832_v50 }
 0x14c   :  { %3280 = vmatprep.subr.bf16.mxu0 %v6839_v22 }
 0x14f   :  { %3281 = vmatpush1.bf16.msra.mxu0 %v6837_v51 }
 0x150   :  { %3282 = vmatprep.subr.bf16.mxu0 %v6844_v25 }
 0x153   :  { %3283 = vmatpush1.bf16.msra.mxu0 %v6842_v52 }
 0x154   :  { %3284 = vmatprep.subr.bf16.mxu0 %v6849_v53 }
 0x157   :  { %3285 = vmatpush1.bf16.msra.mxu0 %v6847_v54 }
 0x158   :  { %3286 = vmatprep.subr.bf16.mxu0 %v6854_v55 }
 0x15b   :  { %3287 = vmatpush1.bf16.msra.mxu0 %v6852_v56 }
 0x15c   :  { %3288 = vmatprep.subr.bf16.mxu0 %v6859_v59 }
 0x15f   :  { %3289 = vmatpush1.bf16.msra.mxu0 %v6857_v60 }
 0x160   :  { %3290 = vmatprep.subr.bf16.mxu0 %v6864_v62 }
 0x163   :  { %3291 = vmatpush1.bf16.msra.mxu0 %v6862_v63 }
 0x164   :  { %3292 = vmatprep.subr.bf16.mxu0 %v6869_v0 }
 0x167   :  { %3293 = vmatpush1.bf16.msra.mxu0 %v6867_v1 }
 0x168   :  { %3294 = vmatprep.subr.bf16.mxu0 %v6874_v2 }
 0x16b   :  { %3295 = vmatpush1.bf16.msra.mxu0 %v6872_v3 }
 0x16c   :  { %3296 = vmatprep.subr.bf16.mxu0 %v6879_v4 }
 0x16f   :  { %3297 = vmatpush1.bf16.msra.mxu0 %v6877_v5 }
 0x170   :  { %3298 = vmatprep.subr.bf16.mxu0 %v6883_v8 }
 0x173   :  { %3299 = vmatpush1.bf16.msra.mxu0 %v6881_v11 }
 0x174   :  { %3300 = vmatprep.subr.bf16.mxu0 %v6886_v13 }
 0x177   :  { %3301 = vmatpush1.bf16.msra.mxu0 %v6884_v14 }
 0x178   :  { %3302 = vmatprep.subr.bf16.mxu0 %v6889_v17 }
 0x17b   :  { %3303 = vmatpush1.bf16.msra.mxu0 %v6887_v18 }
 0x17c   :  { %3304 = vmatprep.subr.bf16.mxu0 %v6892_v20 }
 0x17f   :  { %3305 = vmatpush1.bf16.msra.mxu0 %v6890_v21 }
 0x180   :  { %3315 = vmatprep.subr.bf16.mxu0 %v6895_v23 }
 0x182   :  { %3307 = vmatmul.mubr.bf16.vlgmr.msra.gmra.mrb[0].mxu0 %v8093_v58  ;;  %v6904_v58 = vld [vmem:[%s9462_s1 + $0x94c] ss:$12 sps:$4 sm:$0xff]  }
 0x183   :  { %3316 = vmatpush1.bf16.msra.mxu0 %v6893_v24  ;;  %3347 = vmatprep.mubr.bf16.mxu0 %v8102_v61  ;;  %v6907_v61 = vld [vmem:[%s9462_s1 + $0x964] ss:$12 sps:$4 sm:$0xff]  }
 0x184   :  { %3317 = vmatprep.subr.bf16.mxu0 %v6898_v26 }
 0x187   :  { %3318 = vmatpush1.bf16.msra.mxu0 %v6896_v27 }
 0x188   :  { %3319 = vmatprep.subr.bf16.mxu0 %v6901_v19 }
 0x18b   :  { %3320 = vmatpush1.bf16.msra.mxu0 %v6899_v28 }
 0x18c   :  { %3321 = vmatprep.subr.bf16.mxu0 %v6904_v58 }
 0x18f   :  { %3322 = vmatpush1.bf16.msra.mxu0 %v6902_v29 }
 0x190   :  { %3323 = vmatprep.subr.bf16.mxu0 %v6907_v61 }
 0x193   :  { %3324 = vmatpush1.bf16.msra.mxu0 %v6905_v30 }
 0x194   :  { %3325 = vmatprep.subr.bf16.mxu0 %v6910_v31 }
 0x197   :  { %3326 = vmatpush1.bf16.msra.mxu0 %v6908_v6 }
 0x198   :  { %3327 = vmatprep.subr.bf16.mxu0 %v6913_v32 }
 0x19b   :  { %3328 = vmatpush1.bf16.msra.mxu0 %v6911_v33 }
 0x19c   :  { %3329 = vmatprep.subr.bf16.mxu0 %v6916_v34 }
 0x19d   :  { %12 = vsyncpa [#allocation3], 0  ;;  %v6917_v38 = vld [vmem:[%s9462_s1 + $0x9c0] ss:$12 sps:$4 sm:$0xff]   ;;  %v6922_v39 = vld [vmem:[%s9462_s1 + $0x9dc] ss:$12 sps:$4 sm:$0xff]  }
 0x19e   :  { %v6920_v40 = vld [vmem:[%s9462_s1 + $0x9d8] ss:$12 sps:$4 sm:$0xff]   ;;  %v6152_v41 = vpop.f32.mrb[0].mxu1  ;;  %v8578_v42 = vld [vmem:[%s9463_s2] sm:$0x7]  ;;  %v619_v44 = vsub.s32 2, %v7397_v12 }
 0x19f   :  { %3330 = vmatpush1.bf16.msra.mxu0 %v6914_v35  ;;  %v6925_v43 = vld [vmem:[%s9462_s1 + $0x9f4] ss:$12 sps:$4 sm:$0xff]   ;;  %v6153_v45 = vpop.f32.mrb[1].mxu1  ;;  %v6923_v49 = vld [vmem:[%s9462_s1 + $0x9f0] ss:$12 sps:$4 sm:$0xff]   ;;  %vm5473_vm1 = vcmask 1041408  }
 0x1a0   :  { %3331 = vmatprep.subr.bf16.mxu0 %v6919_v37  ;;  %v620_v57 = vrot.slane %v8578_v42, %v619_v44  ;;  %v6154_v47 = vadd.f32 %v6153_v45, %v6152_v41  ;;  %v6155_v48 = vpop.f32.mrb[2].mxu1  ;;  %v6928_v51 = vld [vmem:[%s9462_s1 + $0xa0c] ss:$12 sps:$4 sm:$0xff]   ;;  %v6926_v55 = vld [vmem:[%s9462_s1 + $0xa08] ss:$12 sps:$4 sm:$0xff]   ;;  %s7328_s21 = smov [#allocation2]  }
 0x1a1   :  { %v6156_v16 = vpop.f32.mrb[3].mxu1  ;;  %v6931_v60 = vld [vmem:[%s9462_s1 + $0xa24] ss:$12 sps:$4 sm:$0xff]   ;;  %v6929_v2 = vld [vmem:[%s9462_s1 + $0xa20] ss:$12 sps:$4 sm:$0xff]   ;;  %s5502_s0 = sshll.u32 %s7328_s21, 4  ;;  %s5503_s0 = int_to_ptr.vmem [resolvable:$true] %s5502_s0 }
 0x1a2   :  { %v3473_v50 = vadd.f32 %v6154_v47, %v620_v57  ;;  %v6174_v22 = vpop.f32.mrb[4].mxu1  ;;  %v6934_v5 = vld [vmem:[%s9462_s1 + $0xa3c] ss:$12 sps:$4 sm:$0xff]   ;;  %v6932_v17 = vld [vmem:[%s9462_s1 + $0xa38] ss:$12 sps:$4 sm:$0xff]   ;;  %s7301_s22 = scalar_lea.vmem %s5503_s0, 32  ;;  %p7306_p1 = scmp.lt.s32.totalorder %s5503_s0, %s5503_s0 }
 0x1a3   :  { %3332 = vmatpush1.bf16.msra.mxu0 %v6917_v38  ;;  %v6175_v25 = vpop.f32.mrb[5].mxu1  ;;  %v6937_v21 = vld [vmem:[%s9462_s1 + $0xa54] ss:$12 sps:$4 sm:$0xff]   ;;  %v6935_v19 = vld [vmem:[%s9462_s1 + $0xa50] ss:$12 sps:$4 sm:$0xff]   ;;  %p7302_p0 = scmp.ne.s32.totalorder %s5503_s0, %s7301_s22  ;;  %p7307_p2 = scmp.lt.s32.totalorder %s7301_s22, %s7301_s22 }
 0x1a4   :  { %3333 = vmatprep.subr.bf16.mxu0 %v6922_v39  ;;  %v6176_v52 = vadd.f32 %v6175_v25, %v6174_v22  ;;  %v6177_v53 = vpop.f32.mrb[6].mxu1  ;;  %v6940_v29 = vld [vmem:[%s9462_s1 + $0xa6c] ss:$12 sps:$4 sm:$0xff]   ;;  %v6938_v32 = vld [vmem:[%s9462_s1 + $0xa68] ss:$12 sps:$4 sm:$0xff]  }
 0x1a5   :  { %v6178_v54 = vpop.f32.mrb[7].mxu1  ;;  %v6943_v34 = vld [vmem:[%s9462_s1 + $0xa84] ss:$12 sps:$4 sm:$0xff]   ;;  %v6941_v35 = vld [vmem:[%s9462_s1 + $0xa80] ss:$12 sps:$4 sm:$0xff]   ;;  %p7308_p3 = por %p7307_p2, %p7306_p1 }
 0x1a6   :  { %v3513_v56 = vadd.f32 %v6176_v52, %v3473_v50  ;;  %v6196_v59 = vpop.f32.mrb[8].mxu1  ;;  %v6946_v37 = vld [vmem:[%s9462_s1 + $0xa9c] ss:$12 sps:$4 sm:$0xff]   ;;  %v7037_v38 = vld [vmem:[%s9464_s3] ss:$24 sps:$4 sm:$0xff]  }
 0x1a7   :  { %3334 = vmatpush1.bf16.msra.mxu0 %v6920_v40  ;;  %v6197_v62 = vpop.f32.mrb[9].mxu1  ;;  %v7039_v39 = vld [vmem:[%s9464_s3 + $0x4] ss:$24 sps:$4 sm:$0xff]   ;;  %v7042_v41 = vld [vmem:[%s9464_s3 + $0x34] ss:$24 sps:$4 sm:$0xff]   ;;  %p7309_p4 = pnand %p7308_p3, %p7302_p0 }
 0x1a8   :  { %3335 = vmatprep.subr.bf16.mxu0 %v6925_v43  ;;  %v6198_v63 = vadd.f32 %v6197_v62, %v6196_v59  ;;  %v6199_v0 = vpop.f32.mrb[10].mxu1  ;;  %v6944_v40 = vld [vmem:[%s9462_s1 + $0xa98] ss:$12 sps:$4 sm:$0xff]   ;;  %4700 = vmatprep.subr.bf16.mxu1 %v7039_v39  ;;  %v7040_v43 = vld [vmem:[%s9464_s3 + $0x30] ss:$24 sps:$4 sm:$0xff]  }
 0x1a9   :  { %v6200_v1 = vpop.f32.mrb[11].mxu1  ;;  %4701 = vmatpush1.bf16.msra.mxu1 %v7037_v38  ;;  %v6947_v45 = vld [vmem:[%s9462_s1 + $0xab0] ss:$12 sps:$4 sm:$0xff]   ;;  %v6952_v57 = vld [vmem:[%s9462_s1 + $0xacc] ss:$12 sps:$4 sm:$0xff]  }
 0x1aa   :  { %v3553_v3 = vadd.f32 %v6198_v63, %v3513_v56  ;;  %v6218_v4 = vpop.f32.mrb[12].mxu1  ;;  %4702 = vmatprep.subr.bf16.mxu1 %v7042_v41  ;;  %v7043_v47 = vld [vmem:[%s9464_s3 + $0x60] ss:$24 sps:$4 sm:$0xff]   ;;  %v7048_v48 = vld [vmem:[%s9464_s3 + $0x94] ss:$24 sps:$4 sm:$0xff]  }
 0x1ab   :  { %3336 = vmatpush1.bf16.msra.mxu0 %v6923_v49  ;;  %v6219_v8 = vpop.f32.mrb[13].mxu1  ;;  %v6950_v16 = vld [vmem:[%s9462_s1 + $0xac8] ss:$12 sps:$4 sm:$0xff]   ;;  %v6955_v49 = vld [vmem:[%s9462_s1 + $0xae4] ss:$12 sps:$4 sm:$0xff]  }
 0x1ac   :  { %3337 = vmatprep.subr.bf16.mxu0 %v6928_v51  ;;  %v6220_v11 = vadd.f32 %v6219_v8, %v6218_v4  ;;  %v6221_v13 = vpop.f32.mrb[14].mxu1  ;;  %v7046_v50 = vld [vmem:[%s9464_s3 + $0x90] ss:$24 sps:$4 sm:$0xff]   ;;  %v7051_v22 = vld [vmem:[%s9464_s3 + $0xc4] ss:$24 sps:$4 sm:$0xff]  }
 0x1ad   :  { %v6222_v14 = vpop.f32.mrb[15].mxu1  ;;  %4703 = vmatpush1.bf16.msra.mxu1 %v7040_v43  ;;  %v6953_v51 = vld [vmem:[%s9462_s1 + $0xae0] ss:$12 sps:$4 sm:$0xff]   ;;  %v6958_v25 = vld [vmem:[%s9462_s1 + $0xafc] ss:$12 sps:$4 sm:$0xff]  }
 0x1ae   :  { %v3593_v18 = vadd.f32 %v6220_v11, %v3553_v3  ;;  %v6240_v20 = vpop.f32.mrb[16].mxu1  ;;  %v7049_v52 = vld [vmem:[%s9464_s3 + $0xc0] ss:$24 sps:$4 sm:$0xff]   ;;  %v7054_v54 = vld [vmem:[%s9464_s3 + $0xf4] ss:$24 sps:$4 sm:$0xff]  }
 0x1af   :  { %3338 = vmatpush1.bf16.msra.mxu0 %v6926_v55  ;;  %v6241_v23 = vpop.f32.mrb[17].mxu1  ;;  %v6956_v55 = vld [vmem:[%s9462_s1 + $0xaf8] ss:$12 sps:$4 sm:$0xff]   ;;  %v6961_v59 = vld [vmem:[%s9462_s1 + $0xb14] ss:$12 sps:$4 sm:$0xff]  }
 0x1b0   :  { %3339 = vmatprep.subr.bf16.mxu0 %v6931_v60  ;;  %v6242_v24 = vadd.f32 %v6241_v23, %v6240_v20  ;;  %v6243_v26 = vpop.f32.mrb[18].mxu1  ;;  %v7052_v0 = vld [vmem:[%s9464_s3 + $0xf0] ss:$24 sps:$4 sm:$0xff]   ;;  %v6964_v4 = vld [vmem:[%s9462_s1 + $0xb2c] ss:$12 sps:$4 sm:$0xff]  }
 0x1b1   :  { %v6244_v27 = vpop.f32.mrb[19].mxu1  ;;  %v6959_v3 = vld [vmem:[%s9462_s1 + $0xb10] ss:$12 sps:$4 sm:$0xff]   ;;  %v7060_v8 = vld [vmem:[%s9464_s3 + $0x154] ss:$24 sps:$4 sm:$0xff]  }
 0x1b2   :  { %v3633_v28 = vadd.f32 %v6242_v24, %v3593_v18  ;;  %v6262_v58 = vpop.f32.mrb[20].mxu1  ;;  %v6962_v11 = vld [vmem:[%s9462_s1 + $0xb28] ss:$12 sps:$4 sm:$0xff]   ;;  %v6967_v13 = vld [vmem:[%s9462_s1 + $0xb44] ss:$12 sps:$4 sm:$0xff]  }
 0x1b3   :  { %3340 = vmatpush1.bf16.msra.mxu0 %v6929_v2  ;;  %v6263_v61 = vpop.f32.mrb[21].mxu1  ;;  %v7057_v2 = vld [vmem:[%s9464_s3 + $0x124] ss:$24 sps:$4 sm:$0xff]   ;;  %v7058_v14 = vld [vmem:[%s9464_s3 + $0x150] ss:$24 sps:$4 sm:$0xff]  }
 0x1b4   :  { %3341 = vmatprep.subr.bf16.mxu0 %v6934_v5  ;;  %v6264_v30 = vadd.f32 %v6263_v61, %v6262_v58  ;;  %v6265_v31 = vpop.f32.mrb[22].mxu1  ;;  %v7055_v5 = vld [vmem:[%s9464_s3 + $0x120] ss:$24 sps:$4 sm:$0xff]   ;;  %v6970_v20 = vld [vmem:[%s9462_s1 + $0xb5c] ss:$12 sps:$4 sm:$0xff]  }
 0x1b5   :  { %v6266_v6 = vpop.f32.mrb[23].mxu1  ;;  %v6965_v18 = vld [vmem:[%s9462_s1 + $0xb40] ss:$12 sps:$4 sm:$0xff]   ;;  %v6968_v24 = vld [vmem:[%s9462_s1 + $0xb58] ss:$12 sps:$4 sm:$0xff]  }
 0x1b6   :  { %v3673_v33 = vadd.f32 %v6264_v30, %v3633_v28  ;;  %v7066_v23 = vld [vmem:[%s9464_s3 + $0x1b4] ss:$24 sps:$4 sm:$0xff]   ;;  %v7064_v27 = vld [vmem:[%s9464_s3 + $0x1b0] ss:$24 sps:$4 sm:$0xff]   ;;  %v6980_v39 = vld [vmem:[%s9462_s1 + $0xbb8] ss:$12 sps:$4 sm:$0xff]  }
 0x1b7   :  { %3342 = vmatpush1.bf16.msra.mxu0 %v6932_v17  ;;  %v7063_v17 = vld [vmem:[%s9464_s3 + $0x184] ss:$24 sps:$4 sm:$0xff]   ;;  %v6973_v26 = vld [vmem:[%s9462_s1 + $0xb74] ss:$12 sps:$4 sm:$0xff]   ;;  %v6976_v58 = vld [vmem:[%s9462_s1 + $0xb8c] ss:$12 sps:$4 sm:$0xff]  }
 0x1b8   :  { %3343 = vmatprep.subr.bf16.mxu0 %v6937_v21  ;;  %v7061_v21 = vld [vmem:[%s9464_s3 + $0x180] ss:$24 sps:$4 sm:$0xff]   ;;  %v6971_v28 = vld [vmem:[%s9462_s1 + $0xb70] ss:$12 sps:$4 sm:$0xff]   ;;  %v7072_v61 = vld [vmem:[%s9464_s3 + $0x214] ss:$24 sps:$4 sm:$0xff]  }
 0x1b9   :  { %v6974_v30 = vld [vmem:[%s9462_s1 + $0xb88] ss:$12 sps:$4 sm:$0xff]   ;;  %v6979_v31 = vld [vmem:[%s9462_s1 + $0xba4] ss:$12 sps:$4 sm:$0xff]  }
 0x1ba   :  { %v7070_v6 = vld [vmem:[%s9464_s3 + $0x210] ss:$24 sps:$4 sm:$0xff]   ;;  %v7078_v38 = vld [vmem:[%s9464_s3 + $0x274] ss:$24 sps:$4 sm:$0xff]  }
 0x1bb   :  { %3344 = vmatpush1.bf16.msra.mxu0 %v6935_v19  ;;  %v7069_v19 = vld [vmem:[%s9464_s3 + $0x1e4] ss:$24 sps:$4 sm:$0xff]   ;;  %v6985_v41 = vld [vmem:[%s9462_s1 + $0xbd4] ss:$12 sps:$4 sm:$0xff]  }
 0x1bc   :  { %3345 = vmatprep.subr.bf16.mxu0 %v6940_v29  ;;  %v7067_v29 = vld [vmem:[%s9464_s3 + $0x1e0] ss:$24 sps:$4 sm:$0xff]  }
 0x1bf   :  { %3346 = vmatpush1.bf16.msra.mxu0 %v6938_v32  ;;  %v7075_v32 = vld [vmem:[%s9464_s3 + $0x244] ss:$24 sps:$4 sm:$0xff]  }
 0x1c0   :  { %3356 = vmatprep.subr.bf16.mxu0 %v6943_v34  ;;  %v6982_v34 = vld [vmem:[%s9462_s1 + $0xbbc] ss:$12 sps:$4 sm:$0xff]  }
 0x1c2   :  { %3348 = vmatmul.mubr.bf16.vlgmr.msra.gmra.mrb[0].mxu0 %v8195_v10  ;;  %v6949_v10 = vld [vmem:[%s9462_s1 + $0xab4] ss:$12 sps:$4 sm:$0xff]  }
 0x1c3   :  { %3357 = vmatpush1.bf16.msra.mxu0 %v6941_v35  ;;  %3388 = vmatprep.mubr.bf16.mxu0 %v8208_v36  ;;  %v7045_v36 = vld [vmem:[%s9464_s3 + $0x64] ss:$24 sps:$4 sm:$0xff]   ;;  %v7073_v35 = vld [vmem:[%s9464_s3 + $0x240] ss:$24 sps:$4 sm:$0xff]  }
 0x1c4   :  { %3358 = vmatprep.subr.bf16.mxu0 %v6946_v37  ;;  %4704 = vmatprep.subr.bf16.mxu1 %v7045_v36 }
 0x1c5   :  { %4705 = vmatpush1.bf16.msra.mxu1 %v7043_v47  ;;  %v6983_v47 = vld [vmem:[%s9462_s1 + $0xbd0] ss:$12 sps:$4 sm:$0xff]  }
 0x1c6   :  { %4706 = vmatprep.subr.bf16.mxu1 %v7048_v48  ;;  %v6988_v48 = vld [vmem:[%s9462_s1 + $0xbec] ss:$12 sps:$4 sm:$0xff]  }
 0x1c7   :  { %3359 = vmatpush1.bf16.msra.mxu0 %v6944_v40 }
 0x1c8   :  { %3360 = vmatprep.subr.bf16.mxu0 %v6949_v10 }
 0x1c9   :  { %4707 = vmatpush1.bf16.msra.mxu1 %v7046_v50  ;;  %v6989_v50 = vld [vmem:[%s9462_s1 + $0xc00] ss:$12 sps:$4 sm:$0xff]  }
 0x1ca   :  { %4708 = vmatprep.subr.bf16.mxu1 %v7051_v22  ;;  %v6994_v22 = vld [vmem:[%s9462_s1 + $0xc1c] ss:$12 sps:$4 sm:$0xff]  }
 0x1cb   :  { %3361 = vmatpush1.bf16.msra.mxu0 %v6947_v45  ;;  %v6284_v53 = vpop.f32.mrb[24].mxu1  ;;  %v7076_v45 = vld [vmem:[%s9464_s3 + $0x270] ss:$24 sps:$4 sm:$0xff]  }
 0x1cc   :  { %3362 = vmatprep.subr.bf16.mxu0 %v6952_v57  ;;  %v6285_v56 = vpop.f32.mrb[25].mxu1 }
 0x1cd   :  { %v6286_v60 = vadd.f32 %v6285_v56, %v6284_v53  ;;  %v6287_v62 = vpop.f32.mrb[26].mxu1  ;;  %4709 = vmatpush1.bf16.msra.mxu1 %v7049_v52  ;;  %v6995_v52 = vld [vmem:[%s9462_s1 + $0xc30] ss:$12 sps:$4 sm:$0xff]  }
 0x1ce   :  { %v6288_v63 = vpop.f32.mrb[27].mxu1  ;;  %4710 = vmatprep.subr.bf16.mxu1 %v7054_v54  ;;  %v7003_v53 = vld [vmem:[%s9462_s1 + $0xc64] ss:$12 sps:$4 sm:$0xff]   ;;  %v7001_v54 = vld [vmem:[%s9462_s1 + $0xc60] ss:$12 sps:$4 sm:$0xff]  }
 0x1cf   :  { %3363 = vmatpush1.bf16.msra.mxu0 %v6950_v16  ;;  %v8697_v1 = vadd.f32 %v6286_v60, %v3673_v33  ;;  %v6977_v33 = vld [vmem:[%s9462_s1 + $0xba0] ss:$12 sps:$4 sm:$0xff]   ;;  %v6986_v16 = vld [vmem:[%s9462_s1 + $0xbe8] ss:$12 sps:$4 sm:$0xff]  }
 0x1d0   :  { %3364 = vmatprep.subr.bf16.mxu0 %v6955_v49  ;;  %v6991_v49 = vld [vmem:[%s9462_s1 + $0xc04] ss:$12 sps:$4 sm:$0xff]   ;;  %v7009_v62 = vld [vmem:[%s9462_s1 + $0xc94] ss:$12 sps:$4 sm:$0xff]  }
 0x1d1   :  { %4711 = vmatpush1.bf16.msra.mxu1 %v7052_v0 }
 0x1d2   :  { %4712 = vmatprep.subr.bf16.mxu1 %v7057_v2 }
 0x1d3   :  { %3365 = vmatpush1.bf16.msra.mxu0 %v6953_v51  ;;  %v6992_v51 = vld [vmem:[%s9462_s1 + $0xc18] ss:$12 sps:$4 sm:$0xff]  }
 0x1d4   :  { %3366 = vmatprep.subr.bf16.mxu0 %v6958_v25  ;;  %v6997_v25 = vld [vmem:[%s9462_s1 + $0xc34] ss:$12 sps:$4 sm:$0xff]  }
 0x1d5   :  { %4713 = vmatpush1.bf16.msra.mxu1 %v7055_v5  ;;  %v7010_v5 = vld [vmem:[%s9462_s1 + $0xca8] ss:$12 sps:$4 sm:$0xff]  }
 0x1d6   :  { %4714 = vmatprep.subr.bf16.mxu1 %v7060_v8  ;;  %v7015_v8 = vld [vmem:[%s9462_s1 + $0xcc4] ss:$12 sps:$4 sm:$0xff]  }
 0x1d7   :  { %3367 = vmatpush1.bf16.msra.mxu0 %v6956_v55  ;;  %v7006_v55 = vld [vmem:[%s9462_s1 + $0xc7c] ss:$12 sps:$4 sm:$0xff]  }
 0x1d8   :  { %3368 = vmatprep.subr.bf16.mxu0 %v6961_v59  ;;  %v7004_v59 = vld [vmem:[%s9462_s1 + $0xc78] ss:$12 sps:$4 sm:$0xff]  }
 0x1d9   :  { %4715 = vmatpush1.bf16.msra.mxu1 %v7058_v14  ;;  %v7016_v14 = vld [vmem:[%s9462_s1 + $0xcd8] ss:$12 sps:$4 sm:$0xff]  }
 0x1da   :  { %4716 = vmatprep.subr.bf16.mxu1 %v7063_v17  ;;  %v7021_v17 = vld [vmem:[%s9462_s1 + $0xcf4] ss:$12 sps:$4 sm:$0xff]  }
 0x1db   :  { %3369 = vmatpush1.bf16.msra.mxu0 %v6959_v3  ;;  %v7007_v3 = vld [vmem:[%s9462_s1 + $0xc90] ss:$12 sps:$4 sm:$0xff]  }
 0x1dc   :  { %3370 = vmatprep.subr.bf16.mxu0 %v6964_v4  ;;  %v7012_v4 = vld [vmem:[%s9462_s1 + $0xcac] ss:$12 sps:$4 sm:$0xff]  }
 0x1dd   :  { %4717 = vmatpush1.bf16.msra.mxu1 %v7061_v21  ;;  %v7022_v21 = vld [vmem:[%s9462_s1 + $0xd08] ss:$12 sps:$4 sm:$0xff]  }
 0x1de   :  { %4718 = vmatprep.subr.bf16.mxu1 %v7066_v23  ;;  %v7027_v23 = vld [vmem:[%s9462_s1 + $0xd24] ss:$12 sps:$4 sm:$0xff]  }
 0x1df   :  { %3371 = vmatpush1.bf16.msra.mxu0 %v6962_v11  ;;  %v7013_v11 = vld [vmem:[%s9462_s1 + $0xcc0] ss:$12 sps:$4 sm:$0xff]  }
 0x1e0   :  { %3372 = vmatprep.subr.bf16.mxu0 %v6967_v13  ;;  %v7018_v13 = vld [vmem:[%s9462_s1 + $0xcdc] ss:$12 sps:$4 sm:$0xff]  }
 0x1e1   :  { %4719 = vmatpush1.bf16.msra.mxu1 %v7064_v27  ;;  %v7028_v27 = vld [vmem:[%s9462_s1 + $0xd38] ss:$12 sps:$4 sm:$0xff]  }
 0x1e2   :  { %4720 = vmatprep.subr.bf16.mxu1 %v7069_v19  ;;  %v7033_v19 = vld [vmem:[%s9462_s1 + $0xd54] ss:$12 sps:$4 sm:$0xff]  }
 0x1e3   :  { %3373 = vmatpush1.bf16.msra.mxu0 %v6965_v18  ;;  %v7019_v18 = vld [vmem:[%s9462_s1 + $0xcf0] ss:$12 sps:$4 sm:$0xff]  }
 0x1e4   :  { %3374 = vmatprep.subr.bf16.mxu0 %v6970_v20  ;;  %v7024_v20 = vld [vmem:[%s9462_s1 + $0xd0c] ss:$12 sps:$4 sm:$0xff]  }
 0x1e5   :  { %4721 = vmatpush1.bf16.msra.mxu1 %v7067_v29  ;;  %v7034_v29 = vld [vmem:[%s9462_s1 + $0xd68] ss:$12 sps:$4 sm:$0xff]  }
 0x1e6   :  { %4722 = vmatprep.subr.bf16.mxu1 %v7072_v61  ;;  %v7081_v61 = vld [vmem:[%s9464_s3 + $0x2a4] ss:$24 sps:$4 sm:$0xff]  }
 0x1e7   :  { %3375 = vmatpush1.bf16.msra.mxu0 %v6968_v24  ;;  %v7025_v24 = vld [vmem:[%s9462_s1 + $0xd20] ss:$12 sps:$4 sm:$0xff]  }
 0x1e8   :  { %3376 = vmatprep.subr.bf16.mxu0 %v6973_v26  ;;  %v7030_v26 = vld [vmem:[%s9462_s1 + $0xd3c] ss:$12 sps:$4 sm:$0xff]  }
 0x1e9   :  { %4723 = vmatpush1.bf16.msra.mxu1 %v7070_v6  ;;  %v7082_v6 = vld [vmem:[%s9464_s3 + $0x2d0] ss:$24 sps:$4 sm:$0xff]  }
 0x1ea   :  { %4724 = vmatprep.subr.bf16.mxu1 %v7075_v32  ;;  %v611_v32 = vsub.s32 0, %v7397_v12 }
 0x1eb   :  { %3377 = vmatpush1.bf16.msra.mxu0 %v6971_v28  ;;  %v6306_v37 = vpop.f32.mrb[28].mxu1  ;;  %v7031_v28 = vld [vmem:[%s9462_s1 + $0xd50] ss:$12 sps:$4 sm:$0xff]  }
 0x1ec   :  { %3378 = vmatprep.subr.bf16.mxu0 %v6976_v58  ;;  %v6307_v40 = vpop.f32.mrb[29].mxu1  ;;  %v7036_v58 = vld [vmem:[%s9462_s1 + $0xd6c] ss:$12 sps:$4 sm:$0xff]  }
 0x1ed   :  { %v6308_v10 = vadd.f32 %v6307_v40, %v6306_v37  ;;  %v6309_v43 = vpop.f32.mrb[30].mxu1  ;;  %4725 = vmatpush1.bf16.msra.mxu1 %v7073_v35 }
 0x1ee   :  { %v6310_v36 = vpop.f32.mrb[31].mxu1  ;;  %4726 = vmatprep.subr.bf16.mxu1 %v7078_v38 }
 0x1ef   :  { %3379 = vmatpush1.bf16.msra.mxu0 %v6974_v30  ;;  %v3753_v57 = vadd.f32 %v6308_v10, %v8697_v1  ;;  %v7079_v30 = vld [vmem:[%s9464_s3 + $0x2a0] ss:$24 sps:$4 sm:$0xff]  }
 0x1f0   :  { %3380 = vmatprep.subr.bf16.mxu0 %v6979_v31  ;;  %v7084_v31 = vld [vmem:[%s9464_s3 + $0x2d4] ss:$24 sps:$4 sm:$0xff]  }
 0x1f1   :  { %4727 = vmatpush1.bf16.msra.mxu1 %v7076_v45 }
 0x1f2   :  { %4728 = vmatprep.subr.bf16.mxu1 %v7081_v61  ;;  %v7147_v61 = vld [vmem:[%s9464_s3 + $0x24c] ss:$24 sps:$4 sm:$0xff]  }
 0x1f3   :  { %3381 = vmatpush1.bf16.msra.mxu0 %v6977_v33  ;;  %v615_v33 = vsub.s32 1, %v7397_v12 }
 0x1f4   :  { %3382 = vmatprep.subr.bf16.mxu0 %v6982_v34  ;;  %v612_v34 = vrot.slane %v8578_v42, %v611_v32 }
 0x1f5   :  { %4729 = vmatpush1.bf16.msra.mxu1 %v7079_v30  ;;  %v616_v35 = vrot.slane %v8578_v42, %v615_v33  ;;  %v7090_v42 = vld [vmem:[%s9464_s3 + $0x334] ss:$24 sps:$4 sm:$0xff]   ;;  %v7145_v30 = vld [vmem:[%s9464_s3 + $0x248] ss:$24 sps:$4 sm:$0xff]  }
 0x1f6   :  { %4730 = vmatprep.subr.bf16.mxu1 %v7084_v31  ;;  %v7150_v31 = vld [vmem:[%s9464_s3 + $0x27c] ss:$24 sps:$4 sm:$0xff]  }
 0x1f7   :  { %3383 = vmatpush1.bf16.msra.mxu0 %v6980_v39 }
 0x1f8   :  { %3384 = vmatprep.subr.bf16.mxu0 %v6985_v41 }
 0x1f9   :  { %4731 = vmatpush1.bf16.msra.mxu1 %v7082_v6  ;;  %v7148_v6 = vld [vmem:[%s9464_s3 + $0x278] ss:$24 sps:$4 sm:$0xff]  }
 0x1fb   :  { %3385 = vmatpush1.bf16.msra.mxu0 %v6983_v47 }
 0x1fc   :  { %3386 = vmatprep.subr.bf16.mxu0 %v6988_v48  ;;  %v7088_v48 = vld [vmem:[%s9464_s3 + $0x330] ss:$24 sps:$4 sm:$0xff]  }
 0x1ff   :  { %3387 = vmatpush1.bf16.msra.mxu0 %v6986_v16  ;;  %v7326_v16 = vmov 0  }
 0x200   :  { %3397 = vmatprep.subr.bf16.mxu0 %v6991_v49  ;;  %v7093_v49 = vld [vmem:[%s9464_s3 + $0x364] ss:$24 sps:$4 sm:$0xff]  }
 0x202   :  { %3389 = vmatmul.mubr.bf16.vlgmr.msra.gmra.mrb[0].mxu0 %v8313_v9  ;;  %v7000_v9 = vld [vmem:[%s9462_s1 + $0xc4c] ss:$12 sps:$4 sm:$0xff]  }
 0x203   :  { %3398 = vmatpush1.bf16.msra.mxu0 %v6989_v50  ;;  %3429 = vmatprep.mubr.bf16.mxu0 %v8325_v15  ;;  %v6998_v15 = vld [vmem:[%s9462_s1 + $0xc48] ss:$12 sps:$4 sm:$0xff]   ;;  %v7091_v50 = vld [vmem:[%s9464_s3 + $0x360] ss:$24 sps:$4 sm:$0xff]  }
 0x204   :  { %3399 = vmatprep.subr.bf16.mxu0 %v6994_v22  ;;  %v7096_v22 = vld [vmem:[%s9464_s3 + $0x394] ss:$24 sps:$4 sm:$0xff]  }
 0x207   :  { %3400 = vmatpush1.bf16.msra.mxu0 %v6992_v51  ;;  %v7094_v51 = vld [vmem:[%s9464_s3 + $0x390] ss:$24 sps:$4 sm:$0xff]  }
 0x208   :  { %3401 = vmatprep.subr.bf16.mxu0 %v6997_v25  ;;  %v7099_v25 = vld [vmem:[%s9464_s3 + $0x3c4] ss:$24 sps:$4 sm:$0xff]  }
 0x20b   :  { %3402 = vmatpush1.bf16.msra.mxu0 %v6995_v52  ;;  %v6328_v56 = vpop.f32.mrb[32].mxu1  ;;  %v7097_v52 = vld [vmem:[%s9464_s3 + $0x3c0] ss:$24 sps:$4 sm:$0xff]  }
 0x20c   :  { %3403 = vmatprep.subr.bf16.mxu0 %v7000_v9  ;;  %v6329_v60 = vpop.f32.mrb[33].mxu1  ;;  %v7102_v9 = vld [vmem:[%s9464_s3 + $0x3f4] ss:$24 sps:$4 sm:$0xff]  }
 0x20d   :  { %v6330_v63 = vadd.f32 %v6329_v60, %v6328_v56  ;;  %v6331_v0 = vpop.f32.mrb[34].mxu1  ;;  %v7106_v56 = vld [vmem:[%s9464_s3 + $0x450] ss:$24 sps:$4 sm:$0xff]   ;;  %v7111_v60 = vld [vmem:[%s9464_s3 + $0xc] ss:$24 sps:$4 sm:$0xff]  }
 0x20e   :  { %v6332_v1 = vpop.f32.mrb[35].mxu1  ;;  %v7114_v0 = vld [vmem:[%s9464_s3 + $0x3c] ss:$24 sps:$4 sm:$0xff]  }
 0x20f   :  { %3404 = vmatpush1.bf16.msra.mxu0 %v6998_v15  ;;  %v8846_v2 = vadd.f32 %v6330_v63, %v3753_v57  ;;  %v7085_v57 = vld [vmem:[%s9464_s3 + $0x300] ss:$24 sps:$4 sm:$0xff]   ;;  %v7100_v15 = vld [vmem:[%s9464_s3 + $0x3f0] ss:$24 sps:$4 sm:$0xff]  }
 0x210   :  { %3405 = vmatprep.subr.bf16.mxu0 %v7003_v53  ;;  %v7105_v53 = vld [vmem:[%s9464_s3 + $0x424] ss:$24 sps:$4 sm:$0xff]   ;;  %v7112_v1 = vld [vmem:[%s9464_s3 + $0x38] ss:$24 sps:$4 sm:$0xff]  }
 0x213   :  { %3406 = vmatpush1.bf16.msra.mxu0 %v7001_v54  ;;  %v7103_v54 = vld [vmem:[%s9464_s3 + $0x420] ss:$24 sps:$4 sm:$0xff]  }
 0x214   :  { %3407 = vmatprep.subr.bf16.mxu0 %v7006_v55  ;;  %v7108_v55 = vld [vmem:[%s9464_s3 + $0x454] ss:$24 sps:$4 sm:$0xff]  }
 0x217   :  { %3408 = vmatpush1.bf16.msra.mxu0 %v7004_v59  ;;  %v3800_v59 = vmax.f32 %v8846_v2, 0.0  ;;  %v7117_v2 = vld [vmem:[%s9464_s3 + $0x6c] ss:$24 sps:$4 sm:$0xff]  }
 0x218   :  { %3409 = vmatprep.subr.bf16.mxu0 %v7009_v62  ;;  %v7109_v62 = vld [vmem:[%s9464_s3 + $0x8] ss:$24 sps:$4 sm:$0xff]  }
 0x219   :  { %v8988_v63 = vpack.c.bf16 %v3800_v59, %v3800_v59  ;;  %v7264_v59 = vld [vmem:[%s9466_s5 + $0x28] sm:$0xff]  }
 0x21b   :  { %3410 = vmatpush1.bf16.msra.mxu0 %v7007_v3  ;;  %v7115_v3 = vld [vmem:[%s9464_s3 + $0x68] ss:$24 sps:$4 sm:$0xff]  }
 0x21c   :  { %3411 = vmatprep.subr.bf16.mxu0 %v7012_v4  ;;  %v7120_v4 = vld [vmem:[%s9464_s3 + $0x9c] ss:$24 sps:$4 sm:$0xff]  }
 0x21f   :  { %3412 = vmatpush1.bf16.msra.mxu0 %v7010_v5  ;;  %v7118_v5 = vld [vmem:[%s9464_s3 + $0x98] ss:$24 sps:$4 sm:$0xff]  }
 0x220   :  { %3413 = vmatprep.subr.bf16.mxu0 %v7015_v8  ;;  %v7123_v8 = vld [vmem:[%s9464_s3 + $0xcc] ss:$24 sps:$4 sm:$0xff]  }
 0x223   :  { %3414 = vmatpush1.bf16.msra.mxu0 %v7013_v11  ;;  %v7121_v11 = vld [vmem:[%s9464_s3 + $0xc8] ss:$24 sps:$4 sm:$0xff]  }
 0x224   :  { %3415 = vmatprep.subr.bf16.mxu0 %v7018_v13  ;;  %v7126_v13 = vld [vmem:[%s9464_s3 + $0xfc] ss:$24 sps:$4 sm:$0xff]  }
 0x227   :  { %3416 = vmatpush1.bf16.msra.mxu0 %v7016_v14  ;;  %v7124_v14 = vld [vmem:[%s9464_s3 + $0xf8] ss:$24 sps:$4 sm:$0xff]  }
 0x228   :  { %3417 = vmatprep.subr.bf16.mxu0 %v7021_v17  ;;  %v7129_v17 = vld [vmem:[%s9464_s3 + $0x12c] ss:$24 sps:$4 sm:$0xff]  }
 0x22b   :  { %3418 = vmatpush1.bf16.msra.mxu0 %v7019_v18  ;;  %v7127_v18 = vld [vmem:[%s9464_s3 + $0x128] ss:$24 sps:$4 sm:$0xff]  }
 0x22c   :  { %3419 = vmatprep.subr.bf16.mxu0 %v7024_v20  ;;  %v7132_v20 = vld [vmem:[%s9464_s3 + $0x15c] ss:$24 sps:$4 sm:$0xff]  }
 0x22f   :  { %3420 = vmatpush1.bf16.msra.mxu0 %v7022_v21  ;;  %v7130_v21 = vld [vmem:[%s9464_s3 + $0x158] ss:$24 sps:$4 sm:$0xff]  }
 0x230   :  { %3421 = vmatprep.subr.bf16.mxu0 %v7027_v23  ;;  %v7135_v23 = vld [vmem:[%s9464_s3 + $0x18c] ss:$24 sps:$4 sm:$0xff]  }
 0x233   :  { %3422 = vmatpush1.bf16.msra.mxu0 %v7025_v24  ;;  %v7133_v24 = vld [vmem:[%s9464_s3 + $0x188] ss:$24 sps:$4 sm:$0xff]  }
 0x234   :  { %3423 = vmatprep.subr.bf16.mxu0 %v7030_v26  ;;  %v7138_v26 = vld [vmem:[%s9464_s3 + $0x1bc] ss:$24 sps:$4 sm:$0xff]  }
 0x237   :  { %3424 = vmatpush1.bf16.msra.mxu0 %v7028_v27  ;;  %v7136_v27 = vld [vmem:[%s9464_s3 + $0x1b8] ss:$24 sps:$4 sm:$0xff]  }
 0x238   :  { %3425 = vmatprep.subr.bf16.mxu0 %v7033_v19  ;;  %v7141_v19 = vld [vmem:[%s9464_s3 + $0x1ec] ss:$24 sps:$4 sm:$0xff]  }
 0x23b   :  { %3426 = vmatpush1.bf16.msra.mxu0 %v7031_v28  ;;  %v7139_v28 = vld [vmem:[%s9464_s3 + $0x1e8] ss:$24 sps:$4 sm:$0xff]  }
 0x23c   :  { %3427 = vmatprep.subr.bf16.mxu0 %v7036_v58  ;;  %v7144_v58 = vld [vmem:[%s9464_s3 + $0x21c] ss:$24 sps:$4 sm:$0xff]  }
 0x23f   :  { %3428 = vmatpush1.bf16.msra.mxu0 %v7034_v29  ;;  %v7142_v29 = vld [vmem:[%s9464_s3 + $0x218] ss:$24 sps:$4 sm:$0xff]  }
 0x242   :  { %3430 = vmatmul.mubr.bf16.vlgmr.msra.gmra.mrb[0].mxu0 %v8415_v46  ;;  %v7087_v46 = vld [vmem:[%s9464_s3 + $0x304] ss:$24 sps:$4 sm:$0xff]  }
 0x243   :  { %4741 = vmatprep.subr.bf16.mxu1 %v7087_v46  ;;  %v7153_v46 = vld [vmem:[%s9464_s3 + $0x2ac] ss:$24 sps:$4 sm:$0xff]  }
 0x315   :  { %v3431_v37 = vpop.f32.mrb[0].mxu0 }
 0x316   :  { %v6400_v38 = vadd.f32 %v3431_v37, %v612_v34  ;;  %v3433_v39 = vpop.f32.mrb[1].mxu0  ;;  %v7151_v34 = vld [vmem:[%s9464_s3 + $0x2a8] ss:$24 sps:$4 sm:$0xff]   ;;  %v7154_v37 = vld [vmem:[%s9464_s3 + $0x2d8] ss:$24 sps:$4 sm:$0xff]  }
 0x317   :  { %v6401_v40 = vadd.f32 %v3433_v39, %v616_v35  ;;  %v3435_v41 = vpop.f32.mrb[2].mxu0  ;;  %v7156_v35 = vld [vmem:[%s9464_s3 + $0x2dc] ss:$24 sps:$4 sm:$0xff]   ;;  %v7253_v39 = vld [vmem:[%s9466_s5 + $0x40] sm:$0xff]  }
 0x318   :  { %v3798_v10 = vmax.f32 %v6400_v38, 0.0  ;;  %v3436_v43 = vpop.f32.mrb[3].mxu0  ;;  %v7159_v38 = vld [vmem:[%s9464_s3 + $0x30c] ss:$24 sps:$4 sm:$0xff]   ;;  %6334 = vmatprep.subr.bf16.mxu0 %v7253_v39  ;;  %v7157_v41 = vld [vmem:[%s9464_s3 + $0x308] ss:$24 sps:$4 sm:$0xff]  }
 0x319   :  { %v3799_v36 = vmax.f32 %v6401_v40, 0.0  ;;  %v7254_v40 = vld [vmem:[%s9466_s5] sm:$0xff]   ;;  %v7255_v43 = vld [vmem:[%s9466_s5 + $0x48] sm:$0xff]  }
 0x31a   :  { %v8934_v47 = vpack.c.bf16 %v3798_v10, %v3798_v10  ;;  %6335 = vmatpush3.bf16.msra.mxu0 %v7254_v40  ;;  %v7162_v10 = vld [vmem:[%s9464_s3 + $0x33c] ss:$24 sps:$4 sm:$0xff]   ;;  %v7217_v39 = vld [vmem:[%s9464_s3 + $0x250] ss:$24 sps:$4 sm:$0xff]  }
 0x31b   :  { %v8929_v45 = vpack.c.bf16 %v3799_v36, %v3799_v36  ;;  %v7256_v36 = vld [vmem:[%s9466_s5 + $0x8] sm:$0xff]   ;;  %6336 = vmatprep.subr.bf16.mxu0 %v7255_v43  ;;  %v7222_v40 = vld [vmem:[%s9464_s3 + $0x284] ss:$24 sps:$4 sm:$0xff]  }
 0x31c   :  { %v7223_v43 = vld [vmem:[%s9464_s3 + $0x2b0] ss:$24 sps:$4 sm:$0xff]  }
 0x31d   :  { %4732 = vmatprep.mubr.bf16.mxu1 %v8929_v45 }
 0x31e   :  { %4733 = vmatmul.mubr.bf16.vlgmr.msra.gmra.mrb[36].mxu1 %v8934_v47  ;;  %6337 = vmatpush3.bf16.msra.mxu0 %v7256_v36  ;;  %v7228_v36 = vld [vmem:[%s9464_s3 + $0x2e4] ss:$24 sps:$4 sm:$0xff]  }
 0x31f   :  { %4742 = vmatpush1.bf16.msra.mxu1 %v7085_v57  ;;  %4773 = vmatprep.mubr.bf16.mxu1 %v7326_v16  ;;  %v7257_v57 = vld [vmem:[%s9466_s5 + $0x50] sm:$0xff]  }
 0x320   :  { %4743 = vmatprep.subr.bf16.mxu1 %v7090_v42  ;;  %v7160_v42 = vld [vmem:[%s9464_s3 + $0x338] ss:$24 sps:$4 sm:$0xff]   ;;  %6338 = vmatprep.subr.bf16.mxu0 %v7257_v57 }
 0x321   :  { %v7226_v57 = vld [vmem:[%s9464_s3 + $0x2e0] ss:$24 sps:$4 sm:$0xff]  }
 0x323   :  { %4744 = vmatpush1.bf16.msra.mxu1 %v7088_v48  ;;  %v7165_v48 = vld [vmem:[%s9464_s3 + $0x36c] ss:$24 sps:$4 sm:$0xff]  }
 0x324   :  { %4745 = vmatprep.subr.bf16.mxu1 %v7093_v49  ;;  %v7258_v49 = vld [vmem:[%s9466_s5 + $0x10] sm:$0xff]  }
 0x325   :  { %6339 = vmatpush3.bf16.msra.mxu0 %v7258_v49  ;;  %v7234_v49 = vld [vmem:[%s9464_s3 + $0x344] ss:$24 sps:$4 sm:$0xff]  }
 0x327   :  { %4746 = vmatpush1.bf16.msra.mxu1 %v7091_v50  ;;  %v7259_v50 = vld [vmem:[%s9466_s5 + $0x58] sm:$0xff]  }
 0x328   :  { %4747 = vmatprep.subr.bf16.mxu1 %v7096_v22  ;;  %v7163_v22 = vld [vmem:[%s9464_s3 + $0x368] ss:$24 sps:$4 sm:$0xff]   ;;  %6340 = vmatprep.subr.bf16.mxu0 %v7259_v50 }
 0x329   :  { %v7232_v50 = vld [vmem:[%s9464_s3 + $0x340] ss:$24 sps:$4 sm:$0xff]  }
 0x32b   :  { %4748 = vmatpush1.bf16.msra.mxu1 %v7094_v51  ;;  %v7168_v51 = vld [vmem:[%s9464_s3 + $0x39c] ss:$24 sps:$4 sm:$0xff]  }
 0x32c   :  { %4749 = vmatprep.subr.bf16.mxu1 %v7099_v25  ;;  %v7260_v25 = vld [vmem:[%s9466_s5 + $0x18] sm:$0xff]  }
 0x32d   :  { %6341 = vmatpush3.bf16.msra.mxu0 %v7260_v25  ;;  %v7243_v25 = vld [vmem:[%s9464_s3 + $0x3d4] ss:$24 sps:$4 sm:$0xff]  }
 0x32f   :  { %4750 = vmatpush1.bf16.msra.mxu1 %v7097_v52  ;;  %v7261_v52 = vld [vmem:[%s9466_s5 + $0x60] sm:$0xff]  }
 0x330   :  { %4751 = vmatprep.subr.bf16.mxu1 %v7102_v9  ;;  %v7166_v9 = vld [vmem:[%s9464_s3 + $0x398] ss:$24 sps:$4 sm:$0xff]   ;;  %6342 = vmatprep.subr.bf16.mxu0 %v7261_v52 }
 0x331   :  { %v7241_v52 = vld [vmem:[%s9464_s3 + $0x3d0] ss:$24 sps:$4 sm:$0xff]  }
 0x333   :  { %4752 = vmatpush1.bf16.msra.mxu1 %v7100_v15  ;;  %v7171_v15 = vld [vmem:[%s9464_s3 + $0x3cc] ss:$24 sps:$4 sm:$0xff]  }
 0x334   :  { %4753 = vmatprep.subr.bf16.mxu1 %v7105_v53  ;;  %v7262_v53 = vld [vmem:[%s9466_s5 + $0x20] sm:$0xff]  }
 0x335   :  { %6343 = vmatpush3.bf16.msra.mxu0 %v7262_v53  ;;  %v7249_v53 = vld [vmem:[%s9464_s3 + $0x434] ss:$24 sps:$4 sm:$0xff]  }
 0x337   :  { %4754 = vmatpush1.bf16.msra.mxu1 %v7103_v54  ;;  %v7263_v54 = vld [vmem:[%s9466_s5 + $0x68] sm:$0xff]  }
 0x338   :  { %4755 = vmatprep.subr.bf16.mxu1 %v7108_v55  ;;  %v7169_v55 = vld [vmem:[%s9464_s3 + $0x3c8] ss:$24 sps:$4 sm:$0xff]   ;;  %6344 = vmatprep.subr.bf16.mxu0 %v7263_v54 }
 0x339   :  { %6345 = vmatpush3.bf16.msra.mxu0 %v7264_v59  ;;  %v7247_v54 = vld [vmem:[%s9464_s3 + $0x430] ss:$24 sps:$4 sm:$0xff]   ;;  %v7269_v59 = vld [vmem:[%s9466_s5 + $0xc0] sm:$0xff]  }
 0x33b   :  { %4756 = vmatpush1.bf16.msra.mxu1 %v7106_v56  ;;  %v7174_v56 = vld [vmem:[%s9464_s3 + $0x3fc] ss:$24 sps:$4 sm:$0xff]  }
 0x33c   :  { %4782 = vmatprep.subr.bf16.mxu1 %v7111_v60  ;;  %v7172_v60 = vld [vmem:[%s9464_s3 + $0x3f8] ss:$24 sps:$4 sm:$0xff]  }
 0x33e   :  { %4774 = vmatmul.mubr.bf16.vlgmr.msra.gmra.mrb[36].mxu1 %v8988_v63 }
 0x33f   :  { %4783 = vmatpush1.bf16.msra.mxu1 %v7109_v62  ;;  %4814 = vmatprep.mubr.bf16.mxu1 %v8929_v45  ;;  %v7177_v62 = vld [vmem:[%s9464_s3 + $0x42c] ss:$24 sps:$4 sm:$0xff]  }
 0x340   :  { %4784 = vmatprep.subr.bf16.mxu1 %v7114_v0  ;;  %v7265_v0 = vld [vmem:[%s9466_s5 + $0x70] sm:$0xff]  }
 0x341   :  { %6346 = vmatprep.subr.bf16.mxu0 %v7265_v0  ;;  %v7271_v0 = vld [vmem:[%s9466_s5 + $0xc8] sm:$0xff]  }
 0x343   :  { %4785 = vmatpush1.bf16.msra.mxu1 %v7112_v1  ;;  %v7266_v1 = vld [vmem:[%s9466_s5 + $0x30] sm:$0xff]  }
 0x344   :  { %4786 = vmatprep.subr.bf16.mxu1 %v7117_v2  ;;  %v7175_v2 = vld [vmem:[%s9464_s3 + $0x428] ss:$24 sps:$4 sm:$0xff]   ;;  %6347 = vmatpush3.bf16.msra.mxu0 %v7266_v1 }
 0x345   :  { %v7272_v1 = vld [vmem:[%s9466_s5 + $0x88] sm:$0xff]  }
 0x347   :  { %4787 = vmatpush1.bf16.msra.mxu1 %v7115_v3  ;;  %v7180_v3 = vld [vmem:[%s9464_s3 + $0x45c] ss:$24 sps:$4 sm:$0xff]  }
 0x348   :  { %4788 = vmatprep.subr.bf16.mxu1 %v7120_v4  ;;  %v7267_v4 = vld [vmem:[%s9466_s5 + $0x78] sm:$0xff]  }
 0x349   :  { %6348 = vmatprep.subr.bf16.mxu0 %v7267_v4  ;;  %v7276_v4 = vld [vmem:[%s9466_s5 + $0x98] sm:$0xff]  }
 0x34b   :  { %4789 = vmatpush1.bf16.msra.mxu1 %v7118_v5  ;;  %v7268_v5 = vld [vmem:[%s9466_s5 + $0x38] sm:$0xff]  }
 0x34c   :  { %4790 = vmatprep.subr.bf16.mxu1 %v7123_v8  ;;  %v7178_v8 = vld [vmem:[%s9464_s3 + $0x458] ss:$24 sps:$4 sm:$0xff]   ;;  %6349 = vmatpush3.bf16.msra.mxu0 %v7268_v5  ;;  %v7277_v5 = vld [vmem:[%s9466_s5 + $0xe0] sm:$0xff]  }
 0x34f   :  { %4791 = vmatpush1.bf16.msra.mxu1 %v7121_v11  ;;  %v7183_v11 = vld [vmem:[%s9464_s3 + $0x14] ss:$24 sps:$4 sm:$0xff]  }
 0x350   :  { %4792 = vmatprep.subr.bf16.mxu1 %v7126_v13  ;;  %v7181_v13 = vld [vmem:[%s9464_s3 + $0x10] ss:$24 sps:$4 sm:$0xff]  }
 0x353   :  { %4793 = vmatpush1.bf16.msra.mxu1 %v7124_v14  ;;  %v7186_v14 = vld [vmem:[%s9464_s3 + $0x44] ss:$24 sps:$4 sm:$0xff]  }
 0x354   :  { %4794 = vmatprep.subr.bf16.mxu1 %v7129_v17  ;;  %v7184_v17 = vld [vmem:[%s9464_s3 + $0x40] ss:$24 sps:$4 sm:$0xff]  }
 0x357   :  { %4795 = vmatpush1.bf16.msra.mxu1 %v7127_v18  ;;  %v7189_v18 = vld [vmem:[%s9464_s3 + $0x74] ss:$24 sps:$4 sm:$0xff]  }
 0x358   :  { %4796 = vmatprep.subr.bf16.mxu1 %v7132_v20  ;;  %v7187_v20 = vld [vmem:[%s9464_s3 + $0x70] ss:$24 sps:$4 sm:$0xff]  }
 0x35b   :  { %4797 = vmatpush1.bf16.msra.mxu1 %v7130_v21  ;;  %v7192_v21 = vld [vmem:[%s9464_s3 + $0xa4] ss:$24 sps:$4 sm:$0xff]  }
 0x35c   :  { %4798 = vmatprep.subr.bf16.mxu1 %v7135_v23  ;;  %v7195_v23 = vld [vmem:[%s9464_s3 + $0xd4] ss:$24 sps:$4 sm:$0xff]  }
 0x35f   :  { %4799 = vmatpush1.bf16.msra.mxu1 %v7133_v24  ;;  %v7193_v24 = vld [vmem:[%s9464_s3 + $0xd0] ss:$24 sps:$4 sm:$0xff]  }
 0x360   :  { %4800 = vmatprep.subr.bf16.mxu1 %v7138_v26  ;;  %v7198_v26 = vld [vmem:[%s9464_s3 + $0x104] ss:$24 sps:$4 sm:$0xff]  }
 0x363   :  { %4801 = vmatpush1.bf16.msra.mxu1 %v7136_v27  ;;  %v7196_v27 = vld [vmem:[%s9464_s3 + $0x100] ss:$24 sps:$4 sm:$0xff]  }
 0x364   :  { %4802 = vmatprep.subr.bf16.mxu1 %v7141_v19  ;;  %v7201_v19 = vld [vmem:[%s9464_s3 + $0x134] ss:$24 sps:$4 sm:$0xff]  }
 0x367   :  { %4803 = vmatpush1.bf16.msra.mxu1 %v7139_v28  ;;  %v7199_v28 = vld [vmem:[%s9464_s3 + $0x130] ss:$24 sps:$4 sm:$0xff]  }
 0x368   :  { %4804 = vmatprep.subr.bf16.mxu1 %v7144_v58  ;;  %v7204_v58 = vld [vmem:[%s9464_s3 + $0x164] ss:$24 sps:$4 sm:$0xff]  }
 0x36b   :  { %4805 = vmatpush1.bf16.msra.mxu1 %v7142_v29  ;;  %v7202_v29 = vld [vmem:[%s9464_s3 + $0x160] ss:$24 sps:$4 sm:$0xff]  }
 0x36c   :  { %4806 = vmatprep.subr.bf16.mxu1 %v7147_v61  ;;  %v7207_v61 = vld [vmem:[%s9464_s3 + $0x194] ss:$24 sps:$4 sm:$0xff]  }
 0x36f   :  { %4807 = vmatpush1.bf16.msra.mxu1 %v7145_v30  ;;  %v7205_v30 = vld [vmem:[%s9464_s3 + $0x190] ss:$24 sps:$4 sm:$0xff]  }
 0x370   :  { %4808 = vmatprep.subr.bf16.mxu1 %v7150_v31  ;;  %v7210_v31 = vld [vmem:[%s9464_s3 + $0x1c4] ss:$24 sps:$4 sm:$0xff]  }
 0x373   :  { %4809 = vmatpush1.bf16.msra.mxu1 %v7148_v6  ;;  %v7208_v6 = vld [vmem:[%s9464_s3 + $0x1c0] ss:$24 sps:$4 sm:$0xff]  }
 0x374   :  { %4810 = vmatprep.subr.bf16.mxu1 %v7153_v46  ;;  %v7213_v46 = vld [vmem:[%s9464_s3 + $0x1f4] ss:$24 sps:$4 sm:$0xff]  }
 0x377   :  { %4811 = vmatpush1.bf16.msra.mxu1 %v7151_v34  ;;  %v7211_v34 = vld [vmem:[%s9464_s3 + $0x1f0] ss:$24 sps:$4 sm:$0xff]  }
 0x378   :  { %4812 = vmatprep.subr.bf16.mxu1 %v7156_v35  ;;  %v7216_v35 = vld [vmem:[%s9464_s3 + $0x224] ss:$24 sps:$4 sm:$0xff]  }
 0x37b   :  { %4813 = vmatpush1.bf16.msra.mxu1 %v7154_v37  ;;  %v7214_v37 = vld [vmem:[%s9464_s3 + $0x220] ss:$24 sps:$4 sm:$0xff]  }
 0x37c   :  { %4823 = vmatprep.subr.bf16.mxu1 %v7159_v38  ;;  %v7219_v38 = vld [vmem:[%s9464_s3 + $0x254] ss:$24 sps:$4 sm:$0xff]  }
 0x37e   :  { %4815 = vmatmul.mubr.bf16.vlgmr.msra.gmra.mrb[40].mxu1 %v8934_v47 }
 0x37f   :  { %4824 = vmatpush1.bf16.msra.mxu1 %v7157_v41  ;;  %4855 = vmatprep.mubr.bf16.mxu1 %v7326_v16  ;;  %v7220_v41 = vld [vmem:[%s9464_s3 + $0x280] ss:$24 sps:$4 sm:$0xff]  }
 0x380   :  { %4825 = vmatprep.subr.bf16.mxu1 %v7162_v10  ;;  %v7225_v10 = vld [vmem:[%s9464_s3 + $0x2b4] ss:$24 sps:$4 sm:$0xff]  }
 0x383   :  { %4826 = vmatpush1.bf16.msra.mxu1 %v7160_v42  ;;  %v7231_v42 = vld [vmem:[%s9464_s3 + $0x314] ss:$24 sps:$4 sm:$0xff]  }
 0x384   :  { %4827 = vmatprep.subr.bf16.mxu1 %v7165_v48  ;;  %v7229_v48 = vld [vmem:[%s9464_s3 + $0x310] ss:$24 sps:$4 sm:$0xff]  }
 0x387   :  { %4828 = vmatpush1.bf16.msra.mxu1 %v7163_v22  ;;  %v7237_v22 = vld [vmem:[%s9464_s3 + $0x374] ss:$24 sps:$4 sm:$0xff]  }
 0x388   :  { %4829 = vmatprep.subr.bf16.mxu1 %v7168_v51  ;;  %v7235_v51 = vld [vmem:[%s9464_s3 + $0x370] ss:$24 sps:$4 sm:$0xff]  }
 0x38b   :  { %4830 = vmatpush1.bf16.msra.mxu1 %v7166_v9  ;;  %v7246_v9 = vld [vmem:[%s9464_s3 + $0x404] ss:$24 sps:$4 sm:$0xff]  }
 0x38c   :  { %4831 = vmatprep.subr.bf16.mxu1 %v7171_v15  ;;  %v7244_v15 = vld [vmem:[%s9464_s3 + $0x400] ss:$24 sps:$4 sm:$0xff]  }
 0x38f   :  { %4832 = vmatpush1.bf16.msra.mxu1 %v7169_v55  ;;  %v7252_v55 = vld [vmem:[%s9464_s3 + $0x464] ss:$24 sps:$4 sm:$0xff]  }
 0x390   :  { %4833 = vmatprep.subr.bf16.mxu1 %v7174_v56  ;;  %v7250_v56 = vld [vmem:[%s9464_s3 + $0x460] ss:$24 sps:$4 sm:$0xff]  }
 0x393   :  { %4834 = vmatpush1.bf16.msra.mxu1 %v7172_v60  ;;  %v7285_v60 = vld [vmem:[%s9466_s5 + $0x140] sm:$0xff]  }
 0x394   :  { %4835 = vmatprep.subr.bf16.mxu1 %v7177_v62  ;;  %v7270_v62 = vld [vmem:[%s9466_s5 + $0x80] sm:$0xff]   ;;  %6378 = vmatprep.subr.bf16.mxu0 %v7285_v60 }
 0x397   :  { %4836 = vmatpush1.bf16.msra.mxu1 %v7175_v2  ;;  %v7273_v2 = vld [vmem:[%s9466_s5 + $0xd0] sm:$0xff]  }
 0x398   :  { %4837 = vmatprep.subr.bf16.mxu1 %v7180_v3  ;;  %v7274_v3 = vld [vmem:[%s9466_s5 + $0x90] sm:$0xff]  }
 0x39b   :  { %4838 = vmatpush1.bf16.msra.mxu1 %v7178_v8  ;;  %v9362_v8 = vld [vmem:[%s9465_s4] sm:$0x3f] }
 0x39c   :  { %4864 = vmatprep.subr.bf16.mxu1 %v7183_v11  ;;  %v7278_v11 = vld [vmem:[%s9466_s5 + $0xa0] sm:$0xff]  }
 0x39e   :  { %4856 = vmatmul.mubr.bf16.vlgmr.msra.gmra.mrb[40].mxu1 %v8988_v63 }
 0x39f   :  { %4865 = vmatpush1.bf16.msra.mxu1 %v7181_v13  ;;  %4896 = vmatprep.mubr.bf16.mxu1 %v8929_v45  ;;  %v7190_v45 = vld [vmem:[%s9464_s3 + $0xa0] ss:$24 sps:$4 sm:$0xff]   ;;  %v7279_v13 = vld [vmem:[%s9466_s5 + $0xe8] sm:$0xff]  }
 0x3a0   :  { %4866 = vmatprep.subr.bf16.mxu1 %v7186_v14  ;;  %v3953_v14 = vrot.slane %v9362_v8, %v611_v32  ;;  %v7282_v32 = vld [vmem:[%s9466_s5 + $0xb0] sm:$0xff]  }
 0x3a3   :  { %4867 = vmatpush1.bf16.msra.mxu1 %v7184_v17  ;;  %v3957_v17 = vrot.slane %v9362_v8, %v615_v33 }
 0x3a4   :  { %4868 = vmatprep.subr.bf16.mxu1 %v7189_v18  ;;  %v7280_v18 = vld [vmem:[%s9466_s5 + $0xa8] sm:$0xff]  }
 0x3a7   :  { %4869 = vmatpush1.bf16.msra.mxu1 %v7187_v20  ;;  %v7281_v20 = vld [vmem:[%s9466_s5 + $0xf0] sm:$0xff]  }
 0x3a8   :  { %4870 = vmatprep.subr.bf16.mxu1 %v7192_v21 }
 0x3ab   :  { %4871 = vmatpush1.bf16.msra.mxu1 %v7190_v45 }
 0x3ac   :  { %4872 = vmatprep.subr.bf16.mxu1 %v7195_v23 }
 0x3af   :  { %4873 = vmatpush1.bf16.msra.mxu1 %v7193_v24 }
 0x3b0   :  { %4874 = vmatprep.subr.bf16.mxu1 %v7198_v26 }
 0x3b3   :  { %4875 = vmatpush1.bf16.msra.mxu1 %v7196_v27 }
 0x3b4   :  { %4876 = vmatprep.subr.bf16.mxu1 %v7201_v19  ;;  %v7283_v19 = vld [vmem:[%s9466_s5 + $0xf8] sm:$0xff]  }
 0x3b7   :  { %4877 = vmatpush1.bf16.msra.mxu1 %v7199_v28 }
 0x3b8   :  { %4878 = vmatprep.subr.bf16.mxu1 %v7204_v58 }
 0x3bb   :  { %4879 = vmatpush1.bf16.msra.mxu1 %v7202_v29  ;;  %v7284_v29 = vld [vmem:[%s9466_s5 + $0xb8] sm:$0xff]  }
 0x3bc   :  { %4880 = vmatprep.subr.bf16.mxu1 %v7207_v61  ;;  %v7286_v61 = vld [vmem:[%s9466_s5 + $0x100] sm:$0xff]  }
 0x3bf   :  { %4881 = vmatpush1.bf16.msra.mxu1 %v7205_v30 }
 0x3c0   :  { %4882 = vmatprep.subr.bf16.mxu1 %v7210_v31  ;;  %v7287_v31 = vld [vmem:[%s9466_s5 + $0x148] sm:$0xff]  }
 0x3c3   :  { %4883 = vmatpush1.bf16.msra.mxu1 %v7208_v6  ;;  %v7288_v6 = vld [vmem:[%s9466_s5 + $0x108] sm:$0xff]  }
 0x3c4   :  { %4884 = vmatprep.subr.bf16.mxu1 %v7213_v46  ;;  %v7289_v46 = vld [vmem:[%s9466_s5 + $0x150] sm:$0xff]  }
 0x3c7   :  { %4885 = vmatpush1.bf16.msra.mxu1 %v7211_v34  ;;  %v7290_v34 = vld [vmem:[%s9466_s5 + $0x110] sm:$0xff]  }
 0x3c8   :  { %4886 = vmatprep.subr.bf16.mxu1 %v7216_v35  ;;  %v7291_v35 = vld [vmem:[%s9466_s5 + $0x158] sm:$0xff]  }
 0x3cb   :  { %4887 = vmatpush1.bf16.msra.mxu1 %v7214_v37  ;;  %v7292_v37 = vld [vmem:[%s9466_s5 + $0x118] sm:$0xff]  }
 0x3cc   :  { %4888 = vmatprep.subr.bf16.mxu1 %v7219_v38  ;;  %v7293_v38 = vld [vmem:[%s9466_s5 + $0x160] sm:$0xff]  }
 0x3cf   :  { %4889 = vmatpush1.bf16.msra.mxu1 %v7217_v39  ;;  %v7294_v39 = vld [vmem:[%s9466_s5 + $0x120] sm:$0xff]  }
 0x3d0   :  { %4890 = vmatprep.subr.bf16.mxu1 %v7222_v40  ;;  %v7295_v40 = vld [vmem:[%s9466_s5 + $0x168] sm:$0xff]  }
 0x3d3   :  { %4891 = vmatpush1.bf16.msra.mxu1 %v7220_v41  ;;  %v7296_v41 = vld [vmem:[%s9466_s5 + $0x128] sm:$0xff]  }
 0x3d4   :  { %4892 = vmatprep.subr.bf16.mxu1 %v7225_v10  ;;  %v7297_v10 = vld [vmem:[%s9466_s5 + $0x170] sm:$0xff]  }
 0x3d7   :  { %4893 = vmatpush1.bf16.msra.mxu1 %v7223_v43  ;;  %v7298_v43 = vld [vmem:[%s9466_s5 + $0x130] sm:$0xff]  }
 0x3d8   :  { %4894 = vmatprep.subr.bf16.mxu1 %v7228_v36  ;;  %v7299_v36 = vld [vmem:[%s9466_s5 + $0x178] sm:$0xff]  }
 0x3db   :  { %4895 = vmatpush1.bf16.msra.mxu1 %v7226_v57  ;;  %v7300_v57 = vld [vmem:[%s9466_s5 + $0x138] sm:$0xff]  }
 0x3dc   :  { %4905 = vmatprep.subr.bf16.mxu1 %v7231_v42  ;;  %v3964_v42 = vsub.s32 3, %v7397_v12 }
 0x3de   :  { %4897 = vmatmul.mubr.bf16.vlgmr.msra.gmra.mrb[44].mxu1 %v8934_v47  ;;  %v7240_v47 = vld [vmem:[%s9464_s3 + $0x3a4] ss:$24 sps:$4 sm:$0xff]  }
 0x3df   :  { %4906 = vmatpush1.bf16.msra.mxu1 %v7229_v48  ;;  %4937 = vmatprep.mubr.bf16.mxu1 %v7326_v16  ;;  %v7238_v16 = vld [vmem:[%s9464_s3 + $0x3a0] ss:$24 sps:$4 sm:$0xff]   ;;  %v3961_v48 = vrot.slane %v9362_v8, %v619_v44 }
 0x3e0   :  { %4907 = vmatprep.subr.bf16.mxu1 %v7234_v49  ;;  %v3965_v49 = vrot.slane %v9362_v8, %v3964_v42 }
 0x3e3   :  { %4908 = vmatpush1.bf16.msra.mxu1 %v7232_v50 }
 0x3e4   :  { %4909 = vmatprep.subr.bf16.mxu1 %v7237_v22 }
 0x3e7   :  { %4910 = vmatpush1.bf16.msra.mxu1 %v7235_v51 }
 0x3e8   :  { %4911 = vmatprep.subr.bf16.mxu1 %v7240_v47 }
 0x3eb   :  { %4912 = vmatpush1.bf16.msra.mxu1 %v7238_v16 }
 0x3ec   :  { %4913 = vmatprep.subr.bf16.mxu1 %v7243_v25 }
 0x3ef   :  { %4914 = vmatpush1.bf16.msra.mxu1 %v7241_v52 }
 0x3f0   :  { %4915 = vmatprep.subr.bf16.mxu1 %v7246_v9 }
 0x3f3   :  { %4916 = vmatpush1.bf16.msra.mxu1 %v7244_v15 }
 0x3f4   :  { %4917 = vmatprep.subr.bf16.mxu1 %v7249_v53 }
 0x3f7   :  { %4918 = vmatpush1.bf16.msra.mxu1 %v7247_v54  ;;  %v3968_v54 = vsub.s32 4, %v7397_v12 }
 0x3f8   :  { %4919 = vmatprep.subr.bf16.mxu1 %v7252_v55  ;;  %v3972_v55 = vsub.s32 5, %v7397_v12 }
 0x3f9   :  { %v3969_v44 = vrot.slane %v9362_v8, %v3968_v54 }
 0x3fb   :  { %4920 = vmatpush1.bf16.msra.mxu1 %v7250_v56  ;;  %v3973_v56 = vrot.slane %v9362_v8, %v3972_v55  ;;  %v6087_v8 = vld [vmem:[%s9467_s6] ss:$0 sm:$0xff] }
 0x3fc   :  { %6356 = vmatprep.subr.bf16.mxu1 %v7269_v59 }
 0x3fe   :  { %4938 = vmatmul.mubr.bf16.vlgmr.msra.gmra.mrb[44].mxu1 %v8988_v63  ;;  %v7275_v63 = vld [vmem:[%s9466_s5 + $0xd8] sm:$0xff]  }
 0x3ff   :  { %6357 = vmatpush3.bf16.msra.mxu1 %v7270_v62 }
 0x400   :  { %6358 = vmatprep.subr.bf16.mxu1 %v7271_v0 }
 0x403   :  { %6359 = vmatpush3.bf16.msra.mxu1 %v7272_v1 }
 0x404   :  { %6360 = vmatprep.subr.bf16.mxu1 %v7273_v2 }
 0x407   :  { %6361 = vmatpush3.bf16.msra.mxu1 %v7274_v3 }
 0x408   :  { %6362 = vmatprep.subr.bf16.mxu1 %v7275_v63 }
 0x40b   :  { %6363 = vmatpush3.bf16.msra.mxu1 %v7276_v4 }
 0x40c   :  { %6364 = vmatprep.subr.bf16.mxu1 %v7277_v5 }
 0x40f   :  { %6365 = vmatpush3.bf16.msra.mxu1 %v7278_v11 }
 0x410   :  { %6366 = vmatprep.subr.bf16.mxu1 %v7279_v13 }
 0x411   :  { %v4775_v21 = vpop.f32.mrb[36].mxu1 }
 0x412   :  { %v6402_v45 = vadd.f32 %v4775_v21, %v3953_v14  ;;  %v4777_v23 = vpop.f32.mrb[37].mxu1 }
 0x413   :  { %v6403_v24 = vadd.f32 %v4777_v23, %v3957_v17  ;;  %v4779_v26 = vpop.f32.mrb[38].mxu1  ;;  %6367 = vmatpush3.bf16.msra.mxu1 %v7280_v18  ;;  %v7327_v18 = vmov 4  }
 0x414   :  { %v4946_v33 = vmax.f32 %v6402_v45, 0.0  ;;  %v4780_v27 = vpop.f32.mrb[39].mxu1  ;;  %6368 = vmatprep.subr.bf16.mxu1 %v7281_v20  ;;  %6458 = vset.pattern.permute.xlu0 %v7327_v18 }
 0x415   :  { %v4947_v28 = vmax.f32 %v6403_v24, 0.0 }
 0x416   :  { %v4952_v30 = vpack.c.bf16 %v4946_v33, %v4946_v33  ;;  %v5470_v33 = vand.u32 127, %v609_v7 }
 0x417   :  { %v4953_v58 = vpack.c.bf16 %v4947_v28, %v4947_v28  ;;  %6369 = vmatpush3.bf16.msra.mxu1 %v7282_v32 }
 0x418   :  { %6370 = vmatprep.subr.bf16.mxu1 %v7283_v19  ;;  %vm5471_vm0 = vcmp.lt.s32.totalorder %v5470_v33, 4 }
 0x419   :  { %5381 = vmatprep.mubr.bf16.mxu0 %v4953_v58 }
 0x41a   :  { %5382 = vmatmul.mubr.bf16.vlgmr.msra.gmra.mrb[4].mxu0 %v4952_v30 }
 0x41b   :  { %6371 = vmatpush3.bf16.msra.mxu1 %v7284_v29  ;;  %6379 = vmatpush3.bf16.msra.mxu0 %v7286_v61 }
 0x41c   :  { %6380 = vmatprep.subr.bf16.mxu0 %v7287_v31 }
 0x41f   :  { %6381 = vmatpush3.bf16.msra.mxu0 %v7288_v6 }
 0x420   :  { %6382 = vmatprep.subr.bf16.mxu0 %v7289_v46 }
 0x423   :  { %6383 = vmatpush3.bf16.msra.mxu0 %v7290_v34 }
 0x424   :  { %6384 = vmatprep.subr.bf16.mxu0 %v7291_v35 }
 0x427   :  { %6385 = vmatpush3.bf16.msra.mxu0 %v7292_v37 }
 0x428   :  { %6386 = vmatprep.subr.bf16.mxu0 %v7293_v38 }
 0x42b   :  { %6387 = vmatpush3.bf16.msra.mxu0 %v7294_v39 }
 0x42c   :  { %6388 = vmatprep.subr.bf16.mxu0 %v7295_v40 }
 0x42f   :  { %6389 = vmatpush3.bf16.msra.mxu0 %v7296_v41 }
 0x430   :  { %6390 = vmatprep.subr.bf16.mxu0 %v7297_v10 }
 0x433   :  { %6391 = vmatpush3.bf16.msra.mxu0 %v7298_v43 }
 0x434   :  { %6392 = vmatprep.subr.bf16.mxu0 %v7299_v36 }
 0x437   :  { %6393 = vmatpush3.bf16.msra.mxu0 %v7300_v57 }
 0x471   :  { %v4857_v50 = vpop.f32.mrb[40].mxu1 }
 0x472   :  { %v6404_v22 = vadd.f32 %v4857_v50, %v3961_v48  ;;  %v4859_v51 = vpop.f32.mrb[41].mxu1 }
 0x473   :  { %v6405_v47 = vadd.f32 %v4859_v51, %v3965_v49  ;;  %v4861_v16 = vpop.f32.mrb[42].mxu1 }
 0x474   :  { %v4948_v25 = vmax.f32 %v6404_v22, 0.0  ;;  %v4862_v52 = vpop.f32.mrb[43].mxu1 }
 0x475   :  { %v4949_v9 = vmax.f32 %v6405_v47, 0.0 }
 0x476   :  { %v4954_v53 = vpack.c.bf16 %v4948_v25, %v4948_v25 }
 0x477   :  { %v4955_v15 = vpack.c.bf16 %v4949_v9, %v4949_v9 }
 0x479   :  { %5421 = vmatprep.mubr.bf16.mxu1 %v4955_v15 }
 0x47a   :  { %5422 = vmatmul.mubr.bf16.vlgmr.msra.gmra.mrb[48].mxu1 %v4954_v53 }
 0x4d1   :  { %v4939_v59 = vpop.f32.mrb[44].mxu1 }
 0x4d2   :  { %v6406_v60 = vadd.f32 %v4939_v59, %v3969_v44  ;;  %v4941_v62 = vpop.f32.mrb[45].mxu1 }
 0x4d3   :  { %v6407_v0 = vadd.f32 %v4941_v62, %v3973_v56  ;;  %v4943_v1 = vpop.f32.mrb[46].mxu1 }
 0x4d4   :  { %v4950_v2 = vmax.f32 %v6406_v60, 0.0  ;;  %v4944_v3 = vpop.f32.mrb[47].mxu1 }
 0x4d5   :  { %v4951_v63 = vmax.f32 %v6407_v0, 0.0 }
 0x4d6   :  { %v4956_v5 = vpack.c.bf16 %v4950_v2, %v4950_v2 }
 0x4d7   :  { %v4957_v4 = vpack.c.bf16 %v4951_v63, %v4951_v63 }
 0x4d9   :  { %5461 = vmatprep.mubr.bf16.mxu0 %v4957_v4 }
 0x4da   :  { %5462 = vmatmul.mubr.bf16.vlgmr.msra.gmra.mrb[8].mxu0 %v4956_v5 }
 0x4ed   :  { %v6350_v11 = vpop.f32.mrb[4].mxu0 }
 0x4ee   :  { %v6351_v13 = vpop.f32.mrb[5].mxu0 }
 0x4ef   :  { %v6352_v14 = vadd.f32 %v6351_v13, %v6350_v11  ;;  %v6353_v12 = vpop.f32.mrb[6].mxu0 }
 0x4f0   :  { %v6354_v17 = vpop.f32.mrb[7].mxu0 }
 0x4f1   :  { %v5384_v45 = vadd.f32 %v6352_v14, %v6087_v8 }
 0x54d   :  { %v6372_v20 = vpop.f32.mrb[48].mxu1 }
 0x54e   :  { %v6373_v21 = vpop.f32.mrb[49].mxu1 }
 0x54f   :  { %v6374_v23 = vadd.f32 %v6373_v21, %v6372_v20  ;;  %v6375_v24 = vpop.f32.mrb[50].mxu1 }
 0x550   :  { %v6376_v26 = vpop.f32.mrb[51].mxu1 }
 0x551   :  { %v5424_v32 = vadd.f32 %v6374_v23, %v5384_v45 }
 0x5ad   :  { %v6394_v27 = vpop.f32.mrb[8].mxu0 }
 0x5ae   :  { %v6395_v19 = vpop.f32.mrb[9].mxu0 }
 0x5af   :  { %v6396_v28 = vadd.f32 %v6395_v19, %v6394_v27  ;;  %v6397_v58 = vpop.f32.mrb[10].mxu0 }
 0x5b0   :  { %v6398_v29 = vpop.f32.mrb[11].mxu0 }
 0x5b1   :  { %v5464_v61 = vadd.f32 %v6396_v28, %v5424_v32 }
 0x5b3   :  { %v5472_v30 = vsel %vm5471_vm0, %v5464_v61, 0.0 }
 0x5b4   :  { %v5474_v31 = vsel %vm5473_vm1, %v5472_v30, 0.0 }
 0x5b5   :  { %5475 = vadd.xlane.f32.xlu0 %v5474_v31 }
 0x5cb   :  { %5489 = vperm.xlu0 %6458, %v5464_v61  }
 0x642   :  { %v5476_v6 = vpop.xlane.xlu0 %5475 }
 0x643   :  { %v5477_v46 = vrot.slane %v5476_v6, 4 }
 0x645   :  { %v5478_v34 = vadd.f32 %v5477_v46, %v5476_v6 }
 0x647   :  { %v5479_v35 = vrot.slane %v5478_v34, 2 }
 0x649   :  { %v5480_v37 = vadd.f32 %v5479_v35, %v5478_v34 }
 0x64a   :  { %v5490_v7 = vpop.permute.xlu0 %5489 }
 0x64b   :  { %v5481_v38 = vrot.slane %v5480_v37, 1  ;;  %v5492_v40 = vadd.f32 %v5490_v7, %v5464_v61 }
 0x64d   :  { %v5482_v39 = vadd.f32 %v5481_v38, %v5480_v37 }
 0x64f   :  { %6452 = vpush %v5482_v39 }
 0x680   :  { %s6453_s6 = spop %6452 }
 0x681   :  { %s5486_s20 = smul.f32 0.125, %s6453_s6 }
 0x683   :  { %v5493_v41 = vstv %s5486_s20 }
 0x684   :  { %v5494_v10 = vsub.f32 %v5492_v40, %v5493_v41 }
 0x686   :  { %5495 = vst [vmem:[#allocation2] sm:$0x3] %v5494_v10 }
 0x687   :  { %7312 = shalt.err (!%p7309_p4)
}
 0x688   :  { %s7313_s25 = scalar_lea.hbm %s9468_s7, 32 }
 0x689   :  { %p7314_p5 = scmp.ne.s32.totalorder %s9468_s7, %s7313_s25  ;;  %p7317_p6 = scmp.lt.u32.totalorder %s7313_s25, %s9468_s7 }
 0x68b   :  { %p7319_p7 = pnand %p7317_p6, %p7314_p5 }
 0x68d   :  { %7322 = shalt.err (!%p7319_p7)
}
 0x68e   :  { %5505 = dma.vmem_to_hbm [thread:$0]  %s5503_s0, 32, %s9468_s7, [#allocation3]  }
 0x68f   :  { %7323 = dma.done.wait [#allocation3], 32  }
 0x690   :  { %7324 = vsyncadd [#allocation3], 4294967264 }
 0x691   :  { %5509 = vsyncpa [#allocation3], 1 }

</bundles_post_ra>
